<compile_context>
chip_gen: v5e
topology: v5e:2x2
jax: 0.10.0
libtpu: 0.0.40
codegen_flags: <defaults>
</compile_context>

<pallas_src>
import jax
import jax.numpy as jnp
from jax.experimental import pallas as pl
from jax.experimental.pallas import tpu as pltpu


# Below this many bytes per x array, a fused XLA select already hits the HBM
# roofline and the pallas_call launch + pipeline prologue can't be amortized.
_MIN_PALLAS_BYTES = 2 << 20
# Keep at least this many grid steps so the "parallel" axis can shard across
# both TensorCores on v7x and the pipeline stays busy everywhere.
_MIN_GRID_STEPS = 4


def _tpu_vmem_plan():
    """Per-generation (per_array_tile_cap_bytes, vmem_limit_bytes)."""
    kind = ""
    try:
        devs = jax.devices()
        if devs:
            kind = (getattr(devs[0], "device_kind", "") or "").lower()
    except Exception:
        pass
    if "v5" in kind:
        # v5e: 16 MiB default scope -> explicit 64 MiB limit, modest tiles so
        # 4 streams x 2 buffers keep full double-buffering.
        return 2 << 20, 64 << 20
    if "v6" in kind:
        # v6e: 128 MiB physical VMEM; larger tiles amortize per-step overhead.
        return 6 << 20, 80 << 20
    if "v7" in kind or "7x" in kind:
        # v7x: only 64 MiB physical VMEM -> 3 MiB tiles, 48 MiB scoped limit.
        return 3 << 20, 48 << 20
    # Unknown generation: conservative and v7x-safe.
    return 2 << 20, 48 << 20


def _sublane_multiple(itemsize):
    # f32 -> 8, bf16/f16 -> 16, int8/fp8 -> 32 (packed-sublane granularity).
    return max(8, 32 // max(1, itemsize))


def _choose_token_tile(bn, c, itemsize, tile_cap_bytes):
    """Token-tile rows: sublane multiple, VMEM-capped, grid >= _MIN_GRID_STEPS."""
    sub = _sublane_multiple(itemsize)
    rows_budget = max(sub, tile_cap_bytes // max(1, c * itemsize))
    rows_grid = max(sub, bn // _MIN_GRID_STEPS)
    rows = min(rows_budget, rows_grid)
    rows = max(sub, (rows // sub) * sub)
    return min(rows, bn)


def _make_token_exchange_kernel(threshold):
    """Kernel closure with the (static) threshold baked in."""
    thr = float(threshold)

    def kernel(x0_ref, x1_ref, m_ref, o0_ref, o1_ref):
        x0 = x0_ref[...]                           # [T, C]
        x1 = x1_ref[...]                           # [T, C]
        m = m_ref[...].astype(jnp.float32)         # [T, 2] (already f32; no-op)
        keep0 = m[:, 0:1] >= thr                   # [T, 1] -> lane-broadcast
        keep1 = m[:, 1:2] >= thr                   # [T, 1]
        o0_ref[...] = jnp.where(keep0, x0, x1)
        o1_ref[...] = jnp.where(keep1, x1, x0)

    return kernel


def token_exchange(x, mask, mask_threshold, *, donate_inputs=False):
    """Pallas implementation of TokenExchange.forward.

    x    : [x0, x1], each [B, N, C] (same shape/dtype)
    mask : [mask0, mask1], each [B, N]
    mask_threshold : static Python scalar
    Returns [out0, out1], each [B, N, C].
    """
    x0, x1 = x
    mask0, mask1 = mask
    assert x0.shape == x1.shape and x0.dtype == x1.dtype
    assert mask0.shape == x0.shape[:2] and mask1.shape == x0.shape[:2]
    B, N, C = x0.shape
    BN = B * N
    itemsize = x0.dtype.itemsize
    thr = float(mask_threshold)  # TODO(synk): traced thresholds would need SMEM plumbing.

    bytes_per_array = BN * C * itemsize
    if (C % 128 != 0) or (BN < 8) or (bytes_per_array < _MIN_PALLAS_BYTES):
        # Tiny / lane-sparse shapes: fused XLA select beats Pallas launch
        # overhead and avoids masked sub-(8,128) loads/stores.
        m0 = mask0.astype(jnp.float32) >= thr
        m1 = mask1.astype(jnp.float32) >= thr
        out0 = jnp.where(m0[..., None], x0, x1)
        out1 = jnp.where(m1[..., None], x1, x0)
        return [out0, out1]

    # Flatten tokens onto sublanes; merge both masks into one [BN, 2] stream.
    x0f = x0.reshape(BN, C)
    x1f = x1.reshape(BN, C)
    mf = jnp.stack(
        [mask0.reshape(BN), mask1.reshape(BN)], axis=-1
    ).astype(jnp.float32)

    tile_cap, vmem_limit = _tpu_vmem_plan()
    T = _choose_token_tile(BN, C, itemsize, tile_cap)
    grid = (pl.cdiv(BN, T),)

    x_spec = pl.BlockSpec((T, C), lambda i: (i, 0))
    m_spec = pl.BlockSpec((T, 2), lambda i: (i, 0))

    # Safe only because input and output BlockSpecs share identical index maps:
    # each block's inputs are resident in VMEM before that block's writeback.
    io_aliases = {0: 0, 1: 1} if donate_inputs else {}

    out0f, out1f = pl.pallas_call(
        _make_token_exchange_kernel(thr),
        out_shape=(
            jax.ShapeDtypeStruct((BN, C), x0.dtype),
            jax.ShapeDtypeStruct((BN, C), x1.dtype),
        ),
        grid=grid,
        in_specs=[x_spec, x_spec, m_spec],
        out_specs=(x_spec, x_spec),
        input_output_aliases=io_aliases,
        compiler_params=pltpu.CompilerParams(
            dimension_semantics=("parallel",),
            vmem_limit_bytes=vmem_limit,
        ),
    )(x0f, x1f, mf)

    return [out0f.reshape(B, N, C), out1f.reshape(B, N, C)]


def _reference(x, mask, thr):
    x0, x1 = x
    m0, m1 = mask
    r0 = jnp.where((m0.astype(jnp.float32) >= thr)[..., None], x0, x1)
    r1 = jnp.where((m1.astype(jnp.float32) >= thr)[..., None], x1, x0)
    return r0, r1


if __name__ == "__main__":
    key = jax.random.PRNGKey(0)
    k0, k1, k2, k3 = jax.random.split(key, 4)
    mask_threshold = 0.5

    # 1) Pallas path, f32, tile-aligned token count (BN divisible by tile).
    B, N, C = 2, 2048, 128
    x0 = jax.random.normal(k0, (B, N, C), dtype=jnp.float32)
    x1 = jax.random.normal(k1, (B, N, C), dtype=jnp.float32)
    m0 = jax.random.uniform(k2, (B, N), dtype=jnp.float32)
    m1 = jax.random.uniform(k3, (B, N), dtype=jnp.float32)
    out0, out1 = token_exchange([x0, x1], [m0, m1], mask_threshold)
    jax.block_until_ready(out0)
    jax.block_until_ready(out1)
    r0, r1 = _reference([x0, x1], [m0, m1], mask_threshold)
    assert jnp.array_equal(out0, r0), "f32 out0 mismatch"
    assert jnp.array_equal(out1, r1), "f32 out1 mismatch"

    # 2) Pallas path with a partial last block (BN not a multiple of the tile).
    Bp, Np, Cp = 2, 4100, 128
    px0 = jax.random.normal(k0, (Bp, Np, Cp), dtype=jnp.float32)
    px1 = jax.random.normal(k1, (Bp, Np, Cp), dtype=jnp.float32)
    pm0 = jax.random.uniform(k2, (Bp, Np), dtype=jnp.float32)
    pm1 = jax.random.uniform(k3, (Bp, Np), dtype=jnp.float32)
    po0, po1 = token_exchange([px0, px1], [pm0, pm1], mask_threshold)
    jax.block_until_ready(po0)
    pr0, pr1 = _reference([px0, px1], [pm0, pm1], mask_threshold)
    assert jnp.array_equal(po0, pr0), "partial-block out0 mismatch"
    assert jnp.array_equal(po1, pr1), "partial-block out1 mismatch"

    # 3) Pallas path, bf16 x with f32 masks (exercises 16-row sublane rounding).
    Bb, Nb, Cb = 2, 2048, 256
    bx0 = jax.random.normal(k0, (Bb, Nb, Cb), dtype=jnp.bfloat16)
    bx1 = jax.random.normal(k1, (Bb, Nb, Cb), dtype=jnp.bfloat16)
    bm0 = jax.random.uniform(k2, (Bb, Nb), dtype=jnp.float32)
    bm1 = jax.random.uniform(k3, (Bb, Nb), dtype=jnp.float32)
    bo0, bo1 = token_exchange([bx0, bx1], [bm0, bm1], mask_threshold)
    jax.block_until_ready(bo0)
    br0, br1 = _reference([bx0, bx1], [bm0, bm1], mask_threshold)
    assert jnp.array_equal(bo0, br0), "bf16 out0 mismatch"
    assert jnp.array_equal(bo1, br1), "bf16 out1 mismatch"

    # 4) Tiny / non-lane-dense shape -> fused XLA fallback.
    tb, tn, tc = 2, 8, 32
    tx0 = jax.random.normal(k0, (tb, tn, tc), dtype=jnp.float32)
    tx1 = jax.random.normal(k1, (tb, tn, tc), dtype=jnp.float32)
    tm0 = jax.random.uniform(k2, (tb, tn), dtype=jnp.float32)
    tm1 = jax.random.uniform(k3, (tb, tn), dtype=jnp.float32)
    so0, so1 = token_exchange([tx0, tx1], [tm0, tm1], mask_threshold)
    jax.block_until_ready(so0)
    sr0, sr1 = _reference([tx0, tx1], [tm0, tm1], mask_threshold)
    assert jnp.array_equal(so0, sr0), "fallback out0 mismatch"
    assert jnp.array_equal(so1, sr1), "fallback out1 mismatch"

    print("KERNEL_OK")
</pallas_src>

<mosaic_0001>
module attributes {stable_mosaic.version = 11 : i64} {
  func.func @kernel(%arg0: i32, %arg1: memref<1024x128xf32, #tpu.memory_space<vmem>>, %arg2: memref<1024x128xf32, #tpu.memory_space<vmem>>, %arg3: memref<1024x2xf32, #tpu.memory_space<vmem>>, %arg4: memref<1024x128xf32, #tpu.memory_space<vmem>>, %arg5: memref<1024x128xf32, #tpu.memory_space<vmem>>) attributes {dimension_semantics = [#tpu.dimension_semantics<parallel>], iteration_bounds = array<i64: 4>, scalar_prefetch = 0 : i64, scratch_operands = 0 : i64, tpu.core_type = #tpu.core_type<tc>, window_params = [{transform_indices = @transform_0, window_bounds = array<i64: 1024, 128>}, {transform_indices = @transform_1, window_bounds = array<i64: 1024, 128>}, {transform_indices = @transform_2, window_bounds = array<i64: 1024, 2>}, {transform_indices = @transform_3, window_bounds = array<i64: 1024, 128>}, {transform_indices = @transform_4, window_bounds = array<i64: 1024, 128>}]} {
    %c0 = arith.constant 0 : index
    %c0_0 = arith.constant 0 : index
    %0 = vector.load %arg1[%c0, %c0_0] : memref<1024x128xf32, #tpu.memory_space<vmem>>, vector<1024x128xf32>
    %c0_1 = arith.constant 0 : index
    %c0_2 = arith.constant 0 : index
    %1 = vector.load %arg2[%c0_1, %c0_2] : memref<1024x128xf32, #tpu.memory_space<vmem>>, vector<1024x128xf32>
    %c0_3 = arith.constant 0 : index
    %c0_4 = arith.constant 0 : index
    %2 = vector.load %arg3[%c0_3, %c0_4] : memref<1024x2xf32, #tpu.memory_space<vmem>>, vector<1024x2xf32>
    %3 = vector.extract_strided_slice %2 {offsets = [0, 0], sizes = [1024, 1], strides = [1, 1]} : vector<1024x2xf32> to vector<1024x1xf32>
    %cst = arith.constant 5.000000e-01 : f32
    %4 = vector.broadcast %cst : f32 to vector<1024x1xf32>
    %5 = arith.cmpf oge, %3, %4 : vector<1024x1xf32>
    %6 = vector.extract_strided_slice %2 {offsets = [0, 1], sizes = [1024, 1], strides = [1, 1]} : vector<1024x2xf32> to vector<1024x1xf32>
    %cst_5 = arith.constant 5.000000e-01 : f32
    %7 = vector.broadcast %cst_5 : f32 to vector<1024x1xf32>
    %8 = arith.cmpf oge, %6, %7 : vector<1024x1xf32>
    %9 = vector.shape_cast %5 : vector<1024x1xi1> to vector<1024x1xi1>
    %10 = vector.broadcast %9 : vector<1024x1xi1> to vector<1024x128xi1>
    %11 = arith.select %10, %0, %1 : vector<1024x128xi1>, vector<1024x128xf32>
    %c0_6 = arith.constant 0 : index
    %c0_7 = arith.constant 0 : index
    %12 = vector.load %arg4[%c0_6, %c0_7] : memref<1024x128xf32, #tpu.memory_space<vmem>>, vector<1024x128xf32>
    tpu.vector_store %arg4[%c0_6, %c0_7], %11 {strides = array<i32>} : memref<1024x128xf32, #tpu.memory_space<vmem>>, vector<1024x128xf32>,
    %13 = vector.shape_cast %8 : vector<1024x1xi1> to vector<1024x1xi1>
    %14 = vector.broadcast %13 : vector<1024x1xi1> to vector<1024x128xi1>
    %15 = arith.select %14, %1, %0 : vector<1024x128xi1>, vector<1024x128xf32>
    %c0_8 = arith.constant 0 : index
    %c0_9 = arith.constant 0 : index
    %16 = vector.load %arg5[%c0_8, %c0_9] : memref<1024x128xf32, #tpu.memory_space<vmem>>, vector<1024x128xf32>
    tpu.vector_store %arg5[%c0_8, %c0_9], %15 {strides = array<i32>} : memref<1024x128xf32, #tpu.memory_space<vmem>>, vector<1024x128xf32>,
    return
  }
  func.func @transform_0(%arg0: i32) -> (i32, i32) {
    %c0_i32 = arith.constant 0 : i32
    %c0_i32_0 = arith.constant 0 : i32
    return %arg0, %c0_i32 : i32, i32
  }
  func.func @transform_1(%arg0: i32) -> (i32, i32) {
    %c0_i32 = arith.constant 0 : i32
    %c0_i32_0 = arith.constant 0 : i32
    return %arg0, %c0_i32 : i32, i32
  }
  func.func @transform_2(%arg0: i32) -> (i32, i32) {
    %c0_i32 = arith.constant 0 : i32
    %c0_i32_0 = arith.constant 0 : i32
    return %arg0, %c0_i32 : i32, i32
  }
  func.func @transform_3(%arg0: i32) -> (i32, i32) {
    %c0_i32 = arith.constant 0 : i32
    %c0_i32_0 = arith.constant 0 : i32
    return %arg0, %c0_i32 : i32, i32
  }
  func.func @transform_4(%arg0: i32) -> (i32, i32) {
    %c0_i32 = arith.constant 0 : i32
    %c0_i32_0 = arith.constant 0 : i32
    return %arg0, %c0_i32 : i32, i32
  }
}

</mosaic_0001>

<bundles_post_ra>
// kernel: tpu_custom_call.1
= control target key start
LH: loop header
LB: loop body
LE: loop exit
PB: predicated region body
PF: predicated region fallthrough
CT: control target
= control target key end

     0   :  { %10 = vsyncpa [#allocation3], 0  ;;  %s4844_s0 = inlined_call_operand.vmem [shape: f32[4096,128], index: 0, kind: input, shape index: {}]   ;;  %s4845_s1 = inlined_call_operand.hbm [shape: f32[4096,128], index: 1, kind: input, shape index: {}]   ;;  %s4846_s2 = inlined_call_operand.vmem [shape: f32[4096,2], index: 2, kind: input, shape index: {}]   ;;  %s4847_s3 = inlined_call_operand.hbm [shape: f32[4096,128], index: 3, kind: output, shape index: {0}]   ;;  %s4848_s4 = inlined_call_operand.hbm [shape: f32[4096,128], index: 4, kind: output, shape index: {1}]  }
   0x1   :  { %12 = vsyncpa [#allocation3 + $0x1], 0 }
   0x2   :  { %13 = vsyncpa [#allocation4], 0 }
   0x3   :  { %15 = vsyncpa [#allocation4 + $0x1], 0 }
   0x4   :  { %16 = vsyncpa [#allocation7], 0 }
   0x5   :  { %18 = vsyncpa [#allocation7 + $0x1], 0  ;;  %s3125_s15 = smov 0   ;;  %s3127_s16 = smov 0  }
   0x6   :  { %s3129_s17 = smov 0   ;;  %s3131_s18 = smov 0  }
   0x7 LB: > { %s3146_s19 = sadd.s32 4294967295, %s3092_s18   ;;  %s2620_s20 = sadd.s32 4294967294, %s3092_s18   ;;  %s3092_s18 = sphi %s3131_s18, %s5094_s18   ;;  %s3088_s17 = sphi %s3129_s17, %s5093_s17   ;;  %s3084_s16 = sphi %s3127_s16, %s5092_s16   ;;  %s3080_s15 = sphi %s3125_s15, %s5091_s15  }
   0x8   : > { %s3150_s21 = sadd.s32 1, %s3092_s18   ;;  %s57_s22 = sadd.s32 1, %s3088_s17 }
   0x9   : > { %s54_s23 = ssub.s32 %s3092_s18, %s3150_s21  ;;  %p64_p0 = scmp.ne.s32.totalorder %s3088_s17, %s3084_s16 }
   0xa   : > { %p55_p1 = scmp.eq.s32.totalorder %s54_s23, 0  ;;  %p65_p2 = scmp.eq.s32.totalorder %s3092_s18, 0 }
   0xb   : > { %p70_p3 = scmp.ne.s32.totalorder %s3084_s16, %s3080_s15  ;;  %p71_p4 = scmp.eq.s32.totalorder %s3146_s19, 0 }
   0xc   : > { %s3162_s24 = scalar_select %p55_p1, %s3088_s17, %s57_s22  }
   0xd   : > { %p3164_p5 = por %p65_p2, %p64_p0  ;;  %p3168_p6 = por %p71_p4, %p70_p3 }
   0xe   : > { %p120_p7 = scmp.eq.s32.totalorder %s3146_s19, 3  ;;  %p126_p8 = scmp.eq.s32.totalorder %s2620_s20, 3 }
   0xf   : > { %p2662_p9 = scmp.lt.s32.totalorder %s3092_s18, 4  ;;  %s181_s29 = sand.u32 1, %s3088_s17  }
  0x10   : > { %p3174_p10 = por %p120_p7, %p64_p0  ;;  %p3178_p11 = por %p126_p8, %p70_p3 }
  0x11   : > { %s2642_s30 = sshll.u32 %s3092_s18, 10  ;;  %s2623_s5 = sshll.u32 %s181_s29, 10 }
  0x12   : > { %s190_s8 = scalar_lea.hbm %s4845_s1, %s2642_s30  ;;  %s185_s10 = scalar_lea.vmem [#allocation2], %s2623_s5 }
  0x13   : > { %s191_s9 = sshll.u32 %s190_s8, 4  ;;  %s193_s11 = sshll.u32 %s185_s10, 4  ;;  %s192_s9 = int_to_ptr.hbm [resolvable:$true] %s191_s9  ;;  %s194_s11 = int_to_ptr.vmem [resolvable:$true] %s193_s11 }
  0x14   : > { %p3189_p12 = pnand %p2662_p9, %p3164_p5  ;;  %p2626_p13 = scmp.ge.s32.totalorder %s3092_s18, 1 }
  0x15   : > { %p210_p0 = scmp.lt.s32.totalorder %s3092_s18, 5  ;;  %s182_s13 = scalar_lea.sflag [#allocation3], %s181_s29 }
  0x16   : > { %s2964_s14 = sshra.s32 %s192_s9, 4  ;;  %p2968_p2 = pneg %p3189_p12  ;;  %s2965_s14 = int_to_ptr.hbm [resolvable:$true] %s2964_s14 }
  0x17   : > { %s2966_s20 = scalar_lea.hbm %s2965_s14, 1024  ;;  %s2971_s25 = scalar_lea.hbm %s4845_s1, 4096 }
  0x18   : > { %p2967_p1 = scmp.ne.s32.totalorder %s2965_s14, %s2966_s20  ;;  %p2972_p5 = scmp.lt.s32.totalorder %s2965_s14, %s4845_s1 }
  0x19   : > { %p2973_p7 = scmp.lt.s32.totalorder %s2971_s25, %s2966_s20 }
  0x1a   : > { %p2969_p3 = pnand %p2968_p2, %p2967_p1 }
  0x1b   : > { %p2974_p8 = por %p2973_p7, %p2972_p5 }
  0x1c   : > { %p2970_p4 = pneg %p2969_p3 }
  0x1e   : > { %p2975_p9 = pnand %p2974_p8, %p2970_p4 }
  0x20   : > { %2978 = shalt.err (!%p2975_p9)
}
  0x21   : > { %s3094_s29 = smov 128   ;;  %s3095_s6 = smov 8  }
  0x22   : > { %2654 = dma.hbm_to_vmem [thread:$0]  (!%p3189_p12), %s192_s9, 16384, %s194_s11, %s182_s13, %s3094_s29, %s3094_s29, %s3095_s6  }
  0x23   : > { %p211_p1 = pnand %p2626_p13, %p210_p0 }
  0x25   : > { %214 = sbr.rel (%p211_p1) target bundleno = 857 (0x359), region = 32 }
  0x2a   : > { %s3210_s7 = sand.u32 1, %s3084_s16  }
  0x2b   : > { %s3213_s8 = sshll.u32 %s3210_s7, 10  ;;  %s217_s10 = scalar_lea.sflag [#allocation3], %s3210_s7 }
  0x2c   : > { %s3217_s14 = scalar_lea.vmem [#allocation2], %s3213_s8 }
  0x2d   : > { %3067 = dma.done.wait (%p3168_p6), %s217_s10, 16384  }
  0x2e   : > { %3069 = vsyncadd (%p3168_p6), %s217_s10, 4294950912  ;;  %s2630_s9 = sshll.u32 %s3146_s19, 7  ;;  %v4850_v0 = vmov 0   ;;  %s3430_s25 = scalar_lea.vmem [#allocation5], %s3213_s8 }
  0x2f   : > { %2704 = vset.pattern.permute.xlu2 %v4850_v0  ;;  %2703 = vset.pattern.permute.xlu1 %v4850_v0  ;;  %p262_p12 = scmp.lt.s32.totalorder %s2630_s9, 511  ;;  %s4290_s30 = scalar_lea.vmem [#allocation6], %s3213_s8 }
  0x30   : > { %2702 = vset.pattern.permute.xlu0 %v4850_v0  ;;  %s2643_s5 = sshll.u32 %s3146_s19, 10  ;;  %s2470_s10 = sshll.u32 %s3430_s25, 4  ;;  %s2471_s10 = int_to_ptr.vmem [resolvable:$true] %s2470_s10 }
  0x31   : > { %s5096_s9 = smov (!%p262_p12, %s2630_s9), 511  ;;  %s2469_s8 = scalar_lea.hbm %s4847_s3, %s2643_s5 }
  0x32   : > { %s2631_s11 = sshll.u32 %s5096_s9, 3  ;;  %s2472_s9 = sshll.u32 %s2469_s8, 4  ;;  %s2473_s9 = int_to_ptr.hbm [resolvable:$true] %s2472_s9 }
  0x33   : > { %s3235_s26 = scalar_lea.vmem %s4846_s2, %s2631_s11  ;;  %s3421_s23 = scalar_lea.vmem %s4844_s0, %s2631_s11 }
  0x34   : > { %v536_v1 = vld [vmem:[%s3235_s26 + $0x20] sm:$0xff]  ;;  %v534_v2 = vld [vmem:[%s3235_s26 + $0x10] sm:$0xff]  ;;  %v537_v7 = vld [vmem:[%s3235_s26 + $0x28] sm:$0xff]  ;;  %s2453_s11 = scalar_lea.sflag [#allocation4], %s3210_s7  ;;  %s3008_s12 = sshra.s32 %s2473_s9, 4  ;;  %s3009_s12 = int_to_ptr.hbm [resolvable:$true] %s3008_s12 }
  0x35   : > { %v532_v3 = vld [vmem:[%s3235_s26] sm:$0xff]  ;;  %vm664_vm0 = vcmp.ge.f32.partialorder %v536_v1, 0.5  ;;  %vm662_vm1 = vcmp.ge.f32.partialorder %v534_v2, 0.5  ;;  %v535_v8 = vld [vmem:[%s3235_s26 + $0x18] sm:$0xff]  ;;  %v533_v9 = vld [vmem:[%s3235_s26 + $0x8] sm:$0xff]  ;;  %vm665_vm3 = vcmp.ge.f32.partialorder %v537_v7, 0.5  ;;  %p3015_p2 = scmp.lt.s32.totalorder %s3009_s12, %s4847_s3 }
  0x36   : > { %vm660_vm2 = vcmp.ge.f32.partialorder %v532_v3, 0.5  ;;  %v3241_v4 = vsel %vm664_vm0, 1, %v4850_v0  ;;  %v3244_v5 = vsel %vm662_vm1, 1, %v4850_v0  ;;  %vm663_vm4 = vcmp.ge.f32.partialorder %v535_v8, 0.5  ;;  %v540_v13 = vld [vmem:[%s3235_s26 + $0x40] sm:$0xff]  ;;  %v539_v14 = vld [vmem:[%s3235_s26 + $0x38] sm:$0xff] }
  0x37   : > { %v3247_v6 = vsel %vm660_vm2, 1, %v4850_v0  ;;  %929 = vperm.xlu2 %2704, %v3241_v4   ;;  %923 = vperm.xlu1 %2703, %v3244_v5   ;;  %vm661_vm5 = vcmp.ge.f32.partialorder %v533_v9, 0.5  ;;  %v3256_v10 = vsel %vm665_vm3, 1, %v4850_v0  ;;  %v3259_v11 = vsel %vm663_vm4, 1, %v4850_v0  ;;  %v538_v15 = vld [vmem:[%s3235_s26 + $0x30] sm:$0xff]  ;;  %v543_v19 = vld [vmem:[%s3235_s26 + $0x58] sm:$0xff] }
  0x38   : > { %917 = vperm.xlu0 %2702, %v3247_v6   ;;  %v3262_v12 = vsel %vm661_vm5, 1, %v4850_v0  ;;  %vm668_vm6 = vcmp.ge.f32.partialorder %v540_v13, 0.5  ;;  %vm667_vm7 = vcmp.ge.f32.partialorder %v539_v14, 0.5  ;;  %vm666_vm8 = vcmp.ge.f32.partialorder %v538_v15, 0.5  ;;  %v542_v20 = vld [vmem:[%s3235_s26 + $0x50] sm:$0xff]  ;;  %v541_v21 = vld [vmem:[%s3235_s26 + $0x48] sm:$0xff] }
  0x39   : > { %v3271_v16 = vsel %vm668_vm6, 1, %v4850_v0  ;;  %v3274_v17 = vsel %vm667_vm7, 1, %v4850_v0  ;;  %v3277_v18 = vsel %vm666_vm8, 1, %v4850_v0  ;;  %vm671_vm9 = vcmp.ge.f32.partialorder %v543_v19, 0.5  ;;  %v546_v25 = vld [vmem:[%s3235_s26 + $0x70] sm:$0xff]  ;;  %v545_v26 = vld [vmem:[%s3235_s26 + $0x68] sm:$0xff] }
  0x3a   : > { %vm670_vm10 = vcmp.ge.f32.partialorder %v542_v20, 0.5  ;;  %vm669_vm11 = vcmp.ge.f32.partialorder %v541_v21, 0.5  ;;  %v3286_v22 = vsel %vm671_vm9, 1, %v4850_v0  ;;  %v544_v27 = vld [vmem:[%s3235_s26 + $0x60] sm:$0xff]  ;;  %vm674_vm12 = vcmp.ge.f32.partialorder %v546_v25, 0.5  ;;  %v549_v31 = vld [vmem:[%s3235_s26 + $0x88] sm:$0xff] }
  0x3b   : > { %v3289_v23 = vsel %vm670_vm10, 1, %v4850_v0  ;;  %v3292_v24 = vsel %vm669_vm11, 1, %v4850_v0  ;;  %vm673_vm13 = vcmp.ge.f32.partialorder %v545_v26, 0.5  ;;  %vm672_vm14 = vcmp.ge.f32.partialorder %v544_v27, 0.5  ;;  %v548_v32 = vld [vmem:[%s3235_s26 + $0x80] sm:$0xff]  ;;  %v547_v33 = vld [vmem:[%s3235_s26 + $0x78] sm:$0xff] }
  0x3c   : > { %v3301_v28 = vsel %vm674_vm12, 1, %v4850_v0  ;;  %v3304_v29 = vsel %vm673_vm13, 1, %v4850_v0  ;;  %v3307_v30 = vsel %vm672_vm14, 1, %v4850_v0  ;;  %vm677_vm15 = vcmp.ge.f32.partialorder %v549_v31, 0.5  ;;  %v552_v37 = vld [vmem:[%s3235_s26 + $0xa0] sm:$0xff]  ;;  %v551_v38 = vld [vmem:[%s3235_s26 + $0x98] sm:$0xff] }
  0x3d   : > { %vm676_vm0 = vcmp.ge.f32.partialorder %v548_v32, 0.5  ;;  %vm675_vm1 = vcmp.ge.f32.partialorder %v547_v33, 0.5  ;;  %v3316_v34 = vsel %vm677_vm15, 1, %v4850_v0  ;;  %v550_v39 = vld [vmem:[%s3235_s26 + $0x90] sm:$0xff]  ;;  %vm680_vm2 = vcmp.ge.f32.partialorder %v552_v37, 0.5  ;;  %v555_v43 = vld [vmem:[%s3235_s26 + $0xb8] sm:$0xff] }
  0x3e   : > { %v3319_v35 = vsel %vm676_vm0, 1, %v4850_v0  ;;  %v3322_v36 = vsel %vm675_vm1, 1, %v4850_v0  ;;  %vm679_vm3 = vcmp.ge.f32.partialorder %v551_v38, 0.5  ;;  %vm678_vm4 = vcmp.ge.f32.partialorder %v550_v39, 0.5  ;;  %v554_v44 = vld [vmem:[%s3235_s26 + $0xb0] sm:$0xff]  ;;  %v553_v45 = vld [vmem:[%s3235_s26 + $0xa8] sm:$0xff] }
  0x3f   : > { %932 = vperm.xlu2 %2704, %v3256_v10   ;;  %926 = vperm.xlu1 %2703, %v3259_v11   ;;  %v3331_v40 = vsel %vm680_vm2, 1, %v4850_v0  ;;  %v3334_v41 = vsel %vm679_vm3, 1, %v4850_v0  ;;  %v3337_v42 = vsel %vm678_vm4, 1, %v4850_v0  ;;  %vm683_vm5 = vcmp.ge.f32.partialorder %v555_v43, 0.5  ;;  %v558_v49 = vld [vmem:[%s3235_s26 + $0xd0] sm:$0xff]  ;;  %v557_v50 = vld [vmem:[%s3235_s26 + $0xc8] sm:$0xff] }
  0x40   : > { %920 = vperm.xlu0 %2702, %v3262_v12   ;;  %vm682_vm6 = vcmp.ge.f32.partialorder %v554_v44, 0.5  ;;  %vm681_vm7 = vcmp.ge.f32.partialorder %v553_v45, 0.5  ;;  %v3346_v46 = vsel %vm683_vm5, 1, %v4850_v0  ;;  %v556_v51 = vld [vmem:[%s3235_s26 + $0xc0] sm:$0xff]  ;;  %vm686_vm8 = vcmp.ge.f32.partialorder %v558_v49, 0.5  ;;  %v561_v55 = vld [vmem:[%s3235_s26 + $0xe8] sm:$0xff] }
  0x41   : > { %v3349_v47 = vsel %vm682_vm6, 1, %v4850_v0  ;;  %v3352_v48 = vsel %vm681_vm7, 1, %v4850_v0  ;;  %vm685_vm9 = vcmp.ge.f32.partialorder %v557_v50, 0.5  ;;  %vm684_vm10 = vcmp.ge.f32.partialorder %v556_v51, 0.5  ;;  %v560_v56 = vld [vmem:[%s3235_s26 + $0xe0] sm:$0xff]  ;;  %v559_v57 = vld [vmem:[%s3235_s26 + $0xd8] sm:$0xff] }
  0x42   : > { %v3361_v52 = vsel %vm686_vm8, 1, %v4850_v0  ;;  %v3364_v53 = vsel %vm685_vm9, 1, %v4850_v0  ;;  %v3367_v54 = vsel %vm684_vm10, 1, %v4850_v0  ;;  %vm689_vm11 = vcmp.ge.f32.partialorder %v561_v55, 0.5  ;;  %v564_v61 = vld [vmem:[%s3235_s26 + $0x100] sm:$0xff]  ;;  %v563_v62 = vld [vmem:[%s3235_s26 + $0xf8] sm:$0xff] }
  0x43   : > { %vm688_vm12 = vcmp.ge.f32.partialorder %v560_v56, 0.5  ;;  %vm687_vm13 = vcmp.ge.f32.partialorder %v559_v57, 0.5  ;;  %v3376_v58 = vsel %vm689_vm11, 1, %v4850_v0  ;;  %v562_v63 = vld [vmem:[%s3235_s26 + $0xf0] sm:$0xff]  ;;  %vm692_vm14 = vcmp.ge.f32.partialorder %v564_v61, 0.5  ;;  %v567_v7 = vld [vmem:[%s3235_s26 + $0x118] sm:$0xff] }
  0x44   : > { %v3379_v59 = vsel %vm688_vm12, 1, %v4850_v0  ;;  %v3382_v60 = vsel %vm687_vm13, 1, %v4850_v0  ;;  %vm691_vm15 = vcmp.ge.f32.partialorder %v563_v62, 0.5  ;;  %vm690_vm0 = vcmp.ge.f32.partialorder %v562_v63, 0.5  ;;  %v566_v8 = vld [vmem:[%s3235_s26 + $0x110] sm:$0xff]  ;;  %v565_v9 = vld [vmem:[%s3235_s26 + $0x108] sm:$0xff] }
  0x45   : > { %v3391_v1 = vsel %vm692_vm14, 1, %v4850_v0  ;;  %v3394_v2 = vsel %vm691_vm15, 1, %v4850_v0  ;;  %v3397_v3 = vsel %vm690_vm0, 1, %v4850_v0  ;;  %vm695_vm1 = vcmp.ge.f32.partialorder %v567_v7, 0.5  ;;  %v570_v19 = vld [vmem:[%s3235_s26 + $0x130] sm:$0xff]  ;;  %v569_v20 = vld [vmem:[%s3235_s26 + $0x128] sm:$0xff] }
  0x46   : > { %vm694_vm2 = vcmp.ge.f32.partialorder %v566_v8, 0.5  ;;  %vm693_vm3 = vcmp.ge.f32.partialorder %v565_v9, 0.5  ;;  %v3406_v13 = vsel %vm695_vm1, 1, %v4850_v0  ;;  %v568_v21 = vld [vmem:[%s3235_s26 + $0x120] sm:$0xff]  ;;  %vm698_vm4 = vcmp.ge.f32.partialorder %v570_v19, 0.5  ;;  %v573_v38 = vld [vmem:[%s3235_s26 + $0x148] sm:$0xff] }
  0x47   : > { %941 = vperm.xlu2 %2704, %v3271_v16   ;;  %938 = vperm.xlu1 %2703, %v3274_v17   ;;  %v3409_v14 = vsel %vm694_vm2, 1, %v4850_v0  ;;  %v3412_v15 = vsel %vm693_vm3, 1, %v4850_v0  ;;  %v280_v25 = vld [vmem:[%s3421_s23 + $0x20] sm:$0xff]  ;;  %vm697_vm5 = vcmp.ge.f32.partialorder %v569_v20, 0.5  ;;  %vm696_vm7 = vcmp.ge.f32.partialorder %v568_v21, 0.5  ;;  %v571_v43 = vld [vmem:[%s3235_s26 + $0x138] sm:$0xff] }
  0x48   : > { %935 = vperm.xlu0 %2702, %v3277_v18   ;;  %v408_v26 = vld [vmem:[%s3217_s14 + $0x20] sm:$0xff]  ;;  %v3434_v32 = vsel %vm698_vm4, 1, %v4850_v0  ;;  %v3437_v33 = vsel %vm697_vm5, 1, %v4850_v0  ;;  %v3440_v37 = vsel %vm696_vm7, 1, %v4850_v0  ;;  %v281_v44 = vld [vmem:[%s3421_s23 + $0x28] sm:$0xff]  ;;  %vm701_vm8 = vcmp.ge.f32.partialorder %v573_v38, 0.5 }
  0x49   : > { %v572_v39 = vld [vmem:[%s3235_s26 + $0x140] sm:$0xff]  ;;  %v409_v45 = vld [vmem:[%s3217_s14 + $0x28] sm:$0xff]  ;;  %vm699_vm11 = vcmp.ge.f32.partialorder %v571_v43, 0.5  ;;  %v3452_v51 = vsel %vm701_vm8, 1, %v4850_v0  ;;  %v575_v61 = vld [vmem:[%s3235_s26 + $0x158] sm:$0xff]  ;;  %s3010_s13 = scalar_lea.hbm %s3009_s12, 1024 }
  0x4a   : > { %vm700_vm9 = vcmp.ge.f32.partialorder %v572_v39, 0.5  ;;  %v3458_v56 = vsel %vm699_vm11, 1, %v4850_v0  ;;  %v576_v57 = vld [vmem:[%s3235_s26 + $0x160] sm:$0xff]  ;;  %v574_v62 = vld [vmem:[%s3235_s26 + $0x150] sm:$0xff]  ;;  %vm703_vm13 = vcmp.ge.f32.partialorder %v575_v61, 0.5  ;;  %v415_v38 = vld [vmem:[%s3217_s14 + $0x58] sm:$0xff]  ;;  %p3011_p6 = scmp.ne.s32.totalorder %s3009_s12, %s3010_s13 }
  0x4b   : > { %v3455_v55 = vsel %vm700_vm9, 1, %v4850_v0  ;;  %v284_v63 = vld [vmem:[%s3421_s23 + $0x40] sm:$0xff]  ;;  %vm704_vm12 = vcmp.ge.f32.partialorder %v576_v57, 0.5  ;;  %vm702_vm15 = vcmp.ge.f32.partialorder %v574_v62, 0.5  ;;  %v3473_v20 = vsel %vm703_vm13, 1, %v4850_v0  ;;  %v278_v39 = vld [vmem:[%s3421_s23 + $0x10] sm:$0xff] }
  0x4c   : > { %v412_v7 = vld [vmem:[%s3217_s14 + $0x40] sm:$0xff]  ;;  %v3470_v19 = vsel %vm704_vm12, 1, %v4850_v0  ;;  %v3476_v21 = vsel %vm702_vm15, 1, %v4850_v0  ;;  %v406_v43 = vld [vmem:[%s3217_s14 + $0x10] sm:$0xff]  ;;  %p3012_p13 = pnand %p3011_p6, %p3174_p10  ;;  %s3014_s22 = scalar_lea.hbm %s4847_s3, 4096 }
  0x4d   : > { %p3016_p3 = scmp.lt.s32.totalorder %s3014_s22, %s3010_s13 }
  0x4e   : > { %p3013_p0 = pneg %p3012_p13 }
  0x4f   : > { %950 = vperm.xlu2 %2704, %v3286_v22   ;;  %947 = vperm.xlu1 %2703, %v3289_v23   ;;  %p3017_p4 = por %p3016_p3, %p3015_p2 }
  0x50   : > { %944 = vperm.xlu0 %2702, %v3292_v24  }
  0x51   : > { %p3018_p5 = pnand %p3017_p4, %p3013_p0 }
  0x57   : > { %959 = vperm.xlu2 %2704, %v3301_v28   ;;  %956 = vperm.xlu1 %2703, %v3304_v29  }
  0x58   : > { %953 = vperm.xlu0 %2702, %v3307_v30  }
  0x5f   : > { %968 = vperm.xlu2 %2704, %v3316_v34   ;;  %965 = vperm.xlu1 %2703, %v3319_v35  }
  0x60   : > { %962 = vperm.xlu0 %2702, %v3322_v36  }
  0x67   : > { %977 = vperm.xlu2 %2704, %v3331_v40   ;;  %974 = vperm.xlu1 %2703, %v3334_v41  }
  0x68   : > { %971 = vperm.xlu0 %2702, %v3337_v42  }
  0x6f   : > { %986 = vperm.xlu2 %2704, %v3346_v46   ;;  %983 = vperm.xlu1 %2703, %v3349_v47  }
  0x70   : > { %980 = vperm.xlu0 %2702, %v3352_v48  }
  0x77   : > { %995 = vperm.xlu2 %2704, %v3361_v52   ;;  %992 = vperm.xlu1 %2703, %v3364_v53  }
  0x78   : > { %989 = vperm.xlu0 %2702, %v3367_v54  }
  0x7f   : > { %1004 = vperm.xlu2 %2704, %v3376_v58   ;;  %1001 = vperm.xlu1 %2703, %v3379_v59  }
  0x80   : > { %998 = vperm.xlu0 %2702, %v3382_v60  }
  0x87   : > { %1013 = vperm.xlu2 %2704, %v3391_v1   ;;  %1010 = vperm.xlu1 %2703, %v3394_v2  }
  0x88   : > { %1007 = vperm.xlu0 %2702, %v3397_v3  }
  0x8f   : > { %1022 = vperm.xlu2 %2704, %v3406_v13   ;;  %1019 = vperm.xlu1 %2703, %v3409_v14  }
  0x90   : > { %1016 = vperm.xlu0 %2702, %v3412_v15  }
  0x91   : > { %v930_v27 = vpop.permute.xlu2 %929 }
  0x92   : > { %vm1304_vm6 = vcmp.eq.s32.totalorder %v930_v27, 1  ;;  %v287_v27 = vld [vmem:[%s3421_s23 + $0x58] sm:$0xff] }
  0x93   : > { %v1432_v31 = vsel %vm1304_vm6, %v280_v25, %v408_v26  ;;  %v579_v25 = vld [vmem:[%s3235_s26 + $0x178] sm:$0xff]  ;;  %v578_v26 = vld [vmem:[%s3235_s26 + $0x170] sm:$0xff] }
  0x94   : > { %1560 = vst [vmem:[%s3430_s25 + $0x20] sm:$0xff] %v1432_v31  ;;  %v577_v31 = vld [vmem:[%s3235_s26 + $0x168] sm:$0xff]  ;;  %vm707_vm0 = vcmp.ge.f32.partialorder %v579_v25, 0.5  ;;  %vm706_vm1 = vcmp.ge.f32.partialorder %v578_v26, 0.5  ;;  %v582_v25 = vld [vmem:[%s3235_s26 + $0x190] sm:$0xff] }
  0x95   : > { %vm705_vm4 = vcmp.ge.f32.partialorder %v577_v31, 0.5  ;;  %v581_v26 = vld [vmem:[%s3235_s26 + $0x188] sm:$0xff]  ;;  %v580_v31 = vld [vmem:[%s3235_s26 + $0x180] sm:$0xff]  ;;  %vm710_vm6 = vcmp.ge.f32.partialorder %v582_v25, 0.5 }
  0x96   : > { %vm709_vm7 = vcmp.ge.f32.partialorder %v581_v26, 0.5 }
  0x97   : > { %1031 = vperm.xlu2 %2704, %v3434_v32   ;;  %1028 = vperm.xlu1 %2703, %v3437_v33   ;;  %v3519_v25 = vsel %vm709_vm7, 1, %v4850_v0 }
  0x98   : > { %1025 = vperm.xlu0 %2702, %v3440_v37   ;;  %4936 = vst [vmem:[#allocation13_spill] sm:$0xff] %v3519_v25 }
  0x99   : > { %v933_v49 = vpop.permute.xlu2 %932 }
  0x9a   : > { %vm1305_vm10 = vcmp.eq.s32.totalorder %v933_v49, 1  ;;  %v276_v49 = vld [vmem:[%s3421_s23] sm:$0xff] }
  0x9b   : > { %v1433_v50 = vsel %vm1305_vm10, %v281_v44, %v409_v45  ;;  %vm708_vm10 = vcmp.ge.f32.partialorder %v580_v31, 0.5  ;;  %v584_v31 = vld [vmem:[%s3235_s26 + $0x1a0] sm:$0xff] }
  0x9c   : > { %1561 = vst [vmem:[%s3430_s25 + $0x28] sm:$0xff] %v1433_v50  ;;  %v404_v50 = vld [vmem:[%s3217_s14] sm:$0xff]  ;;  %v3523_v26 = vsel %vm708_vm10, 1, %v4850_v0  ;;  %vm712_vm13 = vcmp.ge.f32.partialorder %v584_v31, 0.5 }
  0x9d   : > { %4937 = vst [vmem:[#allocation14_spill] sm:$0xff] %v3523_v26 }
  0x9f   : > { %1040 = vperm.xlu2 %2704, %v3452_v51   ;;  %1037 = vperm.xlu1 %2703, %v3455_v55  }
  0xa0   : > { %1034 = vperm.xlu0 %2702, %v3458_v56  }
  0xa1   : > { %v942_v8 = vpop.permute.xlu2 %941 }
  0xa2   : > { %vm1308_vm14 = vcmp.eq.s32.totalorder %v942_v8, 1  ;;  %v3495_v8 = vsel %vm706_vm1, 1, %v4850_v0 }
  0xa3   : > { %v1436_v9 = vsel %vm1308_vm14, %v284_v63, %v412_v7  ;;  %v3492_v7 = vsel %vm707_vm0, 1, %v4850_v0 }
  0xa4   : > { %1564 = vst [vmem:[%s3430_s25 + $0x40] sm:$0xff] %v1436_v9  ;;  %v3499_v9 = vsel %vm705_vm4, 1, %v4850_v0 }
  0xa5   : > { %4934 = vst [vmem:[#allocation11_spill] sm:$0xff] %v3492_v7 }
  0xa7   : > { %1049 = vperm.xlu2 %2704, %v3470_v19   ;;  %1046 = vperm.xlu1 %2703, %v3473_v20  }
  0xa8   : > { %1043 = vperm.xlu0 %2702, %v3476_v21  }
  0xa9   : > { %v951_v44 = vpop.permute.xlu2 %950  ;;  %v924_v45 = vpop.permute.xlu1 %923 }
  0xaa   : > { %vm1311_vm2 = vcmp.eq.s32.totalorder %v951_v44, 1  ;;  %vm1302_vm3 = vcmp.eq.s32.totalorder %v924_v45, 1  ;;  %v918_v57 = vpop.permute.xlu0 %917 }
  0xab   : > { %v1439_v61 = vsel %vm1311_vm2, %v287_v27, %v415_v38  ;;  %v1430_v62 = vsel %vm1302_vm3, %v278_v39, %v406_v43  ;;  %vm1300_vm5 = vcmp.eq.s32.totalorder %v918_v57, 1  ;;  %v290_v27 = vld [vmem:[%s3421_s23 + $0x70] sm:$0xff]  ;;  %v279_v39 = vld [vmem:[%s3421_s23 + $0x18] sm:$0xff] }
  0xac   : > { %1567 = vst [vmem:[%s3430_s25 + $0x58] sm:$0xff] %v1439_v61  ;;  %v1428_v63 = vsel %vm1300_vm5, %v276_v49, %v404_v50  ;;  %v418_v38 = vld [vmem:[%s3217_s14 + $0x70] sm:$0xff]  ;;  %v407_v43 = vld [vmem:[%s3217_s14 + $0x18] sm:$0xff]  ;;  %v277_v49 = vld [vmem:[%s3421_s23 + $0x8] sm:$0xff] }
  0xad   : > { %1558 = vst [vmem:[%s3430_s25 + $0x10] sm:$0xff] %v1430_v62  ;;  %v405_v50 = vld [vmem:[%s3217_s14 + $0x8] sm:$0xff] }
  0xae   : > { %1556 = vst [vmem:[%s3430_s25] sm:$0xff] %v1428_v63 }
  0xaf   : > { %1058 = vperm.xlu2 %2704, %v3492_v7   ;;  %1055 = vperm.xlu1 %2703, %v3495_v8   ;;  %v3516_v7 = vsel %vm710_vm6, 1, %v4850_v0 }
  0xb0   : > { %1052 = vperm.xlu0 %2702, %v3499_v9   ;;  %4935 = vst [vmem:[#allocation12_spill] sm:$0xff] %v3516_v7 }
  0xb1   : > { %v960_v44 = vpop.permute.xlu2 %959  ;;  %v927_v45 = vpop.permute.xlu1 %926 }
  0xb2   : > { %vm1314_vm8 = vcmp.eq.s32.totalorder %v960_v44, 1  ;;  %vm1303_vm9 = vcmp.eq.s32.totalorder %v927_v45, 1  ;;  %v921_v57 = vpop.permute.xlu0 %920  ;;  %v283_v44 = vld [vmem:[%s3421_s23 + $0x38] sm:$0xff] }
  0xb3   : > { %v1442_v61 = vsel %vm1314_vm8, %v290_v27, %v418_v38  ;;  %v1431_v62 = vsel %vm1303_vm9, %v279_v39, %v407_v43  ;;  %vm1301_vm11 = vcmp.eq.s32.totalorder %v921_v57, 1  ;;  %v585_v27 = vld [vmem:[%s3235_s26 + $0x1a8] sm:$0xff]  ;;  %v583_v39 = vld [vmem:[%s3235_s26 + $0x198] sm:$0xff]  ;;  %v282_v57 = vld [vmem:[%s3421_s23 + $0x30] sm:$0xff] }
  0xb4   : > { %1570 = vst [vmem:[%s3430_s25 + $0x70] sm:$0xff] %v1442_v61  ;;  %v1429_v63 = vsel %vm1301_vm11, %v277_v49, %v405_v50  ;;  %v293_v38 = vld [vmem:[%s3421_s23 + $0x88] sm:$0xff]  ;;  %v411_v45 = vld [vmem:[%s3217_s14 + $0x38] sm:$0xff]  ;;  %v410_v61 = vld [vmem:[%s3217_s14 + $0x30] sm:$0xff]  ;;  %vm713_vm12 = vcmp.ge.f32.partialorder %v585_v27, 0.5  ;;  %vm711_vm0 = vcmp.ge.f32.partialorder %v583_v39, 0.5 }
  0xb5   : > { %1559 = vst [vmem:[%s3430_s25 + $0x18] sm:$0xff] %v1431_v62  ;;  %v421_v43 = vld [vmem:[%s3217_s14 + $0x88] sm:$0xff]  ;;  %v587_v39 = vld [vmem:[%s3235_s26 + $0x1b8] sm:$0xff] }
  0xb6   : > { %1557 = vst [vmem:[%s3430_s25 + $0x8] sm:$0xff] %v1429_v63  ;;  %vm715_vm3 = vcmp.ge.f32.partialorder %v587_v39, 0.5 }
  0xb7   : > { %1067 = vperm.xlu2 %2704, %v3516_v7   ;;  %1064 = vperm.xlu1 %2703, %v3519_v25   ;;  %v4938_v25 = vmov 0  }
  0xb8   : > { %1061 = vperm.xlu0 %2702, %v3523_v26   ;;  %v3540_v26 = vsel %vm713_vm12, 1, %v4938_v25  ;;  %v3543_v27 = vsel %vm712_vm13, 1, %v4938_v25  ;;  %v3547_v31 = vsel %vm711_vm0, 1, %v4938_v25 }
  0xb9   : > { %v969_v49 = vpop.permute.xlu2 %968  ;;  %v939_v50 = vpop.permute.xlu1 %938  ;;  %4939 = vst [vmem:[#allocation15_spill] sm:$0xff] %v3540_v26 }
  0xba   : > { %vm1317_vm14 = vcmp.eq.s32.totalorder %v969_v49, 1  ;;  %vm1307_vm15 = vcmp.eq.s32.totalorder %v939_v50, 1  ;;  %v936_v62 = vpop.permute.xlu0 %935  ;;  %4940 = vst [vmem:[#allocation16_spill] sm:$0xff] %v3543_v27  ;;  %v286_v49 = vld [vmem:[%s3421_s23 + $0x50] sm:$0xff] }
  0xbb   : > { %v1445_v63 = vsel %vm1317_vm14, %v293_v38, %v421_v43  ;;  %v1435_v0 = vsel %vm1307_vm15, %v283_v44, %v411_v45  ;;  %vm1306_vm1 = vcmp.eq.s32.totalorder %v936_v62, 1  ;;  %4941 = vst [vmem:[#allocation17_spill] sm:$0xff] %v3547_v31  ;;  %v588_v38 = vld [vmem:[%s3235_s26 + $0x1c0] sm:$0xff]  ;;  %v586_v44 = vld [vmem:[%s3235_s26 + $0x1b0] sm:$0xff]  ;;  %v413_v62 = vld [vmem:[%s3217_s14 + $0x48] sm:$0xff] }
  0xbc   : > { %1573 = vst [vmem:[%s3430_s25 + $0x88] sm:$0xff] %v1445_v63  ;;  %v1434_v7 = vsel %vm1306_vm1, %v282_v57, %v410_v61  ;;  %v296_v43 = vld [vmem:[%s3421_s23 + $0xa0] sm:$0xff]  ;;  %v414_v50 = vld [vmem:[%s3217_s14 + $0x50] sm:$0xff]  ;;  %v285_v61 = vld [vmem:[%s3421_s23 + $0x48] sm:$0xff]  ;;  %vm716_vm2 = vcmp.ge.f32.partialorder %v588_v38, 0.5  ;;  %vm714_vm6 = vcmp.ge.f32.partialorder %v586_v44, 0.5 }
  0xbd   : > { %1563 = vst [vmem:[%s3430_s25 + $0x38] sm:$0xff] %v1435_v0  ;;  %v424_v45 = vld [vmem:[%s3217_s14 + $0xa0] sm:$0xff]  ;;  %v3567_v38 = vsel %vm715_vm3, 1, %v4938_v25  ;;  %v3571_v39 = vsel %vm714_vm6, 1, %v4938_v25  ;;  %v590_v44 = vld [vmem:[%s3235_s26 + $0x1d0] sm:$0xff] }
  0xbe   : > { %1562 = vst [vmem:[%s3430_s25 + $0x30] sm:$0xff] %v1434_v7  ;;  %vm718_vm9 = vcmp.ge.f32.partialorder %v590_v44, 0.5 }
  0xbf   : > { %1076 = vperm.xlu2 %2704, %v3540_v26   ;;  %1073 = vperm.xlu1 %2703, %v3543_v27   ;;  %4943 = vst [vmem:[#allocation19_spill] sm:$0xff] %v3567_v38 }
  0xc0   : > { %1070 = vperm.xlu0 %2702, %v3547_v31   ;;  %v3564_v31 = vsel %vm716_vm2, 1, %v4938_v25  ;;  %4944 = vst [vmem:[#allocation20_spill] sm:$0xff] %v3571_v39 }
  0xc1   : > { %v978_v0 = vpop.permute.xlu2 %977  ;;  %v948_v57 = vpop.permute.xlu1 %947  ;;  %4942 = vst [vmem:[#allocation18_spill] sm:$0xff] %v3564_v31 }
  0xc2   : > { %vm1320_vm4 = vcmp.eq.s32.totalorder %v978_v0, 1  ;;  %vm1310_vm5 = vcmp.eq.s32.totalorder %v948_v57, 1  ;;  %v945_v7 = vpop.permute.xlu0 %944  ;;  %v289_v0 = vld [vmem:[%s3421_s23 + $0x68] sm:$0xff] }
  0xc3   : > { %v1448_v63 = vsel %vm1320_vm4, %v296_v43, %v424_v45  ;;  %v1438_v26 = vsel %vm1310_vm5, %v286_v49, %v414_v50  ;;  %vm1309_vm7 = vcmp.eq.s32.totalorder %v945_v7, 1  ;;  %v591_v43 = vld [vmem:[%s3235_s26 + $0x1d8] sm:$0xff]  ;;  %v589_v49 = vld [vmem:[%s3235_s26 + $0x1c8] sm:$0xff]  ;;  %v416_v7 = vld [vmem:[%s3217_s14 + $0x60] sm:$0xff] }
  0xc4   : > { %1576 = vst [vmem:[%s3430_s25 + $0xa0] sm:$0xff] %v1448_v63  ;;  %v1437_v27 = vsel %vm1309_vm7, %v285_v61, %v413_v62  ;;  %v299_v45 = vld [vmem:[%s3421_s23 + $0xb8] sm:$0xff]  ;;  %v417_v57 = vld [vmem:[%s3217_s14 + $0x68] sm:$0xff]  ;;  %v288_v62 = vld [vmem:[%s3421_s23 + $0x60] sm:$0xff]  ;;  %vm719_vm8 = vcmp.ge.f32.partialorder %v591_v43, 0.5  ;;  %vm717_vm12 = vcmp.ge.f32.partialorder %v589_v49, 0.5 }
  0xc5   : > { %1566 = vst [vmem:[%s3430_s25 + $0x50] sm:$0xff] %v1438_v26  ;;  %v427_v50 = vld [vmem:[%s3217_s14 + $0xb8] sm:$0xff]  ;;  %v3591_v43 = vsel %vm718_vm9, 1, %v4938_v25  ;;  %v3595_v44 = vsel %vm717_vm12, 1, %v4938_v25  ;;  %v593_v49 = vld [vmem:[%s3235_s26 + $0x1e8] sm:$0xff] }
  0xc6   : > { %1565 = vst [vmem:[%s3430_s25 + $0x48] sm:$0xff] %v1437_v27  ;;  %vm721_vm15 = vcmp.ge.f32.partialorder %v593_v49, 0.5 }
  0xc7   : > { %1085 = vperm.xlu2 %2704, %v3564_v31   ;;  %1082 = vperm.xlu1 %2703, %v3567_v38   ;;  %4946 = vst [vmem:[#allocation22_spill] sm:$0xff] %v3591_v43 }
  0xc8   : > { %1079 = vperm.xlu0 %2702, %v3571_v39   ;;  %v3588_v39 = vsel %vm719_vm8, 1, %v4938_v25  ;;  %4947 = vst [vmem:[#allocation23_spill] sm:$0xff] %v3595_v44 }
  0xc9   : > { %v987_v26 = vpop.permute.xlu2 %986  ;;  %v957_v61 = vpop.permute.xlu1 %956  ;;  %4945 = vst [vmem:[#allocation21_spill] sm:$0xff] %v3588_v39 }
  0xca   : > { %vm1323_vm10 = vcmp.eq.s32.totalorder %v987_v26, 1  ;;  %vm1313_vm11 = vcmp.eq.s32.totalorder %v957_v61, 1  ;;  %v954_v27 = vpop.permute.xlu0 %953  ;;  %v292_v26 = vld [vmem:[%s3421_s23 + $0x80] sm:$0xff] }
  0xcb   : > { %v1451_v63 = vsel %vm1323_vm10, %v299_v45, %v427_v50  ;;  %v1441_v31 = vsel %vm1313_vm11, %v289_v0, %v417_v57  ;;  %vm1312_vm13 = vcmp.eq.s32.totalorder %v954_v27, 1  ;;  %v594_v45 = vld [vmem:[%s3235_s26 + $0x1f0] sm:$0xff]  ;;  %v592_v0 = vld [vmem:[%s3235_s26 + $0x1e0] sm:$0xff]  ;;  %v419_v27 = vld [vmem:[%s3217_s14 + $0x78] sm:$0xff] }
  0xcc   : > { %1579 = vst [vmem:[%s3430_s25 + $0xb8] sm:$0xff] %v1451_v63  ;;  %v1440_v38 = vsel %vm1312_vm13, %v288_v62, %v416_v7  ;;  %v302_v50 = vld [vmem:[%s3421_s23 + $0xd0] sm:$0xff]  ;;  %v420_v61 = vld [vmem:[%s3217_s14 + $0x80] sm:$0xff]  ;;  %v291_v7 = vld [vmem:[%s3421_s23 + $0x78] sm:$0xff]  ;;  %vm722_vm14 = vcmp.ge.f32.partialorder %v594_v45, 0.5  ;;  %vm720_vm2 = vcmp.ge.f32.partialorder %v592_v0, 0.5 }
  0xcd   : > { %1569 = vst [vmem:[%s3430_s25 + $0x68] sm:$0xff] %v1441_v31  ;;  %v430_v57 = vld [vmem:[%s3217_s14 + $0xd0] sm:$0xff]  ;;  %v3615_v45 = vsel %vm721_vm15, 1, %v4938_v25  ;;  %v3619_v49 = vsel %vm720_vm2, 1, %v4938_v25  ;;  %v596_v0 = vld [vmem:[%s3235_s26 + $0x200] sm:$0xff] }
  0xce   : > { %1568 = vst [vmem:[%s3430_s25 + $0x60] sm:$0xff] %v1440_v38  ;;  %vm724_vm5 = vcmp.ge.f32.partialorder %v596_v0, 0.5 }
  0xcf   : > { %1094 = vperm.xlu2 %2704, %v3588_v39   ;;  %1091 = vperm.xlu1 %2703, %v3591_v43   ;;  %4949 = vst [vmem:[#allocation25_spill] sm:$0xff] %v3615_v45 }
  0xd0   : > { %1088 = vperm.xlu0 %2702, %v3595_v44   ;;  %v3612_v44 = vsel %vm722_vm14, 1, %v4938_v25  ;;  %4950 = vst [vmem:[#allocation26_spill] sm:$0xff] %v3619_v49 }
  0xd1   : > { %v996_v31 = vpop.permute.xlu2 %995  ;;  %v966_v62 = vpop.permute.xlu1 %965  ;;  %4948 = vst [vmem:[#allocation24_spill] sm:$0xff] %v3612_v44 }
  0xd2   : > { %vm1326_vm0 = vcmp.eq.s32.totalorder %v996_v31, 1  ;;  %vm1316_vm1 = vcmp.eq.s32.totalorder %v966_v62, 1  ;;  %v963_v38 = vpop.permute.xlu0 %962  ;;  %v295_v31 = vld [vmem:[%s3421_s23 + $0x98] sm:$0xff] }
  0xd3   : > { %v1454_v63 = vsel %vm1326_vm0, %v302_v50, %v430_v57  ;;  %v1444_v39 = vsel %vm1316_vm1, %v292_v26, %v420_v61  ;;  %vm1315_vm3 = vcmp.eq.s32.totalorder %v963_v38, 1  ;;  %v597_v50 = vld [vmem:[%s3235_s26 + $0x208] sm:$0xff]  ;;  %v595_v26 = vld [vmem:[%s3235_s26 + $0x1f8] sm:$0xff]  ;;  %v422_v38 = vld [vmem:[%s3217_s14 + $0x90] sm:$0xff] }
  0xd4   : > { %1582 = vst [vmem:[%s3430_s25 + $0xd0] sm:$0xff] %v1454_v63  ;;  %v1443_v43 = vsel %vm1315_vm3, %v291_v7, %v419_v27  ;;  %v305_v57 = vld [vmem:[%s3421_s23 + $0xe8] sm:$0xff]  ;;  %v423_v62 = vld [vmem:[%s3217_s14 + $0x98] sm:$0xff]  ;;  %v294_v27 = vld [vmem:[%s3421_s23 + $0x90] sm:$0xff]  ;;  %vm725_vm4 = vcmp.ge.f32.partialorder %v597_v50, 0.5  ;;  %vm723_vm8 = vcmp.ge.f32.partialorder %v595_v26, 0.5 }
  0xd5   : > { %1572 = vst [vmem:[%s3430_s25 + $0x80] sm:$0xff] %v1444_v39  ;;  %v433_v61 = vld [vmem:[%s3217_s14 + $0xe8] sm:$0xff]  ;;  %v3639_v50 = vsel %vm724_vm5, 1, %v4938_v25  ;;  %v3643_v0 = vsel %vm723_vm8, 1, %v4938_v25  ;;  %v599_v26 = vld [vmem:[%s3235_s26 + $0x218] sm:$0xff] }
  0xd6   : > { %1571 = vst [vmem:[%s3430_s25 + $0x78] sm:$0xff] %v1443_v43  ;;  %vm727_vm11 = vcmp.ge.f32.partialorder %v599_v26, 0.5 }
  0xd7   : > { %1103 = vperm.xlu2 %2704, %v3612_v44   ;;  %1100 = vperm.xlu1 %2703, %v3615_v45   ;;  %4952 = vst [vmem:[#allocation28_spill] sm:$0xff] %v3639_v50 }
  0xd8   : > { %1097 = vperm.xlu0 %2702, %v3619_v49   ;;  %v3636_v49 = vsel %vm725_vm4, 1, %v4938_v25  ;;  %4953 = vst [vmem:[#allocation29_spill] sm:$0xff] %v3643_v0 }
  0xd9   : > { %v1005_v39 = vpop.permute.xlu2 %1004  ;;  %v975_v7 = vpop.permute.xlu1 %974  ;;  %4951 = vst [vmem:[#allocation27_spill] sm:$0xff] %v3636_v49 }
  0xda   : > { %vm1329_vm6 = vcmp.eq.s32.totalorder %v1005_v39, 1  ;;  %vm1319_vm7 = vcmp.eq.s32.totalorder %v975_v7, 1  ;;  %v972_v43 = vpop.permute.xlu0 %971  ;;  %v298_v39 = vld [vmem:[%s3421_s23 + $0xb0] sm:$0xff] }
  0xdb   : > { %v1457_v63 = vsel %vm1329_vm6, %v305_v57, %v433_v61  ;;  %v1447_v44 = vsel %vm1319_vm7, %v295_v31, %v423_v62  ;;  %vm1318_vm9 = vcmp.eq.s32.totalorder %v972_v43, 1  ;;  %v600_v57 = vld [vmem:[%s3235_s26 + $0x220] sm:$0xff]  ;;  %v598_v31 = vld [vmem:[%s3235_s26 + $0x210] sm:$0xff]  ;;  %v425_v43 = vld [vmem:[%s3217_s14 + $0xa8] sm:$0xff] }
  0xdc   : > { %1585 = vst [vmem:[%s3430_s25 + $0xe8] sm:$0xff] %v1457_v63  ;;  %v1446_v45 = vsel %vm1318_vm9, %v294_v27, %v422_v38  ;;  %v308_v61 = vld [vmem:[%s3421_s23 + $0x100] sm:$0xff]  ;;  %v426_v7 = vld [vmem:[%s3217_s14 + $0xb0] sm:$0xff]  ;;  %v297_v38 = vld [vmem:[%s3421_s23 + $0xa8] sm:$0xff]  ;;  %vm728_vm10 = vcmp.ge.f32.partialorder %v600_v57, 0.5  ;;  %vm726_vm14 = vcmp.ge.f32.partialorder %v598_v31, 0.5 }
  0xdd   : > { %1575 = vst [vmem:[%s3430_s25 + $0x98] sm:$0xff] %v1447_v44  ;;  %v436_v62 = vld [vmem:[%s3217_s14 + $0x100] sm:$0xff]  ;;  %v3663_v57 = vsel %vm727_vm11, 1, %v4938_v25  ;;  %v3667_v26 = vsel %vm726_vm14, 1, %v4938_v25  ;;  %v602_v31 = vld [vmem:[%s3235_s26 + $0x230] sm:$0xff] }
  0xde   : > { %1574 = vst [vmem:[%s3430_s25 + $0x90] sm:$0xff] %v1446_v45  ;;  %vm730_vm1 = vcmp.ge.f32.partialorder %v602_v31, 0.5 }
  0xdf   : > { %1112 = vperm.xlu2 %2704, %v3636_v49   ;;  %1109 = vperm.xlu1 %2703, %v3639_v50   ;;  %4955 = vst [vmem:[#allocation31_spill] sm:$0xff] %v3663_v57 }
  0xe0   : > { %1106 = vperm.xlu0 %2702, %v3643_v0   ;;  %v3660_v0 = vsel %vm728_vm10, 1, %v4938_v25  ;;  %4956 = vst [vmem:[#allocation32_spill] sm:$0xff] %v3667_v26 }
  0xe1   : > { %v1014_v44 = vpop.permute.xlu2 %1013  ;;  %v984_v27 = vpop.permute.xlu1 %983  ;;  %4954 = vst [vmem:[#allocation30_spill] sm:$0xff] %v3660_v0 }
  0xe2   : > { %vm1332_vm12 = vcmp.eq.s32.totalorder %v1014_v44, 1  ;;  %vm1322_vm13 = vcmp.eq.s32.totalorder %v984_v27, 1  ;;  %v981_v45 = vpop.permute.xlu0 %980  ;;  %v301_v44 = vld [vmem:[%s3421_s23 + $0xc8] sm:$0xff] }
  0xe3   : > { %v1460_v63 = vsel %vm1332_vm12, %v308_v61, %v436_v62  ;;  %v1450_v49 = vsel %vm1322_vm13, %v298_v39, %v426_v7  ;;  %vm1321_vm15 = vcmp.eq.s32.totalorder %v981_v45, 1  ;;  %v603_v61 = vld [vmem:[%s3235_s26 + $0x238] sm:$0xff]  ;;  %v601_v39 = vld [vmem:[%s3235_s26 + $0x228] sm:$0xff]  ;;  %v428_v45 = vld [vmem:[%s3217_s14 + $0xc0] sm:$0xff] }
  0xe4   : > { %1588 = vst [vmem:[%s3430_s25 + $0x100] sm:$0xff] %v1460_v63  ;;  %v1449_v50 = vsel %vm1321_vm15, %v297_v38, %v425_v43  ;;  %v311_v62 = vld [vmem:[%s3421_s23 + $0x118] sm:$0xff]  ;;  %v429_v27 = vld [vmem:[%s3217_s14 + $0xc8] sm:$0xff]  ;;  %v300_v43 = vld [vmem:[%s3421_s23 + $0xc0] sm:$0xff]  ;;  %vm731_vm0 = vcmp.ge.f32.partialorder %v603_v61, 0.5  ;;  %vm729_vm4 = vcmp.ge.f32.partialorder %v601_v39, 0.5 }
  0xe5   : > { %1578 = vst [vmem:[%s3430_s25 + $0xb0] sm:$0xff] %v1450_v49  ;;  %v439_v7 = vld [vmem:[%s3217_s14 + $0x118] sm:$0xff]  ;;  %v3687_v61 = vsel %vm730_vm1, 1, %v4938_v25  ;;  %v3691_v31 = vsel %vm729_vm4, 1, %v4938_v25  ;;  %v605_v39 = vld [vmem:[%s3235_s26 + $0x248] sm:$0xff] }
  0xe6   : > { %1577 = vst [vmem:[%s3430_s25 + $0xa8] sm:$0xff] %v1449_v50  ;;  %vm733_vm7 = vcmp.ge.f32.partialorder %v605_v39, 0.5 }
  0xe7   : > { %1121 = vperm.xlu2 %2704, %v3660_v0   ;;  %1118 = vperm.xlu1 %2703, %v3663_v57   ;;  %4958 = vst [vmem:[#allocation34_spill] sm:$0xff] %v3687_v61 }
  0xe8   : > { %1115 = vperm.xlu0 %2702, %v3667_v26   ;;  %v3684_v26 = vsel %vm731_vm0, 1, %v4938_v25  ;;  %4959 = vst [vmem:[#allocation35_spill] sm:$0xff] %v3691_v31 }
  0xe9   : > { %v1023_v49 = vpop.permute.xlu2 %1022  ;;  %v993_v38 = vpop.permute.xlu1 %992  ;;  %4957 = vst [vmem:[#allocation33_spill] sm:$0xff] %v3684_v26 }
  0xea   : > { %vm1335_vm2 = vcmp.eq.s32.totalorder %v1023_v49, 1  ;;  %vm1325_vm3 = vcmp.eq.s32.totalorder %v993_v38, 1  ;;  %v990_v50 = vpop.permute.xlu0 %989  ;;  %v304_v49 = vld [vmem:[%s3421_s23 + $0xe0] sm:$0xff] }
  0xeb   : > { %v1463_v63 = vsel %vm1335_vm2, %v311_v62, %v439_v7  ;;  %v1453_v0 = vsel %vm1325_vm3, %v301_v44, %v429_v27  ;;  %vm1324_vm5 = vcmp.eq.s32.totalorder %v990_v50, 1  ;;  %v606_v62 = vld [vmem:[%s3235_s26 + $0x250] sm:$0xff]  ;;  %v604_v44 = vld [vmem:[%s3235_s26 + $0x240] sm:$0xff]  ;;  %v431_v50 = vld [vmem:[%s3217_s14 + $0xd8] sm:$0xff] }
  0xec   : > { %1591 = vst [vmem:[%s3430_s25 + $0x118] sm:$0xff] %v1463_v63  ;;  %v1452_v57 = vsel %vm1324_vm5, %v300_v43, %v428_v45  ;;  %v314_v7 = vld [vmem:[%s3421_s23 + $0x130] sm:$0xff]  ;;  %v432_v38 = vld [vmem:[%s3217_s14 + $0xe0] sm:$0xff]  ;;  %v303_v45 = vld [vmem:[%s3421_s23 + $0xd8] sm:$0xff]  ;;  %vm734_vm6 = vcmp.ge.f32.partialorder %v606_v62, 0.5  ;;  %vm732_vm10 = vcmp.ge.f32.partialorder %v604_v44, 0.5 }
  0xed   : > { %1581 = vst [vmem:[%s3430_s25 + $0xc8] sm:$0xff] %v1453_v0  ;;  %v442_v27 = vld [vmem:[%s3217_s14 + $0x130] sm:$0xff]  ;;  %v3711_v62 = vsel %vm733_vm7, 1, %v4938_v25  ;;  %v3715_v39 = vsel %vm732_vm10, 1, %v4938_v25  ;;  %v608_v44 = vld [vmem:[%s3235_s26 + $0x260] sm:$0xff] }
  0xee   : > { %1580 = vst [vmem:[%s3430_s25 + $0xc0] sm:$0xff] %v1452_v57  ;;  %vm736_vm13 = vcmp.ge.f32.partialorder %v608_v44, 0.5 }
  0xef   : > { %1130 = vperm.xlu2 %2704, %v3684_v26   ;;  %1127 = vperm.xlu1 %2703, %v3687_v61   ;;  %4961 = vst [vmem:[#allocation37_spill] sm:$0xff] %v3711_v62 }
  0xf0   : > { %1124 = vperm.xlu0 %2702, %v3691_v31   ;;  %v3708_v31 = vsel %vm734_vm6, 1, %v4938_v25  ;;  %4962 = vst [vmem:[#allocation38_spill] sm:$0xff] %v3715_v39 }
  0xf1   : > { %v1032_v0 = vpop.permute.xlu2 %1031  ;;  %v1002_v43 = vpop.permute.xlu1 %1001  ;;  %4960 = vst [vmem:[#allocation36_spill] sm:$0xff] %v3708_v31 }
  0xf2   : > { %vm1338_vm8 = vcmp.eq.s32.totalorder %v1032_v0, 1  ;;  %vm1328_vm9 = vcmp.eq.s32.totalorder %v1002_v43, 1  ;;  %v999_v57 = vpop.permute.xlu0 %998  ;;  %v307_v0 = vld [vmem:[%s3421_s23 + $0xf8] sm:$0xff] }
  0xf3   : > { %v1466_v63 = vsel %vm1338_vm8, %v314_v7, %v442_v27  ;;  %v1456_v26 = vsel %vm1328_vm9, %v304_v49, %v432_v38  ;;  %vm1327_vm11 = vcmp.eq.s32.totalorder %v999_v57, 1  ;;  %v609_v7 = vld [vmem:[%s3235_s26 + $0x268] sm:$0xff]  ;;  %v607_v49 = vld [vmem:[%s3235_s26 + $0x258] sm:$0xff]  ;;  %v434_v57 = vld [vmem:[%s3217_s14 + $0xf0] sm:$0xff] }
  0xf4   : > { %1594 = vst [vmem:[%s3430_s25 + $0x130] sm:$0xff] %v1466_v63  ;;  %v1455_v61 = vsel %vm1327_vm11, %v303_v45, %v431_v50  ;;  %v317_v27 = vld [vmem:[%s3421_s23 + $0x148] sm:$0xff]  ;;  %v435_v43 = vld [vmem:[%s3217_s14 + $0xf8] sm:$0xff]  ;;  %v306_v50 = vld [vmem:[%s3421_s23 + $0xf0] sm:$0xff]  ;;  %vm737_vm12 = vcmp.ge.f32.partialorder %v609_v7, 0.5  ;;  %vm735_vm0 = vcmp.ge.f32.partialorder %v607_v49, 0.5 }
  0xf5   : > { %1584 = vst [vmem:[%s3430_s25 + $0xe0] sm:$0xff] %v1456_v26  ;;  %v445_v38 = vld [vmem:[%s3217_s14 + $0x148] sm:$0xff]  ;;  %v3735_v7 = vsel %vm736_vm13, 1, %v4938_v25  ;;  %v3739_v44 = vsel %vm735_vm0, 1, %v4938_v25  ;;  %v611_v49 = vld [vmem:[%s3235_s26 + $0x278] sm:$0xff] }
  0xf6   : > { %1583 = vst [vmem:[%s3430_s25 + $0xd8] sm:$0xff] %v1455_v61  ;;  %vm739_vm3 = vcmp.ge.f32.partialorder %v611_v49, 0.5 }
  0xf7   : > { %1139 = vperm.xlu2 %2704, %v3708_v31   ;;  %1136 = vperm.xlu1 %2703, %v3711_v62   ;;  %4964 = vst [vmem:[#allocation40_spill] sm:$0xff] %v3735_v7 }
  0xf8   : > { %1133 = vperm.xlu0 %2702, %v3715_v39   ;;  %v3732_v39 = vsel %vm737_vm12, 1, %v4938_v25  ;;  %4965 = vst [vmem:[#allocation41_spill] sm:$0xff] %v3739_v44 }
  0xf9   : > { %v1041_v26 = vpop.permute.xlu2 %1040  ;;  %v1011_v45 = vpop.permute.xlu1 %1010  ;;  %4963 = vst [vmem:[#allocation39_spill] sm:$0xff] %v3732_v39 }
  0xfa   : > { %vm1341_vm14 = vcmp.eq.s32.totalorder %v1041_v26, 1  ;;  %vm1331_vm15 = vcmp.eq.s32.totalorder %v1011_v45, 1  ;;  %v1008_v61 = vpop.permute.xlu0 %1007  ;;  %v310_v26 = vld [vmem:[%s3421_s23 + $0x110] sm:$0xff] }
  0xfb   : > { %v1469_v63 = vsel %vm1341_vm14, %v317_v27, %v445_v38  ;;  %v1459_v31 = vsel %vm1331_vm15, %v307_v0, %v435_v43  ;;  %vm1330_vm1 = vcmp.eq.s32.totalorder %v1008_v61, 1  ;;  %v612_v27 = vld [vmem:[%s3235_s26 + $0x280] sm:$0xff]  ;;  %v610_v0 = vld [vmem:[%s3235_s26 + $0x270] sm:$0xff]  ;;  %v437_v61 = vld [vmem:[%s3217_s14 + $0x108] sm:$0xff] }
  0xfc   : > { %1597 = vst [vmem:[%s3430_s25 + $0x148] sm:$0xff] %v1469_v63  ;;  %v1458_v62 = vsel %vm1330_vm1, %v306_v50, %v434_v57  ;;  %v320_v38 = vld [vmem:[%s3421_s23 + $0x160] sm:$0xff]  ;;  %v438_v45 = vld [vmem:[%s3217_s14 + $0x110] sm:$0xff]  ;;  %v309_v57 = vld [vmem:[%s3421_s23 + $0x108] sm:$0xff]  ;;  %vm740_vm2 = vcmp.ge.f32.partialorder %v612_v27, 0.5  ;;  %vm738_vm6 = vcmp.ge.f32.partialorder %v610_v0, 0.5 }
  0xfd   : > { %1587 = vst [vmem:[%s3430_s25 + $0xf8] sm:$0xff] %v1459_v31  ;;  %v448_v43 = vld [vmem:[%s3217_s14 + $0x160] sm:$0xff]  ;;  %v3759_v27 = vsel %vm739_vm3, 1, %v4938_v25  ;;  %v3763_v49 = vsel %vm738_vm6, 1, %v4938_v25  ;;  %v614_v0 = vld [vmem:[%s3235_s26 + $0x290] sm:$0xff] }
  0xfe   : > { %1586 = vst [vmem:[%s3430_s25 + $0xf0] sm:$0xff] %v1458_v62  ;;  %vm742_vm9 = vcmp.ge.f32.partialorder %v614_v0, 0.5 }
  0xff   : > { %1148 = vperm.xlu2 %2704, %v3732_v39   ;;  %1145 = vperm.xlu1 %2703, %v3735_v7   ;;  %4967 = vst [vmem:[#allocation43_spill] sm:$0xff] %v3759_v27 }
 0x100   : > { %1142 = vperm.xlu0 %2702, %v3739_v44   ;;  %v3756_v44 = vsel %vm740_vm2, 1, %v4938_v25  ;;  %4968 = vst [vmem:[#allocation44_spill] sm:$0xff] %v3763_v49 }
 0x101   : > { %v1050_v31 = vpop.permute.xlu2 %1049  ;;  %v1020_v50 = vpop.permute.xlu1 %1019  ;;  %4966 = vst [vmem:[#allocation42_spill] sm:$0xff] %v3756_v44 }
 0x102   : > { %vm1344_vm4 = vcmp.eq.s32.totalorder %v1050_v31, 1  ;;  %vm1334_vm5 = vcmp.eq.s32.totalorder %v1020_v50, 1  ;;  %v1017_v62 = vpop.permute.xlu0 %1016  ;;  %v313_v31 = vld [vmem:[%s3421_s23 + $0x128] sm:$0xff] }
 0x103   : > { %v1472_v63 = vsel %vm1344_vm4, %v320_v38, %v448_v43  ;;  %v1462_v39 = vsel %vm1334_vm5, %v310_v26, %v438_v45  ;;  %vm1333_vm7 = vcmp.eq.s32.totalorder %v1017_v62, 1  ;;  %v615_v38 = vld [vmem:[%s3235_s26 + $0x298] sm:$0xff]  ;;  %v613_v26 = vld [vmem:[%s3235_s26 + $0x288] sm:$0xff]  ;;  %v440_v62 = vld [vmem:[%s3217_s14 + $0x120] sm:$0xff] }
 0x104   : > { %1600 = vst [vmem:[%s3430_s25 + $0x160] sm:$0xff] %v1472_v63  ;;  %v1461_v7 = vsel %vm1333_vm7, %v309_v57, %v437_v61  ;;  %v323_v43 = vld [vmem:[%s3421_s23 + $0x178] sm:$0xff]  ;;  %v441_v50 = vld [vmem:[%s3217_s14 + $0x128] sm:$0xff]  ;;  %v312_v61 = vld [vmem:[%s3421_s23 + $0x120] sm:$0xff]  ;;  %vm743_vm8 = vcmp.ge.f32.partialorder %v615_v38, 0.5  ;;  %vm741_vm12 = vcmp.ge.f32.partialorder %v613_v26, 0.5 }
 0x105   : > { %1590 = vst [vmem:[%s3430_s25 + $0x110] sm:$0xff] %v1462_v39  ;;  %v451_v45 = vld [vmem:[%s3217_s14 + $0x178] sm:$0xff]  ;;  %v3783_v38 = vsel %vm742_vm9, 1, %v4938_v25  ;;  %v3787_v0 = vsel %vm741_vm12, 1, %v4938_v25  ;;  %v617_v26 = vld [vmem:[%s3235_s26 + $0x2a8] sm:$0xff] }
 0x106   : > { %1589 = vst [vmem:[%s3430_s25 + $0x108] sm:$0xff] %v1461_v7  ;;  %vm745_vm15 = vcmp.ge.f32.partialorder %v617_v26, 0.5 }
 0x107   : > { %1157 = vperm.xlu2 %2704, %v3756_v44   ;;  %1154 = vperm.xlu1 %2703, %v3759_v27   ;;  %4970 = vst [vmem:[#allocation46_spill] sm:$0xff] %v3783_v38 }
 0x108   : > { %1151 = vperm.xlu0 %2702, %v3763_v49   ;;  %v3780_v49 = vsel %vm743_vm8, 1, %v4938_v25  ;;  %4971 = vst [vmem:[#allocation47_spill] sm:$0xff] %v3787_v0 }
 0x109   : > { %v1059_v39 = vpop.permute.xlu2 %1058  ;;  %v1029_v57 = vpop.permute.xlu1 %1028  ;;  %4969 = vst [vmem:[#allocation45_spill] sm:$0xff] %v3780_v49 }
 0x10a   : > { %vm1347_vm10 = vcmp.eq.s32.totalorder %v1059_v39, 1  ;;  %vm1337_vm11 = vcmp.eq.s32.totalorder %v1029_v57, 1  ;;  %v1026_v7 = vpop.permute.xlu0 %1025  ;;  %v316_v39 = vld [vmem:[%s3421_s23 + $0x140] sm:$0xff] }
 0x10b   : > { %v1475_v63 = vsel %vm1347_vm10, %v323_v43, %v451_v45  ;;  %v1465_v44 = vsel %vm1337_vm11, %v313_v31, %v441_v50  ;;  %vm1336_vm13 = vcmp.eq.s32.totalorder %v1026_v7, 1  ;;  %v618_v43 = vld [vmem:[%s3235_s26 + $0x2b0] sm:$0xff]  ;;  %v616_v31 = vld [vmem:[%s3235_s26 + $0x2a0] sm:$0xff]  ;;  %v443_v7 = vld [vmem:[%s3217_s14 + $0x138] sm:$0xff] }
 0x10c   : > { %1603 = vst [vmem:[%s3430_s25 + $0x178] sm:$0xff] %v1475_v63  ;;  %v1464_v27 = vsel %vm1336_vm13, %v312_v61, %v440_v62  ;;  %v326_v45 = vld [vmem:[%s3421_s23 + $0x190] sm:$0xff]  ;;  %v444_v57 = vld [vmem:[%s3217_s14 + $0x140] sm:$0xff]  ;;  %v315_v62 = vld [vmem:[%s3421_s23 + $0x138] sm:$0xff]  ;;  %vm746_vm14 = vcmp.ge.f32.partialorder %v618_v43, 0.5  ;;  %vm744_vm2 = vcmp.ge.f32.partialorder %v616_v31, 0.5 }
 0x10d   : > { %1593 = vst [vmem:[%s3430_s25 + $0x128] sm:$0xff] %v1465_v44  ;;  %v454_v50 = vld [vmem:[%s3217_s14 + $0x190] sm:$0xff]  ;;  %v3807_v43 = vsel %vm745_vm15, 1, %v4938_v25  ;;  %v3811_v26 = vsel %vm744_vm2, 1, %v4938_v25  ;;  %v620_v31 = vld [vmem:[%s3235_s26 + $0x2c0] sm:$0xff] }
 0x10e   : > { %1592 = vst [vmem:[%s3430_s25 + $0x120] sm:$0xff] %v1464_v27  ;;  %vm748_vm5 = vcmp.ge.f32.partialorder %v620_v31, 0.5 }
 0x10f   : > { %1166 = vperm.xlu2 %2704, %v3780_v49   ;;  %1163 = vperm.xlu1 %2703, %v3783_v38   ;;  %4973 = vst [vmem:[#allocation49_spill] sm:$0xff] %v3807_v43 }
 0x110   : > { %1160 = vperm.xlu0 %2702, %v3787_v0   ;;  %v3804_v0 = vsel %vm746_vm14, 1, %v4938_v25  ;;  %4974 = vst [vmem:[#allocation50_spill] sm:$0xff] %v3811_v26 }
 0x111   : > { %v1068_v44 = vpop.permute.xlu2 %1067  ;;  %v1038_v61 = vpop.permute.xlu1 %1037  ;;  %4972 = vst [vmem:[#allocation48_spill] sm:$0xff] %v3804_v0 }
 0x112   : > { %vm1350_vm0 = vcmp.eq.s32.totalorder %v1068_v44, 1  ;;  %vm1340_vm1 = vcmp.eq.s32.totalorder %v1038_v61, 1  ;;  %v1035_v27 = vpop.permute.xlu0 %1034  ;;  %v319_v44 = vld [vmem:[%s3421_s23 + $0x158] sm:$0xff] }
 0x113   : > { %v1478_v63 = vsel %vm1350_vm0, %v326_v45, %v454_v50  ;;  %v1468_v49 = vsel %vm1340_vm1, %v316_v39, %v444_v57  ;;  %vm1339_vm3 = vcmp.eq.s32.totalorder %v1035_v27, 1  ;;  %v621_v45 = vld [vmem:[%s3235_s26 + $0x2c8] sm:$0xff]  ;;  %v619_v39 = vld [vmem:[%s3235_s26 + $0x2b8] sm:$0xff]  ;;  %v446_v27 = vld [vmem:[%s3217_s14 + $0x150] sm:$0xff] }
 0x114   : > { %1606 = vst [vmem:[%s3430_s25 + $0x190] sm:$0xff] %v1478_v63  ;;  %v1467_v38 = vsel %vm1339_vm3, %v315_v62, %v443_v7  ;;  %v329_v50 = vld [vmem:[%s3421_s23 + $0x1a8] sm:$0xff]  ;;  %v447_v61 = vld [vmem:[%s3217_s14 + $0x158] sm:$0xff]  ;;  %v318_v7 = vld [vmem:[%s3421_s23 + $0x150] sm:$0xff]  ;;  %vm749_vm4 = vcmp.ge.f32.partialorder %v621_v45, 0.5  ;;  %vm747_vm8 = vcmp.ge.f32.partialorder %v619_v39, 0.5 }
 0x115   : > { %1596 = vst [vmem:[%s3430_s25 + $0x140] sm:$0xff] %v1468_v49  ;;  %v457_v57 = vld [vmem:[%s3217_s14 + $0x1a8] sm:$0xff]  ;;  %v3831_v45 = vsel %vm748_vm5, 1, %v4938_v25  ;;  %v3835_v31 = vsel %vm747_vm8, 1, %v4938_v25  ;;  %v623_v39 = vld [vmem:[%s3235_s26 + $0x2d8] sm:$0xff] }
 0x116   : > { %1595 = vst [vmem:[%s3430_s25 + $0x138] sm:$0xff] %v1467_v38  ;;  %vm751_vm11 = vcmp.ge.f32.partialorder %v623_v39, 0.5 }
 0x117   : > { %1175 = vperm.xlu2 %2704, %v3804_v0   ;;  %1172 = vperm.xlu1 %2703, %v3807_v43   ;;  %4976 = vst [vmem:[#allocation52_spill] sm:$0xff] %v3831_v45 }
 0x118   : > { %1169 = vperm.xlu0 %2702, %v3811_v26   ;;  %v3828_v26 = vsel %vm749_vm4, 1, %v4938_v25  ;;  %4977 = vst [vmem:[#allocation53_spill] sm:$0xff] %v3835_v31 }
 0x119   : > { %v1077_v49 = vpop.permute.xlu2 %1076  ;;  %v1047_v62 = vpop.permute.xlu1 %1046  ;;  %4975 = vst [vmem:[#allocation51_spill] sm:$0xff] %v3828_v26 }
 0x11a   : > { %vm1353_vm6 = vcmp.eq.s32.totalorder %v1077_v49, 1  ;;  %vm1343_vm7 = vcmp.eq.s32.totalorder %v1047_v62, 1  ;;  %v1044_v38 = vpop.permute.xlu0 %1043  ;;  %v322_v49 = vld [vmem:[%s3421_s23 + $0x170] sm:$0xff] }
 0x11b   : > { %v1481_v63 = vsel %vm1353_vm6, %v329_v50, %v457_v57  ;;  %v1471_v0 = vsel %vm1343_vm7, %v319_v44, %v447_v61  ;;  %vm1342_vm9 = vcmp.eq.s32.totalorder %v1044_v38, 1  ;;  %v624_v50 = vld [vmem:[%s3235_s26 + $0x2e0] sm:$0xff]  ;;  %v622_v44 = vld [vmem:[%s3235_s26 + $0x2d0] sm:$0xff]  ;;  %v449_v38 = vld [vmem:[%s3217_s14 + $0x168] sm:$0xff] }
 0x11c   : > { %1609 = vst [vmem:[%s3430_s25 + $0x1a8] sm:$0xff] %v1481_v63  ;;  %v1470_v43 = vsel %vm1342_vm9, %v318_v7, %v446_v27  ;;  %v332_v57 = vld [vmem:[%s3421_s23 + $0x1c0] sm:$0xff]  ;;  %v450_v62 = vld [vmem:[%s3217_s14 + $0x170] sm:$0xff]  ;;  %v321_v27 = vld [vmem:[%s3421_s23 + $0x168] sm:$0xff]  ;;  %vm752_vm10 = vcmp.ge.f32.partialorder %v624_v50, 0.5  ;;  %vm750_vm14 = vcmp.ge.f32.partialorder %v622_v44, 0.5 }
 0x11d   : > { %1599 = vst [vmem:[%s3430_s25 + $0x158] sm:$0xff] %v1471_v0  ;;  %v460_v61 = vld [vmem:[%s3217_s14 + $0x1c0] sm:$0xff]  ;;  %v3855_v50 = vsel %vm751_vm11, 1, %v4938_v25  ;;  %v3859_v39 = vsel %vm750_vm14, 1, %v4938_v25  ;;  %v626_v44 = vld [vmem:[%s3235_s26 + $0x2f0] sm:$0xff] }
 0x11e   : > { %1598 = vst [vmem:[%s3430_s25 + $0x150] sm:$0xff] %v1470_v43  ;;  %vm754_vm1 = vcmp.ge.f32.partialorder %v626_v44, 0.5 }
 0x11f   : > { %1184 = vperm.xlu2 %2704, %v3828_v26   ;;  %1181 = vperm.xlu1 %2703, %v3831_v45   ;;  %4979 = vst [vmem:[#allocation55_spill] sm:$0xff] %v3855_v50 }
 0x120   : > { %1178 = vperm.xlu0 %2702, %v3835_v31   ;;  %v3852_v31 = vsel %vm752_vm10, 1, %v4938_v25  ;;  %4980 = vst [vmem:[#allocation56_spill] sm:$0xff] %v3859_v39 }
 0x121   : > { %v1086_v0 = vpop.permute.xlu2 %1085  ;;  %v1056_v7 = vpop.permute.xlu1 %1055  ;;  %4978 = vst [vmem:[#allocation54_spill] sm:$0xff] %v3852_v31 }
 0x122   : > { %vm1356_vm12 = vcmp.eq.s32.totalorder %v1086_v0, 1  ;;  %vm1346_vm13 = vcmp.eq.s32.totalorder %v1056_v7, 1  ;;  %v1053_v43 = vpop.permute.xlu0 %1052  ;;  %v325_v0 = vld [vmem:[%s3421_s23 + $0x188] sm:$0xff] }
 0x123   : > { %v1484_v63 = vsel %vm1356_vm12, %v332_v57, %v460_v61  ;;  %v1474_v26 = vsel %vm1346_vm13, %v322_v49, %v450_v62  ;;  %vm1345_vm15 = vcmp.eq.s32.totalorder %v1053_v43, 1  ;;  %v627_v57 = vld [vmem:[%s3235_s26 + $0x2f8] sm:$0xff]  ;;  %v625_v49 = vld [vmem:[%s3235_s26 + $0x2e8] sm:$0xff]  ;;  %v452_v43 = vld [vmem:[%s3217_s14 + $0x180] sm:$0xff] }
 0x124   : > { %1612 = vst [vmem:[%s3430_s25 + $0x1c0] sm:$0xff] %v1484_v63  ;;  %v1473_v45 = vsel %vm1345_vm15, %v321_v27, %v449_v38  ;;  %v335_v61 = vld [vmem:[%s3421_s23 + $0x1d8] sm:$0xff]  ;;  %v453_v7 = vld [vmem:[%s3217_s14 + $0x188] sm:$0xff]  ;;  %v324_v38 = vld [vmem:[%s3421_s23 + $0x180] sm:$0xff]  ;;  %vm755_vm0 = vcmp.ge.f32.partialorder %v627_v57, 0.5  ;;  %vm753_vm4 = vcmp.ge.f32.partialorder %v625_v49, 0.5 }
 0x125   : > { %1602 = vst [vmem:[%s3430_s25 + $0x170] sm:$0xff] %v1474_v26  ;;  %v463_v62 = vld [vmem:[%s3217_s14 + $0x1d8] sm:$0xff]  ;;  %v3879_v57 = vsel %vm754_vm1, 1, %v4938_v25  ;;  %v3883_v44 = vsel %vm753_vm4, 1, %v4938_v25  ;;  %v629_v49 = vld [vmem:[%s3235_s26 + $0x308] sm:$0xff] }
 0x126   : > { %1601 = vst [vmem:[%s3430_s25 + $0x168] sm:$0xff] %v1473_v45  ;;  %vm757_vm7 = vcmp.ge.f32.partialorder %v629_v49, 0.5 }
 0x127   : > { %1193 = vperm.xlu2 %2704, %v3852_v31   ;;  %1190 = vperm.xlu1 %2703, %v3855_v50   ;;  %4982 = vst [vmem:[#allocation58_spill] sm:$0xff] %v3879_v57 }
 0x128   : > { %1187 = vperm.xlu0 %2702, %v3859_v39   ;;  %v3876_v39 = vsel %vm755_vm0, 1, %v4938_v25  ;;  %4983 = vst [vmem:[#allocation59_spill] sm:$0xff] %v3883_v44 }
 0x129   : > { %v1095_v26 = vpop.permute.xlu2 %1094  ;;  %v1065_v27 = vpop.permute.xlu1 %1064  ;;  %4981 = vst [vmem:[#allocation57_spill] sm:$0xff] %v3876_v39 }
 0x12a   : > { %vm1359_vm2 = vcmp.eq.s32.totalorder %v1095_v26, 1  ;;  %vm1349_vm3 = vcmp.eq.s32.totalorder %v1065_v27, 1  ;;  %v1062_v45 = vpop.permute.xlu0 %1061  ;;  %v328_v26 = vld [vmem:[%s3421_s23 + $0x1a0] sm:$0xff] }
 0x12b   : > { %v1487_v63 = vsel %vm1359_vm2, %v335_v61, %v463_v62  ;;  %v1477_v31 = vsel %vm1349_vm3, %v325_v0, %v453_v7  ;;  %vm1348_vm5 = vcmp.eq.s32.totalorder %v1062_v45, 1  ;;  %v630_v61 = vld [vmem:[%s3235_s26 + $0x310] sm:$0xff]  ;;  %v628_v0 = vld [vmem:[%s3235_s26 + $0x300] sm:$0xff]  ;;  %v455_v45 = vld [vmem:[%s3217_s14 + $0x198] sm:$0xff] }
 0x12c   : > { %1615 = vst [vmem:[%s3430_s25 + $0x1d8] sm:$0xff] %v1487_v63  ;;  %v1476_v50 = vsel %vm1348_vm5, %v324_v38, %v452_v43  ;;  %v338_v62 = vld [vmem:[%s3421_s23 + $0x1f0] sm:$0xff]  ;;  %v456_v27 = vld [vmem:[%s3217_s14 + $0x1a0] sm:$0xff]  ;;  %v327_v43 = vld [vmem:[%s3421_s23 + $0x198] sm:$0xff]  ;;  %vm758_vm6 = vcmp.ge.f32.partialorder %v630_v61, 0.5  ;;  %vm756_vm10 = vcmp.ge.f32.partialorder %v628_v0, 0.5 }
 0x12d   : > { %1605 = vst [vmem:[%s3430_s25 + $0x188] sm:$0xff] %v1477_v31  ;;  %v466_v7 = vld [vmem:[%s3217_s14 + $0x1f0] sm:$0xff]  ;;  %v3903_v61 = vsel %vm757_vm7, 1, %v4938_v25  ;;  %v3907_v49 = vsel %vm756_vm10, 1, %v4938_v25  ;;  %v632_v0 = vld [vmem:[%s3235_s26 + $0x320] sm:$0xff] }
 0x12e   : > { %1604 = vst [vmem:[%s3430_s25 + $0x180] sm:$0xff] %v1476_v50  ;;  %vm760_vm13 = vcmp.ge.f32.partialorder %v632_v0, 0.5 }
 0x12f   : > { %1202 = vperm.xlu2 %2704, %v3876_v39   ;;  %1199 = vperm.xlu1 %2703, %v3879_v57   ;;  %4985 = vst [vmem:[#allocation61_spill] sm:$0xff] %v3903_v61 }
 0x130   : > { %1196 = vperm.xlu0 %2702, %v3883_v44   ;;  %v3900_v44 = vsel %vm758_vm6, 1, %v4938_v25  ;;  %4986 = vst [vmem:[#allocation62_spill] sm:$0xff] %v3907_v49 }
 0x131   : > { %v1104_v31 = vpop.permute.xlu2 %1103  ;;  %v1074_v38 = vpop.permute.xlu1 %1073  ;;  %4984 = vst [vmem:[#allocation60_spill] sm:$0xff] %v3900_v44 }
 0x132   : > { %vm1362_vm8 = vcmp.eq.s32.totalorder %v1104_v31, 1  ;;  %vm1352_vm9 = vcmp.eq.s32.totalorder %v1074_v38, 1  ;;  %v1071_v50 = vpop.permute.xlu0 %1070  ;;  %v331_v31 = vld [vmem:[%s3421_s23 + $0x1b8] sm:$0xff] }
 0x133   : > { %v1490_v63 = vsel %vm1362_vm8, %v338_v62, %v466_v7  ;;  %v1480_v39 = vsel %vm1352_vm9, %v328_v26, %v456_v27  ;;  %vm1351_vm11 = vcmp.eq.s32.totalorder %v1071_v50, 1  ;;  %v633_v62 = vld [vmem:[%s3235_s26 + $0x328] sm:$0xff]  ;;  %v631_v26 = vld [vmem:[%s3235_s26 + $0x318] sm:$0xff]  ;;  %v458_v50 = vld [vmem:[%s3217_s14 + $0x1b0] sm:$0xff] }
 0x134   : > { %1618 = vst [vmem:[%s3430_s25 + $0x1f0] sm:$0xff] %v1490_v63  ;;  %v1479_v57 = vsel %vm1351_vm11, %v327_v43, %v455_v45  ;;  %v341_v7 = vld [vmem:[%s3421_s23 + $0x208] sm:$0xff]  ;;  %v459_v38 = vld [vmem:[%s3217_s14 + $0x1b8] sm:$0xff]  ;;  %v330_v45 = vld [vmem:[%s3421_s23 + $0x1b0] sm:$0xff]  ;;  %vm761_vm12 = vcmp.ge.f32.partialorder %v633_v62, 0.5  ;;  %vm759_vm0 = vcmp.ge.f32.partialorder %v631_v26, 0.5 }
 0x135   : > { %1608 = vst [vmem:[%s3430_s25 + $0x1a0] sm:$0xff] %v1480_v39  ;;  %v469_v27 = vld [vmem:[%s3217_s14 + $0x208] sm:$0xff]  ;;  %v3927_v62 = vsel %vm760_vm13, 1, %v4938_v25  ;;  %v3931_v0 = vsel %vm759_vm0, 1, %v4938_v25  ;;  %v635_v26 = vld [vmem:[%s3235_s26 + $0x338] sm:$0xff] }
 0x136   : > { %1607 = vst [vmem:[%s3430_s25 + $0x198] sm:$0xff] %v1479_v57  ;;  %vm763_vm3 = vcmp.ge.f32.partialorder %v635_v26, 0.5 }
 0x137   : > { %1211 = vperm.xlu2 %2704, %v3900_v44   ;;  %1208 = vperm.xlu1 %2703, %v3903_v61   ;;  %4988 = vst [vmem:[#allocation64_spill] sm:$0xff] %v3927_v62 }
 0x138   : > { %1205 = vperm.xlu0 %2702, %v3907_v49   ;;  %v3924_v49 = vsel %vm761_vm12, 1, %v4938_v25  ;;  %4989 = vst [vmem:[#allocation65_spill] sm:$0xff] %v3931_v0 }
 0x139   : > { %v1113_v39 = vpop.permute.xlu2 %1112  ;;  %v1083_v43 = vpop.permute.xlu1 %1082  ;;  %4987 = vst [vmem:[#allocation63_spill] sm:$0xff] %v3924_v49 }
 0x13a   : > { %vm1365_vm14 = vcmp.eq.s32.totalorder %v1113_v39, 1  ;;  %vm1355_vm15 = vcmp.eq.s32.totalorder %v1083_v43, 1  ;;  %v1080_v57 = vpop.permute.xlu0 %1079  ;;  %v334_v39 = vld [vmem:[%s3421_s23 + $0x1d0] sm:$0xff] }
 0x13b   : > { %v1493_v63 = vsel %vm1365_vm14, %v341_v7, %v469_v27  ;;  %v1483_v44 = vsel %vm1355_vm15, %v331_v31, %v459_v38  ;;  %vm1354_vm1 = vcmp.eq.s32.totalorder %v1080_v57, 1  ;;  %v636_v7 = vld [vmem:[%s3235_s26 + $0x340] sm:$0xff]  ;;  %v634_v31 = vld [vmem:[%s3235_s26 + $0x330] sm:$0xff]  ;;  %v461_v57 = vld [vmem:[%s3217_s14 + $0x1c8] sm:$0xff] }
 0x13c   : > { %1621 = vst [vmem:[%s3430_s25 + $0x208] sm:$0xff] %v1493_v63  ;;  %v1482_v61 = vsel %vm1354_vm1, %v330_v45, %v458_v50  ;;  %v344_v27 = vld [vmem:[%s3421_s23 + $0x220] sm:$0xff]  ;;  %v462_v43 = vld [vmem:[%s3217_s14 + $0x1d0] sm:$0xff]  ;;  %v333_v50 = vld [vmem:[%s3421_s23 + $0x1c8] sm:$0xff]  ;;  %vm764_vm2 = vcmp.ge.f32.partialorder %v636_v7, 0.5  ;;  %vm762_vm6 = vcmp.ge.f32.partialorder %v634_v31, 0.5 }
 0x13d   : > { %1611 = vst [vmem:[%s3430_s25 + $0x1b8] sm:$0xff] %v1483_v44  ;;  %v472_v38 = vld [vmem:[%s3217_s14 + $0x220] sm:$0xff]  ;;  %v3951_v7 = vsel %vm763_vm3, 1, %v4938_v25  ;;  %v3955_v26 = vsel %vm762_vm6, 1, %v4938_v25  ;;  %v638_v31 = vld [vmem:[%s3235_s26 + $0x350] sm:$0xff] }
 0x13e   : > { %1610 = vst [vmem:[%s3430_s25 + $0x1b0] sm:$0xff] %v1482_v61  ;;  %vm766_vm9 = vcmp.ge.f32.partialorder %v638_v31, 0.5 }
 0x13f   : > { %1220 = vperm.xlu2 %2704, %v3924_v49   ;;  %1217 = vperm.xlu1 %2703, %v3927_v62   ;;  %4991 = vst [vmem:[#allocation67_spill] sm:$0xff] %v3951_v7 }
 0x140   : > { %1214 = vperm.xlu0 %2702, %v3931_v0   ;;  %v3948_v0 = vsel %vm764_vm2, 1, %v4938_v25  ;;  %4992 = vst [vmem:[#allocation68_spill] sm:$0xff] %v3955_v26 }
 0x141   : > { %v1122_v44 = vpop.permute.xlu2 %1121  ;;  %v1092_v45 = vpop.permute.xlu1 %1091  ;;  %4990 = vst [vmem:[#allocation66_spill] sm:$0xff] %v3948_v0 }
 0x142   : > { %vm1368_vm4 = vcmp.eq.s32.totalorder %v1122_v44, 1  ;;  %vm1358_vm5 = vcmp.eq.s32.totalorder %v1092_v45, 1  ;;  %v1089_v61 = vpop.permute.xlu0 %1088  ;;  %v337_v44 = vld [vmem:[%s3421_s23 + $0x1e8] sm:$0xff] }
 0x143   : > { %v1496_v63 = vsel %vm1368_vm4, %v344_v27, %v472_v38  ;;  %v1486_v49 = vsel %vm1358_vm5, %v334_v39, %v462_v43  ;;  %vm1357_vm7 = vcmp.eq.s32.totalorder %v1089_v61, 1  ;;  %v639_v27 = vld [vmem:[%s3235_s26 + $0x358] sm:$0xff]  ;;  %v637_v39 = vld [vmem:[%s3235_s26 + $0x348] sm:$0xff]  ;;  %v464_v61 = vld [vmem:[%s3217_s14 + $0x1e0] sm:$0xff] }
 0x144   : > { %1624 = vst [vmem:[%s3430_s25 + $0x220] sm:$0xff] %v1496_v63  ;;  %v1485_v62 = vsel %vm1357_vm7, %v333_v50, %v461_v57  ;;  %v347_v38 = vld [vmem:[%s3421_s23 + $0x238] sm:$0xff]  ;;  %v465_v45 = vld [vmem:[%s3217_s14 + $0x1e8] sm:$0xff]  ;;  %v336_v57 = vld [vmem:[%s3421_s23 + $0x1e0] sm:$0xff]  ;;  %vm767_vm8 = vcmp.ge.f32.partialorder %v639_v27, 0.5  ;;  %vm765_vm12 = vcmp.ge.f32.partialorder %v637_v39, 0.5 }
 0x145   : > { %1614 = vst [vmem:[%s3430_s25 + $0x1d0] sm:$0xff] %v1486_v49  ;;  %v475_v43 = vld [vmem:[%s3217_s14 + $0x238] sm:$0xff]  ;;  %v3975_v27 = vsel %vm766_vm9, 1, %v4938_v25  ;;  %v3979_v31 = vsel %vm765_vm12, 1, %v4938_v25  ;;  %v641_v39 = vld [vmem:[%s3235_s26 + $0x368] sm:$0xff] }
 0x146   : > { %1613 = vst [vmem:[%s3430_s25 + $0x1c8] sm:$0xff] %v1485_v62  ;;  %vm769_vm15 = vcmp.ge.f32.partialorder %v641_v39, 0.5 }
 0x147   : > { %1229 = vperm.xlu2 %2704, %v3948_v0   ;;  %1226 = vperm.xlu1 %2703, %v3951_v7   ;;  %4994 = vst [vmem:[#allocation70_spill] sm:$0xff] %v3975_v27 }
 0x148   : > { %1223 = vperm.xlu0 %2702, %v3955_v26   ;;  %v3972_v26 = vsel %vm767_vm8, 1, %v4938_v25  ;;  %4995 = vst [vmem:[#allocation71_spill] sm:$0xff] %v3979_v31 }
 0x149   : > { %v1131_v49 = vpop.permute.xlu2 %1130  ;;  %v1101_v50 = vpop.permute.xlu1 %1100  ;;  %4993 = vst [vmem:[#allocation69_spill] sm:$0xff] %v3972_v26 }
 0x14a   : > { %vm1371_vm10 = vcmp.eq.s32.totalorder %v1131_v49, 1  ;;  %vm1361_vm11 = vcmp.eq.s32.totalorder %v1101_v50, 1  ;;  %v1098_v62 = vpop.permute.xlu0 %1097  ;;  %v340_v49 = vld [vmem:[%s3421_s23 + $0x200] sm:$0xff] }
 0x14b   : > { %v1499_v63 = vsel %vm1371_vm10, %v347_v38, %v475_v43  ;;  %v1489_v0 = vsel %vm1361_vm11, %v337_v44, %v465_v45  ;;  %vm1360_vm13 = vcmp.eq.s32.totalorder %v1098_v62, 1  ;;  %v642_v38 = vld [vmem:[%s3235_s26 + $0x370] sm:$0xff]  ;;  %v640_v44 = vld [vmem:[%s3235_s26 + $0x360] sm:$0xff]  ;;  %v467_v62 = vld [vmem:[%s3217_s14 + $0x1f8] sm:$0xff] }
 0x14c   : > { %1627 = vst [vmem:[%s3430_s25 + $0x238] sm:$0xff] %v1499_v63  ;;  %v1488_v7 = vsel %vm1360_vm13, %v336_v57, %v464_v61  ;;  %v350_v43 = vld [vmem:[%s3421_s23 + $0x250] sm:$0xff]  ;;  %v468_v50 = vld [vmem:[%s3217_s14 + $0x200] sm:$0xff]  ;;  %v339_v61 = vld [vmem:[%s3421_s23 + $0x1f8] sm:$0xff]  ;;  %vm770_vm14 = vcmp.ge.f32.partialorder %v642_v38, 0.5  ;;  %vm768_vm2 = vcmp.ge.f32.partialorder %v640_v44, 0.5 }
 0x14d   : > { %1617 = vst [vmem:[%s3430_s25 + $0x1e8] sm:$0xff] %v1489_v0  ;;  %v478_v45 = vld [vmem:[%s3217_s14 + $0x250] sm:$0xff]  ;;  %v3999_v38 = vsel %vm769_vm15, 1, %v4938_v25  ;;  %v4003_v39 = vsel %vm768_vm2, 1, %v4938_v25  ;;  %v644_v44 = vld [vmem:[%s3235_s26 + $0x380] sm:$0xff] }
 0x14e   : > { %1616 = vst [vmem:[%s3430_s25 + $0x1e0] sm:$0xff] %v1488_v7  ;;  %vm772_vm5 = vcmp.ge.f32.partialorder %v644_v44, 0.5 }
 0x14f   : > { %1238 = vperm.xlu2 %2704, %v3972_v26   ;;  %1235 = vperm.xlu1 %2703, %v3975_v27   ;;  %4997 = vst [vmem:[#allocation73_spill] sm:$0xff] %v3999_v38 }
 0x150   : > { %1232 = vperm.xlu0 %2702, %v3979_v31   ;;  %v3996_v31 = vsel %vm770_vm14, 1, %v4938_v25  ;;  %4998 = vst [vmem:[#allocation74_spill] sm:$0xff] %v4003_v39 }
 0x151   : > { %v1140_v0 = vpop.permute.xlu2 %1139  ;;  %v1110_v57 = vpop.permute.xlu1 %1109  ;;  %4996 = vst [vmem:[#allocation72_spill] sm:$0xff] %v3996_v31 }
 0x152   : > { %vm1374_vm0 = vcmp.eq.s32.totalorder %v1140_v0, 1  ;;  %vm1364_vm1 = vcmp.eq.s32.totalorder %v1110_v57, 1  ;;  %v1107_v7 = vpop.permute.xlu0 %1106  ;;  %v343_v0 = vld [vmem:[%s3421_s23 + $0x218] sm:$0xff] }
 0x153   : > { %v1502_v63 = vsel %vm1374_vm0, %v350_v43, %v478_v45  ;;  %v1492_v26 = vsel %vm1364_vm1, %v340_v49, %v468_v50  ;;  %vm1363_vm3 = vcmp.eq.s32.totalorder %v1107_v7, 1  ;;  %v645_v43 = vld [vmem:[%s3235_s26 + $0x388] sm:$0xff]  ;;  %v643_v49 = vld [vmem:[%s3235_s26 + $0x378] sm:$0xff]  ;;  %v470_v7 = vld [vmem:[%s3217_s14 + $0x210] sm:$0xff] }
 0x154   : > { %1630 = vst [vmem:[%s3430_s25 + $0x250] sm:$0xff] %v1502_v63  ;;  %v1491_v27 = vsel %vm1363_vm3, %v339_v61, %v467_v62  ;;  %v353_v45 = vld [vmem:[%s3421_s23 + $0x268] sm:$0xff]  ;;  %v471_v57 = vld [vmem:[%s3217_s14 + $0x218] sm:$0xff]  ;;  %v342_v62 = vld [vmem:[%s3421_s23 + $0x210] sm:$0xff]  ;;  %vm773_vm4 = vcmp.ge.f32.partialorder %v645_v43, 0.5  ;;  %vm771_vm8 = vcmp.ge.f32.partialorder %v643_v49, 0.5 }
 0x155   : > { %1620 = vst [vmem:[%s3430_s25 + $0x200] sm:$0xff] %v1492_v26  ;;  %v481_v50 = vld [vmem:[%s3217_s14 + $0x268] sm:$0xff]  ;;  %v4023_v43 = vsel %vm772_vm5, 1, %v4938_v25  ;;  %v4027_v44 = vsel %vm771_vm8, 1, %v4938_v25  ;;  %v647_v49 = vld [vmem:[%s3235_s26 + $0x398] sm:$0xff] }
 0x156   : > { %1619 = vst [vmem:[%s3430_s25 + $0x1f8] sm:$0xff] %v1491_v27  ;;  %vm775_vm11 = vcmp.ge.f32.partialorder %v647_v49, 0.5 }
 0x157   : > { %1247 = vperm.xlu2 %2704, %v3996_v31   ;;  %1244 = vperm.xlu1 %2703, %v3999_v38   ;;  %5000 = vst [vmem:[#allocation76_spill] sm:$0xff] %v4023_v43 }
 0x158   : > { %1241 = vperm.xlu0 %2702, %v4003_v39   ;;  %v4020_v39 = vsel %vm773_vm4, 1, %v4938_v25  ;;  %5001 = vst [vmem:[#allocation77_spill] sm:$0xff] %v4027_v44 }
 0x159   : > { %v1149_v26 = vpop.permute.xlu2 %1148  ;;  %v1119_v61 = vpop.permute.xlu1 %1118  ;;  %4999 = vst [vmem:[#allocation75_spill] sm:$0xff] %v4020_v39 }
 0x15a   : > { %vm1377_vm6 = vcmp.eq.s32.totalorder %v1149_v26, 1  ;;  %vm1367_vm7 = vcmp.eq.s32.totalorder %v1119_v61, 1  ;;  %v1116_v27 = vpop.permute.xlu0 %1115  ;;  %v346_v26 = vld [vmem:[%s3421_s23 + $0x230] sm:$0xff] }
 0x15b   : > { %v1505_v63 = vsel %vm1377_vm6, %v353_v45, %v481_v50  ;;  %v1495_v31 = vsel %vm1367_vm7, %v343_v0, %v471_v57  ;;  %vm1366_vm9 = vcmp.eq.s32.totalorder %v1116_v27, 1  ;;  %v648_v45 = vld [vmem:[%s3235_s26 + $0x3a0] sm:$0xff]  ;;  %v646_v0 = vld [vmem:[%s3235_s26 + $0x390] sm:$0xff]  ;;  %v473_v27 = vld [vmem:[%s3217_s14 + $0x228] sm:$0xff] }
 0x15c   : > { %1633 = vst [vmem:[%s3430_s25 + $0x268] sm:$0xff] %v1505_v63  ;;  %v1494_v38 = vsel %vm1366_vm9, %v342_v62, %v470_v7  ;;  %v356_v50 = vld [vmem:[%s3421_s23 + $0x280] sm:$0xff]  ;;  %v474_v61 = vld [vmem:[%s3217_s14 + $0x230] sm:$0xff]  ;;  %v345_v7 = vld [vmem:[%s3421_s23 + $0x228] sm:$0xff]  ;;  %vm776_vm10 = vcmp.ge.f32.partialorder %v648_v45, 0.5  ;;  %vm774_vm14 = vcmp.ge.f32.partialorder %v646_v0, 0.5 }
 0x15d   : > { %1623 = vst [vmem:[%s3430_s25 + $0x218] sm:$0xff] %v1495_v31  ;;  %v484_v57 = vld [vmem:[%s3217_s14 + $0x280] sm:$0xff]  ;;  %v4047_v45 = vsel %vm775_vm11, 1, %v4938_v25  ;;  %v4051_v49 = vsel %vm774_vm14, 1, %v4938_v25  ;;  %v650_v0 = vld [vmem:[%s3235_s26 + $0x3b0] sm:$0xff] }
 0x15e   : > { %1622 = vst [vmem:[%s3430_s25 + $0x210] sm:$0xff] %v1494_v38  ;;  %vm778_vm1 = vcmp.ge.f32.partialorder %v650_v0, 0.5 }
 0x15f   : > { %1256 = vperm.xlu2 %2704, %v4020_v39   ;;  %1253 = vperm.xlu1 %2703, %v4023_v43   ;;  %5003 = vst [vmem:[#allocation79_spill] sm:$0xff] %v4047_v45 }
 0x160   : > { %1250 = vperm.xlu0 %2702, %v4027_v44   ;;  %v4044_v44 = vsel %vm776_vm10, 1, %v4938_v25  ;;  %5004 = vst [vmem:[#allocation80_spill] sm:$0xff] %v4051_v49 }
 0x161   : > { %v1158_v31 = vpop.permute.xlu2 %1157  ;;  %v1128_v62 = vpop.permute.xlu1 %1127  ;;  %5002 = vst [vmem:[#allocation78_spill] sm:$0xff] %v4044_v44 }
 0x162   : > { %vm1380_vm12 = vcmp.eq.s32.totalorder %v1158_v31, 1  ;;  %vm1370_vm13 = vcmp.eq.s32.totalorder %v1128_v62, 1  ;;  %v1125_v38 = vpop.permute.xlu0 %1124  ;;  %v349_v31 = vld [vmem:[%s3421_s23 + $0x248] sm:$0xff] }
 0x163   : > { %v1508_v63 = vsel %vm1380_vm12, %v356_v50, %v484_v57  ;;  %v1498_v39 = vsel %vm1370_vm13, %v346_v26, %v474_v61  ;;  %vm1369_vm15 = vcmp.eq.s32.totalorder %v1125_v38, 1  ;;  %v651_v50 = vld [vmem:[%s3235_s26 + $0x3b8] sm:$0xff]  ;;  %v649_v26 = vld [vmem:[%s3235_s26 + $0x3a8] sm:$0xff]  ;;  %v476_v38 = vld [vmem:[%s3217_s14 + $0x240] sm:$0xff] }
 0x164   : > { %1636 = vst [vmem:[%s3430_s25 + $0x280] sm:$0xff] %v1508_v63  ;;  %v1497_v43 = vsel %vm1369_vm15, %v345_v7, %v473_v27  ;;  %v359_v57 = vld [vmem:[%s3421_s23 + $0x298] sm:$0xff]  ;;  %v477_v62 = vld [vmem:[%s3217_s14 + $0x248] sm:$0xff]  ;;  %v348_v27 = vld [vmem:[%s3421_s23 + $0x240] sm:$0xff]  ;;  %vm779_vm0 = vcmp.ge.f32.partialorder %v651_v50, 0.5  ;;  %vm777_vm4 = vcmp.ge.f32.partialorder %v649_v26, 0.5 }
 0x165   : > { %1626 = vst [vmem:[%s3430_s25 + $0x230] sm:$0xff] %v1498_v39  ;;  %v487_v61 = vld [vmem:[%s3217_s14 + $0x298] sm:$0xff]  ;;  %v4071_v50 = vsel %vm778_vm1, 1, %v4938_v25  ;;  %v4075_v0 = vsel %vm777_vm4, 1, %v4938_v25  ;;  %v653_v26 = vld [vmem:[%s3235_s26 + $0x3c8] sm:$0xff] }
 0x166   : > { %1625 = vst [vmem:[%s3430_s25 + $0x228] sm:$0xff] %v1497_v43  ;;  %vm781_vm7 = vcmp.ge.f32.partialorder %v653_v26, 0.5 }
 0x167   : > { %1265 = vperm.xlu2 %2704, %v4044_v44   ;;  %1262 = vperm.xlu1 %2703, %v4047_v45   ;;  %5006 = vst [vmem:[#allocation82_spill] sm:$0xff] %v4071_v50 }
 0x168   : > { %1259 = vperm.xlu0 %2702, %v4051_v49   ;;  %v4068_v49 = vsel %vm779_vm0, 1, %v4938_v25  ;;  %5007 = vst [vmem:[#allocation83_spill] sm:$0xff] %v4075_v0 }
 0x169   : > { %v1167_v39 = vpop.permute.xlu2 %1166  ;;  %v1137_v7 = vpop.permute.xlu1 %1136  ;;  %5005 = vst [vmem:[#allocation81_spill] sm:$0xff] %v4068_v49 }
 0x16a   : > { %vm1383_vm2 = vcmp.eq.s32.totalorder %v1167_v39, 1  ;;  %vm1373_vm3 = vcmp.eq.s32.totalorder %v1137_v7, 1  ;;  %v1134_v43 = vpop.permute.xlu0 %1133  ;;  %v352_v39 = vld [vmem:[%s3421_s23 + $0x260] sm:$0xff] }
 0x16b   : > { %v1511_v63 = vsel %vm1383_vm2, %v359_v57, %v487_v61  ;;  %v1501_v44 = vsel %vm1373_vm3, %v349_v31, %v477_v62  ;;  %vm1372_vm5 = vcmp.eq.s32.totalorder %v1134_v43, 1  ;;  %v654_v57 = vld [vmem:[%s3235_s26 + $0x3d0] sm:$0xff]  ;;  %v652_v31 = vld [vmem:[%s3235_s26 + $0x3c0] sm:$0xff]  ;;  %v479_v43 = vld [vmem:[%s3217_s14 + $0x258] sm:$0xff] }
 0x16c   : > { %1639 = vst [vmem:[%s3430_s25 + $0x298] sm:$0xff] %v1511_v63  ;;  %v1500_v45 = vsel %vm1372_vm5, %v348_v27, %v476_v38  ;;  %v362_v61 = vld [vmem:[%s3421_s23 + $0x2b0] sm:$0xff]  ;;  %v480_v7 = vld [vmem:[%s3217_s14 + $0x260] sm:$0xff]  ;;  %v351_v38 = vld [vmem:[%s3421_s23 + $0x258] sm:$0xff]  ;;  %vm782_vm6 = vcmp.ge.f32.partialorder %v654_v57, 0.5  ;;  %vm780_vm10 = vcmp.ge.f32.partialorder %v652_v31, 0.5 }
 0x16d   : > { %1629 = vst [vmem:[%s3430_s25 + $0x248] sm:$0xff] %v1501_v44  ;;  %v490_v62 = vld [vmem:[%s3217_s14 + $0x2b0] sm:$0xff]  ;;  %v4095_v57 = vsel %vm781_vm7, 1, %v4938_v25  ;;  %v4099_v26 = vsel %vm780_vm10, 1, %v4938_v25  ;;  %v656_v31 = vld [vmem:[%s3235_s26 + $0x3e0] sm:$0xff] }
 0x16e   : > { %1628 = vst [vmem:[%s3430_s25 + $0x240] sm:$0xff] %v1500_v45  ;;  %vm784_vm13 = vcmp.ge.f32.partialorder %v656_v31, 0.5 }
 0x16f   : > { %1274 = vperm.xlu2 %2704, %v4068_v49   ;;  %1271 = vperm.xlu1 %2703, %v4071_v50   ;;  %5009 = vst [vmem:[#allocation85_spill] sm:$0xff] %v4095_v57 }
 0x170   : > { %1268 = vperm.xlu0 %2702, %v4075_v0   ;;  %v4092_v0 = vsel %vm782_vm6, 1, %v4938_v25  ;;  %5010 = vst [vmem:[#allocation86_spill] sm:$0xff] %v4099_v26 }
 0x171   : > { %v1176_v44 = vpop.permute.xlu2 %1175  ;;  %v1146_v27 = vpop.permute.xlu1 %1145  ;;  %5008 = vst [vmem:[#allocation84_spill] sm:$0xff] %v4092_v0 }
 0x172   : > { %vm1386_vm8 = vcmp.eq.s32.totalorder %v1176_v44, 1  ;;  %vm1376_vm9 = vcmp.eq.s32.totalorder %v1146_v27, 1  ;;  %v1143_v45 = vpop.permute.xlu0 %1142  ;;  %v355_v44 = vld [vmem:[%s3421_s23 + $0x278] sm:$0xff] }
 0x173   : > { %v1514_v63 = vsel %vm1386_vm8, %v362_v61, %v490_v62  ;;  %v1504_v49 = vsel %vm1376_vm9, %v352_v39, %v480_v7  ;;  %vm1375_vm11 = vcmp.eq.s32.totalorder %v1143_v45, 1  ;;  %v657_v61 = vld [vmem:[%s3235_s26 + $0x3e8] sm:$0xff]  ;;  %v655_v39 = vld [vmem:[%s3235_s26 + $0x3d8] sm:$0xff]  ;;  %v482_v45 = vld [vmem:[%s3217_s14 + $0x270] sm:$0xff] }
 0x174   : > { %1642 = vst [vmem:[%s3430_s25 + $0x2b0] sm:$0xff] %v1514_v63  ;;  %v1503_v50 = vsel %vm1375_vm11, %v351_v38, %v479_v43  ;;  %v365_v62 = vld [vmem:[%s3421_s23 + $0x2c8] sm:$0xff]  ;;  %v483_v27 = vld [vmem:[%s3217_s14 + $0x278] sm:$0xff]  ;;  %v354_v43 = vld [vmem:[%s3421_s23 + $0x270] sm:$0xff]  ;;  %vm785_vm12 = vcmp.ge.f32.partialorder %v657_v61, 0.5  ;;  %vm783_vm0 = vcmp.ge.f32.partialorder %v655_v39, 0.5 }
 0x175   : > { %1632 = vst [vmem:[%s3430_s25 + $0x260] sm:$0xff] %v1504_v49  ;;  %v493_v7 = vld [vmem:[%s3217_s14 + $0x2c8] sm:$0xff]  ;;  %v4119_v61 = vsel %vm784_vm13, 1, %v4938_v25  ;;  %v4123_v31 = vsel %vm783_vm0, 1, %v4938_v25  ;;  %v368_v39 = vld [vmem:[%s3421_s23 + $0x2e0] sm:$0xff] }
 0x176   : > { %1631 = vst [vmem:[%s3430_s25 + $0x258] sm:$0xff] %v1503_v50 }
 0x177   : > { %1283 = vperm.xlu2 %2704, %v4092_v0   ;;  %1280 = vperm.xlu1 %2703, %v4095_v57   ;;  %5012 = vst [vmem:[#allocation88_spill] sm:$0xff] %v4119_v61 }
 0x178   : > { %1277 = vperm.xlu0 %2702, %v4099_v26   ;;  %v4116_v26 = vsel %vm785_vm12, 1, %v4938_v25 }
 0x179   : > { %v1185_v49 = vpop.permute.xlu2 %1184  ;;  %v1155_v38 = vpop.permute.xlu1 %1154  ;;  %5011 = vst [vmem:[#allocation87_spill] sm:$0xff] %v4116_v26 }
 0x17a   : > { %vm1389_vm14 = vcmp.eq.s32.totalorder %v1185_v49, 1  ;;  %vm1379_vm15 = vcmp.eq.s32.totalorder %v1155_v38, 1  ;;  %v1152_v50 = vpop.permute.xlu0 %1151  ;;  %v486_v49 = vld [vmem:[%s3217_s14 + $0x290] sm:$0xff] }
 0x17b   : > { %v1517_v63 = vsel %vm1389_vm14, %v365_v62, %v493_v7  ;;  %v1507_v0 = vsel %vm1379_vm15, %v355_v44, %v483_v27  ;;  %vm1378_vm1 = vcmp.eq.s32.totalorder %v1152_v50, 1  ;;  %v659_v62 = vld [vmem:[%s3235_s26 + $0x3f8] sm:$0xff]  ;;  %v658_v7 = vld [vmem:[%s3235_s26 + $0x3f0] sm:$0xff]  ;;  %v496_v44 = vld [vmem:[%s3217_s14 + $0x2e0] sm:$0xff] }
 0x17c   : > { %1645 = vst [vmem:[%s3430_s25 + $0x2c8] sm:$0xff] %v1517_v63  ;;  %v1506_v57 = vsel %vm1378_vm1, %v354_v43, %v482_v45  ;;  %v358_v27 = vld [vmem:[%s3421_s23 + $0x290] sm:$0xff]  ;;  %v357_v43 = vld [vmem:[%s3421_s23 + $0x288] sm:$0xff]  ;;  %vm787_vm2 = vcmp.ge.f32.partialorder %v659_v62, 0.5  ;;  %vm786_vm5 = vcmp.ge.f32.partialorder %v658_v7, 0.5  ;;  %v499_v7 = vld [vmem:[%s3217_s14 + $0x2f8] sm:$0xff] }
 0x17d   : > { %1635 = vst [vmem:[%s3430_s25 + $0x278] sm:$0xff] %v1507_v0  ;;  %v485_v45 = vld [vmem:[%s3217_s14 + $0x288] sm:$0xff]  ;;  %v4143_v62 = vsel %vm786_vm5, 1, %v4938_v25 }
 0x17e   : > { %1634 = vst [vmem:[%s3430_s25 + $0x270] sm:$0xff] %v1506_v57 }
 0x17f   : > { %1292 = vperm.xlu2 %2704, %v4116_v26   ;;  %1289 = vperm.xlu1 %2703, %v4119_v61   ;;  %v4139_v61 = vsel %vm787_vm2, 1, %v4938_v25 }
 0x180   : > { %1286 = vperm.xlu0 %2702, %v4123_v31  }
 0x181   : > { %v1194_v38 = vpop.permute.xlu2 %1193  ;;  %v1164_v0 = vpop.permute.xlu1 %1163 }
 0x182   : > { %vm1392_vm3 = vcmp.eq.s32.totalorder %v1194_v38, 1  ;;  %vm1382_vm4 = vcmp.eq.s32.totalorder %v1164_v0, 1  ;;  %v1161_v57 = vpop.permute.xlu0 %1160  ;;  %v3097_v38 = vmov 1   ;;  %v360_v0 = vld [vmem:[%s3421_s23 + $0x2a0] sm:$0xff] }
 0x183   : > { %v1520_v50 = vsel %vm1392_vm3, %v368_v39, %v496_v44  ;;  %v1510_v63 = vsel %vm1382_vm4, %v358_v27, %v486_v49  ;;  %vm1381_vm6 = vcmp.eq.s32.totalorder %v1161_v57, 1  ;;  %v371_v39 = vld [vmem:[%s3421_s23 + $0x2f8] sm:$0xff]  ;;  %v361_v44 = vld [vmem:[%s3421_s23 + $0x2a8] sm:$0xff] }
 0x184   : > { %1648 = vst [vmem:[%s3430_s25 + $0x2e0] sm:$0xff] %v1520_v50  ;;  %v1509_v26 = vsel %vm1381_vm6, %v357_v43, %v485_v45  ;;  %v489_v27 = vld [vmem:[%s3217_s14 + $0x2a8] sm:$0xff]  ;;  %v374_v50 = vld [vmem:[%s3421_s23 + $0x310] sm:$0xff] }
 0x185   : > { %1638 = vst [vmem:[%s3430_s25 + $0x290] sm:$0xff] %v1510_v63  ;;  %v502_v63 = vld [vmem:[%s3217_s14 + $0x310] sm:$0xff] }
 0x186   : > { %1637 = vst [vmem:[%s3430_s25 + $0x288] sm:$0xff] %v1509_v26  ;;  %v488_v26 = vld [vmem:[%s3217_s14 + $0x2a0] sm:$0xff] }
 0x187   : > { %2705 = vset.pattern.permute.xlu2 %v3097_v38  ;;  %1298 = vperm.xlu1 %2703, %v4139_v61  }
 0x188   : > { %1295 = vperm.xlu0 %2702, %v4143_v62   ;;  %1685 = vperm.xlu2 %2705, %v3247_v6  }
 0x189   : > { %v1203_v49 = vpop.permute.xlu2 %1202  ;;  %v1173_v25 = vpop.permute.xlu1 %1172 }
 0x18a   : > { %vm1395_vm7 = vcmp.eq.s32.totalorder %v1203_v49, 1  ;;  %vm1385_vm8 = vcmp.eq.s32.totalorder %v1173_v25, 1  ;;  %v1170_v43 = vpop.permute.xlu0 %1169  ;;  %v364_v49 = vld [vmem:[%s3421_s23 + $0x2c0] sm:$0xff] }
 0x18b   : > { %v1523_v45 = vsel %vm1395_vm7, %v371_v39, %v499_v7  ;;  %v1513_v57 = vsel %vm1385_vm8, %v361_v44, %v489_v27  ;;  %vm1384_vm9 = vcmp.eq.s32.totalorder %v1170_v43, 1  ;;  %v492_v25 = vld [vmem:[%s3217_s14 + $0x2c0] sm:$0xff]  ;;  %v363_v44 = vld [vmem:[%s3421_s23 + $0x2b8] sm:$0xff] }
 0x18c   : > { %1651 = vst [vmem:[%s3430_s25 + $0x2f8] sm:$0xff] %v1523_v45  ;;  %v1512_v6 = vsel %vm1384_vm9, %v360_v0, %v488_v26  ;;  %v505_v26 = vld [vmem:[%s3217_s14 + $0x328] sm:$0xff]  ;;  %v367_v43 = vld [vmem:[%s3421_s23 + $0x2d8] sm:$0xff] }
 0x18d   : > { %1641 = vst [vmem:[%s3430_s25 + $0x2a8] sm:$0xff] %v1513_v57  ;;  %v495_v45 = vld [vmem:[%s3217_s14 + $0x2d8] sm:$0xff] }
 0x18e   : > { %1640 = vst [vmem:[%s3430_s25 + $0x2a0] sm:$0xff] %v1512_v6 }
 0x18f   : > { %2707 = vset.pattern.permute.xlu1 %v3097_v38 }
 0x190   : > { %2706 = vset.pattern.permute.xlu0 %v3097_v38  ;;  %1691 = vperm.xlu1 %2707, %v3244_v5   ;;  %v491_v38 = vld [vmem:[%s3217_s14 + $0x2b8] sm:$0xff] }
 0x191   : > { %1694 = vperm.xlu2 %2705, %v3259_v11   ;;  %1688 = vperm.xlu0 %2706, %v3262_v12   ;;  %v1212_v39 = vpop.permute.xlu2 %1211  ;;  %v1182_v7 = vpop.permute.xlu1 %1181  ;;  %v377_v12 = vld [vmem:[%s3421_s23 + $0x328] sm:$0xff] }
 0x192   : > { %vm1398_vm10 = vcmp.eq.s32.totalorder %v1212_v39, 1  ;;  %vm1388_vm11 = vcmp.eq.s32.totalorder %v1182_v7, 1  ;;  %v1179_v5 = vpop.permute.xlu0 %1178  ;;  %v508_v39 = vld [vmem:[%s3217_s14 + $0x340] sm:$0xff]  ;;  %v370_v7 = vld [vmem:[%s3421_s23 + $0x2f0] sm:$0xff] }
 0x193   : > { %v1526_v27 = vsel %vm1398_vm10, %v374_v50, %v502_v63  ;;  %v1516_v0 = vsel %vm1388_vm11, %v364_v49, %v492_v25  ;;  %vm1387_vm12 = vcmp.eq.s32.totalorder %v1179_v5, 1  ;;  %v366_v50 = vld [vmem:[%s3421_s23 + $0x2d0] sm:$0xff] }
 0x194   : > { %1654 = vst [vmem:[%s3430_s25 + $0x310] sm:$0xff] %v1526_v27  ;;  %v1515_v11 = vsel %vm1387_vm12, %v363_v44, %v491_v38  ;;  %v494_v63 = vld [vmem:[%s3217_s14 + $0x2d0] sm:$0xff]  ;;  %v369_v27 = vld [vmem:[%s3421_s23 + $0x2e8] sm:$0xff] }
 0x195   : > { %1644 = vst [vmem:[%s3430_s25 + $0x2c0] sm:$0xff] %v1516_v0  ;;  %v498_v44 = vld [vmem:[%s3217_s14 + $0x2f0] sm:$0xff]  ;;  %v497_v0 = vld [vmem:[%s3217_s14 + $0x2e8] sm:$0xff] }
 0x196   : > { %1643 = vst [vmem:[%s3430_s25 + $0x2b8] sm:$0xff] %v1515_v11 }
 0x198   : > { %1697 = vperm.xlu1 %2707, %v3241_v4  }
 0x199   : > { %1700 = vperm.xlu2 %2705, %v3256_v10   ;;  %1703 = vperm.xlu0 %2706, %v3277_v18   ;;  %v1221_v57 = vpop.permute.xlu2 %1220  ;;  %v1191_v6 = vpop.permute.xlu1 %1190  ;;  %v380_v18 = vld [vmem:[%s3421_s23 + $0x340] sm:$0xff] }
 0x19a   : > { %vm1401_vm13 = vcmp.eq.s32.totalorder %v1221_v57, 1  ;;  %vm1391_vm14 = vcmp.eq.s32.totalorder %v1191_v6, 1  ;;  %v1188_v4 = vpop.permute.xlu0 %1187 }
 0x19b   : > { %v1529_v49 = vsel %vm1401_vm13, %v377_v12, %v505_v26  ;;  %v1519_v25 = vsel %vm1391_vm14, %v367_v43, %v495_v45  ;;  %vm1390_vm15 = vcmp.eq.s32.totalorder %v1188_v4, 1  ;;  %v511_v26 = vld [vmem:[%s3217_s14 + $0x358] sm:$0xff]  ;;  %v373_v43 = vld [vmem:[%s3421_s23 + $0x308] sm:$0xff] }
 0x19c   : > { %1657 = vst [vmem:[%s3430_s25 + $0x328] sm:$0xff] %v1529_v49  ;;  %v1518_v10 = vsel %vm1390_vm15, %v366_v50, %v494_v63  ;;  %v501_v45 = vld [vmem:[%s3217_s14 + $0x308] sm:$0xff]  ;;  %v372_v50 = vld [vmem:[%s3421_s23 + $0x300] sm:$0xff] }
 0x19d   : > { %1647 = vst [vmem:[%s3430_s25 + $0x2d8] sm:$0xff] %v1519_v25  ;;  %v500_v63 = vld [vmem:[%s3217_s14 + $0x300] sm:$0xff]  ;;  %v514_v25 = vld [vmem:[%s3217_s14 + $0x370] sm:$0xff] }
 0x19e   : > { %1646 = vst [vmem:[%s3430_s25 + $0x2d0] sm:$0xff] %v1518_v10  ;;  %v376_v10 = vld [vmem:[%s3421_s23 + $0x320] sm:$0xff] }
 0x1a0   : > { %1706 = vperm.xlu1 %2707, %v3274_v17  }
 0x1a1   : > { %1709 = vperm.xlu2 %2705, %v3271_v16   ;;  %1712 = vperm.xlu0 %2706, %v3292_v24   ;;  %v1230_v38 = vpop.permute.xlu2 %1229  ;;  %v1200_v5 = vpop.permute.xlu1 %1199  ;;  %v383_v24 = vld [vmem:[%s3421_s23 + $0x358] sm:$0xff] }
 0x1a2   : > { %vm1404_vm0 = vcmp.eq.s32.totalorder %v1230_v38, 1  ;;  %vm1394_vm1 = vcmp.eq.s32.totalorder %v1200_v5, 1  ;;  %v1197_v17 = vpop.permute.xlu0 %1196  ;;  %v503_v38 = vld [vmem:[%s3217_s14 + $0x318] sm:$0xff] }
 0x1a3   : > { %v1532_v11 = vsel %vm1404_vm0, %v380_v18, %v508_v39  ;;  %v1522_v12 = vsel %vm1394_vm1, %v370_v7, %v498_v44  ;;  %vm1393_vm2 = vcmp.eq.s32.totalorder %v1197_v17, 1  ;;  %v504_v18 = vld [vmem:[%s3217_s14 + $0x320] sm:$0xff]  ;;  %v375_v44 = vld [vmem:[%s3421_s23 + $0x318] sm:$0xff] }
 0x1a4   : > { %1660 = vst [vmem:[%s3430_s25 + $0x340] sm:$0xff] %v1532_v11  ;;  %v1521_v16 = vsel %vm1393_vm2, %v369_v27, %v497_v0  ;;  %v517_v0 = vld [vmem:[%s3217_s14 + $0x388] sm:$0xff]  ;;  %v379_v17 = vld [vmem:[%s3421_s23 + $0x338] sm:$0xff] }
 0x1a5   : > { %1650 = vst [vmem:[%s3430_s25 + $0x2f0] sm:$0xff] %v1522_v12  ;;  %v507_v11 = vld [vmem:[%s3217_s14 + $0x338] sm:$0xff] }
 0x1a6   : > { %1649 = vst [vmem:[%s3430_s25 + $0x2e8] sm:$0xff] %v1521_v16 }
 0x1a8   : > { %1715 = vperm.xlu1 %2707, %v3289_v23  }
 0x1a9   : > { %1718 = vperm.xlu2 %2705, %v3286_v22   ;;  %1721 = vperm.xlu0 %2706, %v3307_v30   ;;  %v1239_v57 = vpop.permute.xlu2 %1238  ;;  %v1209_v6 = vpop.permute.xlu1 %1208  ;;  %v386_v30 = vld [vmem:[%s3421_s23 + $0x370] sm:$0xff] }
 0x1aa   : > { %vm1407_vm3 = vcmp.eq.s32.totalorder %v1239_v57, 1  ;;  %vm1397_vm4 = vcmp.eq.s32.totalorder %v1209_v6, 1  ;;  %v1206_v23 = vpop.permute.xlu0 %1205  ;;  %v520_v57 = vld [vmem:[%s3217_s14 + $0x3a0] sm:$0xff]  ;;  %v382_v6 = vld [vmem:[%s3421_s23 + $0x350] sm:$0xff] }
 0x1ab   : > { %v1535_v4 = vsel %vm1407_vm3, %v383_v24, %v511_v26  ;;  %v1525_v49 = vsel %vm1397_vm4, %v373_v43, %v501_v45  ;;  %vm1396_vm5 = vcmp.eq.s32.totalorder %v1206_v23, 1  ;;  %v378_v24 = vld [vmem:[%s3421_s23 + $0x330] sm:$0xff] }
 0x1ac   : > { %1663 = vst [vmem:[%s3430_s25 + $0x358] sm:$0xff] %v1535_v4  ;;  %v1524_v22 = vsel %vm1396_vm5, %v372_v50, %v500_v63  ;;  %v506_v26 = vld [vmem:[%s3217_s14 + $0x330] sm:$0xff]  ;;  %v381_v4 = vld [vmem:[%s3421_s23 + $0x348] sm:$0xff] }
 0x1ad   : > { %1653 = vst [vmem:[%s3430_s25 + $0x308] sm:$0xff] %v1525_v49  ;;  %v510_v50 = vld [vmem:[%s3217_s14 + $0x350] sm:$0xff]  ;;  %v509_v49 = vld [vmem:[%s3217_s14 + $0x348] sm:$0xff] }
 0x1ae   : > { %1652 = vst [vmem:[%s3430_s25 + $0x300] sm:$0xff] %v1524_v22 }
 0x1b0   : > { %1724 = vperm.xlu1 %2707, %v3304_v29  }
 0x1b1   : > { %1727 = vperm.xlu2 %2705, %v3301_v28   ;;  %1730 = vperm.xlu0 %2706, %v3322_v36   ;;  %v1248_v39 = vpop.permute.xlu2 %1247  ;;  %v1218_v7 = vpop.permute.xlu1 %1217  ;;  %v389_v36 = vld [vmem:[%s3421_s23 + $0x388] sm:$0xff] }
 0x1b2   : > { %vm1410_vm6 = vcmp.eq.s32.totalorder %v1248_v39, 1  ;;  %vm1400_vm7 = vcmp.eq.s32.totalorder %v1218_v7, 1  ;;  %v1215_v29 = vpop.permute.xlu0 %1214 }
 0x1b3   : > { %v1538_v5 = vsel %vm1410_vm6, %v386_v30, %v514_v25  ;;  %v1528_v27 = vsel %vm1400_vm7, %v376_v10, %v504_v18  ;;  %vm1399_vm8 = vcmp.eq.s32.totalorder %v1215_v29, 1  ;;  %v523_v25 = vld [vmem:[%s3217_s14 + $0x3b8] sm:$0xff]  ;;  %v385_v10 = vld [vmem:[%s3421_s23 + $0x368] sm:$0xff] }
 0x1b4   : > { %1666 = vst [vmem:[%s3430_s25 + $0x370] sm:$0xff] %v1538_v5  ;;  %v1527_v28 = vsel %vm1399_vm8, %v375_v44, %v503_v38  ;;  %v513_v18 = vld [vmem:[%s3217_s14 + $0x368] sm:$0xff]  ;;  %v384_v44 = vld [vmem:[%s3421_s23 + $0x360] sm:$0xff] }
 0x1b5   : > { %1656 = vst [vmem:[%s3430_s25 + $0x320] sm:$0xff] %v1528_v27  ;;  %v512_v38 = vld [vmem:[%s3217_s14 + $0x360] sm:$0xff]  ;;  %v526_v27 = vld [vmem:[%s3217_s14 + $0x3d0] sm:$0xff] }
 0x1b6   : > { %1655 = vst [vmem:[%s3430_s25 + $0x318] sm:$0xff] %v1527_v28  ;;  %v388_v28 = vld [vmem:[%s3421_s23 + $0x380] sm:$0xff] }
 0x1b8   : > { %1733 = vperm.xlu1 %2707, %v3319_v35  }
 0x1b9   : > { %1736 = vperm.xlu2 %2705, %v3316_v34   ;;  %1739 = vperm.xlu0 %2706, %v3337_v42   ;;  %v1257_v12 = vpop.permute.xlu2 %1256  ;;  %v1227_v16 = vpop.permute.xlu1 %1226  ;;  %v392_v42 = vld [vmem:[%s3421_s23 + $0x3a0] sm:$0xff] }
 0x1ba   : > { %vm1413_vm9 = vcmp.eq.s32.totalorder %v1257_v12, 1  ;;  %vm1403_vm10 = vcmp.eq.s32.totalorder %v1227_v16, 1  ;;  %v1224_v35 = vpop.permute.xlu0 %1223  ;;  %v515_v12 = vld [vmem:[%s3217_s14 + $0x378] sm:$0xff] }
 0x1bb   : > { %v1541_v43 = vsel %vm1413_vm9, %v389_v36, %v517_v0  ;;  %v1531_v45 = vsel %vm1403_vm10, %v379_v17, %v507_v11  ;;  %vm1402_vm11 = vcmp.eq.s32.totalorder %v1224_v35, 1  ;;  %v516_v36 = vld [vmem:[%s3217_s14 + $0x380] sm:$0xff]  ;;  %v387_v11 = vld [vmem:[%s3421_s23 + $0x378] sm:$0xff] }
 0x1bc   : > { %1669 = vst [vmem:[%s3430_s25 + $0x388] sm:$0xff] %v1541_v43  ;;  %v1530_v34 = vsel %vm1402_vm11, %v378_v24, %v506_v26  ;;  %v529_v26 = vld [vmem:[%s3217_s14 + $0x3e8] sm:$0xff]  ;;  %v391_v35 = vld [vmem:[%s3421_s23 + $0x398] sm:$0xff] }
 0x1bd   : > { %1659 = vst [vmem:[%s3430_s25 + $0x338] sm:$0xff] %v1531_v45  ;;  %v519_v43 = vld [vmem:[%s3217_s14 + $0x398] sm:$0xff] }
 0x1be   : > { %1658 = vst [vmem:[%s3430_s25 + $0x330] sm:$0xff] %v1530_v34 }
 0x1c0   : > { %1742 = vperm.xlu1 %2707, %v3334_v41  }
 0x1c1   : > { %1745 = vperm.xlu2 %2705, %v3331_v40   ;;  %1748 = vperm.xlu0 %2706, %v3352_v48   ;;  %v1266_v63 = vpop.permute.xlu2 %1265  ;;  %v1236_v23 = vpop.permute.xlu1 %1235  ;;  %v395_v48 = vld [vmem:[%s3421_s23 + $0x3b8] sm:$0xff] }
 0x1c2   : > { %vm1416_vm12 = vcmp.eq.s32.totalorder %v1266_v63, 1  ;;  %vm1406_vm13 = vcmp.eq.s32.totalorder %v1236_v23, 1  ;;  %v1233_v41 = vpop.permute.xlu0 %1232 }
 0x1c3   : > { %v1544_v22 = vsel %vm1416_vm12, %v392_v42, %v520_v57  ;;  %v1534_v30 = vsel %vm1406_vm13, %v382_v6, %v510_v50  ;;  %vm1405_vm14 = vcmp.eq.s32.totalorder %v1233_v41, 1  ;;  %v390_v42 = vld [vmem:[%s3421_s23 + $0x390] sm:$0xff] }
 0x1c4   : > { %1672 = vst [vmem:[%s3430_s25 + $0x3a0] sm:$0xff] %v1544_v22  ;;  %v1533_v40 = vsel %vm1405_vm14, %v381_v4, %v509_v49  ;;  %v518_v57 = vld [vmem:[%s3217_s14 + $0x390] sm:$0xff]  ;;  %v393_v4 = vld [vmem:[%s3421_s23 + $0x3a8] sm:$0xff] }
 0x1c5   : > { %1662 = vst [vmem:[%s3430_s25 + $0x350] sm:$0xff] %v1534_v30  ;;  %v521_v49 = vld [vmem:[%s3217_s14 + $0x3a8] sm:$0xff] }
 0x1c6   : > { %1661 = vst [vmem:[%s3430_s25 + $0x348] sm:$0xff] %v1533_v40  ;;  %v2709_v40 = vld [vmem:[%s3217_s14] sm:$0xff] }
 0x1c8   : > { %1751 = vperm.xlu1 %2707, %v3349_v47  }
 0x1c9   : > { %1754 = vperm.xlu2 %2705, %v3346_v46   ;;  %1757 = vperm.xlu0 %2706, %v3367_v54   ;;  %v1275_v39 = vpop.permute.xlu2 %1274  ;;  %v1245_v7 = vpop.permute.xlu1 %1244  ;;  %v398_v54 = vld [vmem:[%s3421_s23 + $0x3d0] sm:$0xff] }
 0x1ca   : > { %vm1419_vm15 = vcmp.eq.s32.totalorder %v1275_v39, 1  ;;  %vm1409_vm0 = vcmp.eq.s32.totalorder %v1245_v7, 1  ;;  %v1242_v47 = vpop.permute.xlu0 %1241  ;;  %v524_v39 = vld [vmem:[%s3217_s14 + $0x3c0] sm:$0xff] }
 0x1cb   : > { %v1547_v29 = vsel %vm1419_vm15, %v395_v48, %v523_v25  ;;  %v1537_v5 = vsel %vm1409_vm0, %v385_v10, %v513_v18  ;;  %vm1408_vm1 = vcmp.eq.s32.totalorder %v1242_v47, 1  ;;  %v525_v25 = vld [vmem:[%s3217_s14 + $0x3c8] sm:$0xff]  ;;  %v396_v18 = vld [vmem:[%s3421_s23 + $0x3c0] sm:$0xff]  ;;  %v2711_v47 = vld [vmem:[%s3217_s14 + $0x18] sm:$0xff] }
 0x1cc   : > { %1675 = vst [vmem:[%s3430_s25 + $0x3b8] sm:$0xff] %v1547_v29  ;;  %v1536_v46 = vsel %vm1408_vm1, %v384_v44, %v512_v38  ;;  %v400_v29 = vld [vmem:[%s3421_s23 + $0x3e0] sm:$0xff] }
 0x1cd   : > { %1665 = vst [vmem:[%s3430_s25 + $0x368] sm:$0xff] %v1537_v5  ;;  %v528_v5 = vld [vmem:[%s3217_s14 + $0x3e0] sm:$0xff] }
 0x1ce   : > { %1664 = vst [vmem:[%s3430_s25 + $0x360] sm:$0xff] %v1536_v46 }
 0x1d0   : > { %1760 = vperm.xlu1 %2707, %v3364_v53  }
 0x1d1   : > { %1763 = vperm.xlu2 %2705, %v3361_v52   ;;  %1766 = vperm.xlu0 %2706, %v3382_v60   ;;  %v1284_v0 = vpop.permute.xlu2 %1283  ;;  %v1254_v17 = vpop.permute.xlu1 %1253  ;;  %v401_v60 = vld [vmem:[%s3421_s23 + $0x3e8] sm:$0xff] }
 0x1d2   : > { %vm1422_vm2 = vcmp.eq.s32.totalorder %v1284_v0, 1  ;;  %vm1412_vm3 = vcmp.eq.s32.totalorder %v1254_v17, 1  ;;  %v1251_v53 = vpop.permute.xlu0 %1250  ;;  %v2713_v17 = vld [vmem:[%s3217_s14 + $0x28] sm:$0xff] }
 0x1d3   : > { %v1550_v16 = vsel %vm1422_vm2, %v398_v54, %v526_v27  ;;  %v1540_v24 = vsel %vm1412_vm3, %v388_v28, %v516_v36  ;;  %vm1411_vm4 = vcmp.eq.s32.totalorder %v1251_v53, 1  ;;  %v399_v54 = vld [vmem:[%s3421_s23 + $0x3d8] sm:$0xff] }
 0x1d4   : > { %1678 = vst [vmem:[%s3430_s25 + $0x3d0] sm:$0xff] %v1550_v16  ;;  %v1539_v52 = vsel %vm1411_vm4, %v387_v11, %v515_v12  ;;  %v527_v27 = vld [vmem:[%s3217_s14 + $0x3d8] sm:$0xff]  ;;  %v402_v16 = vld [vmem:[%s3421_s23 + $0x3f0] sm:$0xff] }
 0x1d5   : > { %1668 = vst [vmem:[%s3430_s25 + $0x380] sm:$0xff] %v1540_v24  ;;  %v403_v11 = vld [vmem:[%s3421_s23 + $0x3f8] sm:$0xff]  ;;  %v530_v24 = vld [vmem:[%s3217_s14 + $0x3f0] sm:$0xff] }
 0x1d6   : > { %1667 = vst [vmem:[%s3430_s25 + $0x378] sm:$0xff] %v1539_v52  ;;  %v531_v12 = vld [vmem:[%s3217_s14 + $0x3f8] sm:$0xff] }
 0x1d8   : > { %1769 = vperm.xlu1 %2707, %v3379_v59  }
 0x1d9   : > { %1772 = vperm.xlu2 %2705, %v3376_v58   ;;  %1775 = vperm.xlu0 %2706, %v3397_v3   ;;  %v1293_v45 = vpop.permute.xlu2 %1292  ;;  %v1263_v34 = vpop.permute.xlu1 %1262  ;;  %v394_v58 = vld [vmem:[%s3421_s23 + $0x3b0] sm:$0xff] }
 0x1da   : > { %vm1425_vm5 = vcmp.eq.s32.totalorder %v1293_v45, 1  ;;  %vm1415_vm6 = vcmp.eq.s32.totalorder %v1263_v34, 1  ;;  %v1260_v59 = vpop.permute.xlu0 %1259  ;;  %v522_v3 = vld [vmem:[%s3217_s14 + $0x3b0] sm:$0xff] }
 0x1db   : > { %v1553_v6 = vsel %vm1425_vm5, %v401_v60, %v529_v26  ;;  %v1543_v50 = vsel %vm1415_vm6, %v391_v35, %v519_v43  ;;  %vm1414_vm7 = vcmp.eq.s32.totalorder %v1260_v59, 1  ;;  %v2714_v35 = vld [vmem:[%s3421_s23 + $0x40] sm:$0xff] }
 0x1dc   : > { %1681 = vst [vmem:[%s3430_s25 + $0x3e8] sm:$0xff] %v1553_v6  ;;  %v1542_v63 = vsel %vm1414_vm7, %v390_v42, %v518_v57  ;;  %v2716_v42 = vld [vmem:[%s3421_s23 + $0x10] sm:$0xff]  ;;  %v2719_v6 = vld [vmem:[%s3217_s14 + $0x58] sm:$0xff] }
 0x1dd   : > { %1671 = vst [vmem:[%s3430_s25 + $0x398] sm:$0xff] %v1543_v50  ;;  %v2717_v57 = vld [vmem:[%s3217_s14 + $0x10] sm:$0xff]  ;;  %v2720_v50 = vld [vmem:[%s3421_s23 + $0x8] sm:$0xff] }
 0x1de   : > { %1670 = vst [vmem:[%s3430_s25 + $0x390] sm:$0xff] %v1542_v63  ;;  %v2721_v63 = vld [vmem:[%s3217_s14 + $0x8] sm:$0xff] }
 0x1e0   : > { %1778 = vperm.xlu1 %2707, %v3394_v2  }
 0x1e1   : > { %1781 = vperm.xlu2 %2705, %v3391_v1   ;;  %1784 = vperm.xlu0 %2706, %v3412_v15   ;;  %v1272_v23 = vpop.permute.xlu1 %1271  ;;  %v2708_v1 = vld [vmem:[%s3421_s23] sm:$0xff]  ;;  %v397_v15 = vld [vmem:[%s3421_s23 + $0x3c8] sm:$0xff] }
 0x1e2   : > { %vm1418_vm8 = vcmp.eq.s32.totalorder %v1272_v23, 1  ;;  %v1269_v41 = vpop.permute.xlu0 %1268  ;;  %v1686_v22 = vpop.permute.xlu2 %1685 }
 0x1e3   : > { %v1546_v30 = vsel %vm1418_vm8, %v394_v58, %v522_v3  ;;  %vm1417_vm9 = vcmp.eq.s32.totalorder %v1269_v41, 1  ;;  %vm2068_vm10 = vcmp.eq.s32.totalorder %v1686_v22, 1  ;;  %v5013_v58 = vld [vmem:[#allocation11_spill] sm:$0xff]  ;;  %v5014_v3 = vld [vmem:[#allocation14_spill] sm:$0xff] }
 0x1e4   : > { %1674 = vst [vmem:[%s3430_s25 + $0x3b0] sm:$0xff] %v1546_v30  ;;  %v1545_v2 = vsel %vm1417_vm9, %v393_v4, %v521_v49  ;;  %v2196_v48 = vsel %vm2068_vm10, %v2709_v40, %v2708_v1  ;;  %v2722_v41 = vld [vmem:[%s3421_s23 + $0x20] sm:$0xff]  ;;  %v2726_v40 = vld [vmem:[%s3421_s23 + $0x30] sm:$0xff] }
 0x1e5   : > { %1673 = vst [vmem:[%s3430_s25 + $0x3a8] sm:$0xff] %v1545_v2  ;;  %v2723_v22 = vld [vmem:[%s3217_s14 + $0x20] sm:$0xff]  ;;  %v2725_v2 = vld [vmem:[%s3217_s14 + $0x70] sm:$0xff] }
 0x1e6   : > { %2324 = vst [vmem:[%s4290_s30] sm:$0xff] %v2196_v48  ;;  %v2727_v48 = vld [vmem:[%s3217_s14 + $0x30] sm:$0xff] }
 0x1e8   : > { %1787 = vperm.xlu1 %2707, %v3409_v14  }
 0x1e9   : > { %1790 = vperm.xlu2 %2705, %v3406_v13   ;;  %1793 = vperm.xlu0 %2706, %v3440_v37   ;;  %v1281_v10 = vpop.permute.xlu1 %1280  ;;  %v2710_v13 = vld [vmem:[%s3421_s23 + $0x18] sm:$0xff] }
 0x1ea   : > { %vm1421_vm11 = vcmp.eq.s32.totalorder %v1281_v10, 1  ;;  %v1278_v7 = vpop.permute.xlu0 %1277  ;;  %v5016_v10 = vld [vmem:[#allocation12_spill] sm:$0xff] }
 0x1eb   : > { %v1549_v44 = vsel %vm1421_vm11, %v397_v15, %v525_v25  ;;  %vm1420_vm12 = vcmp.eq.s32.totalorder %v1278_v7, 1  ;;  %v1695_v14 = vpop.permute.xlu2 %1694  ;;  %v5015_v25 = vld [vmem:[#allocation13_spill] sm:$0xff] }
 0x1ec   : > { %1677 = vst [vmem:[%s3430_s25 + $0x3c8] sm:$0xff] %v1549_v44  ;;  %v1548_v38 = vsel %vm1420_vm12, %v396_v18, %v524_v39  ;;  %vm2071_vm13 = vcmp.eq.s32.totalorder %v1695_v14, 1  ;;  %v5017_v18 = vld [vmem:[#allocation17_spill] sm:$0xff]  ;;  %v2728_v14 = vld [vmem:[%s3421_s23 + $0x38] sm:$0xff] }
 0x1ed   : > { %1676 = vst [vmem:[%s3430_s25 + $0x3c0] sm:$0xff] %v1548_v38  ;;  %v2199_v37 = vsel %vm2071_vm13, %v2711_v47, %v2710_v13  ;;  %v2729_v38 = vld [vmem:[%s3217_s14 + $0x38] sm:$0xff]  ;;  %v2730_v47 = vld [vmem:[%s3421_s23 + $0x88] sm:$0xff] }
 0x1ee   : > { %2327 = vst [vmem:[%s4290_s30 + $0x18] sm:$0xff] %v2199_v37  ;;  %v2731_v37 = vld [vmem:[%s3217_s14 + $0x88] sm:$0xff] }
 0x1f0   : > { %1796 = vperm.xlu1 %2707, %v3437_v33  }
 0x1f1   : > { %1799 = vperm.xlu2 %2705, %v3434_v32   ;;  %1802 = vperm.xlu0 %2706, %v3458_v56   ;;  %v1290_v46 = vpop.permute.xlu1 %1289  ;;  %v2712_v32 = vld [vmem:[%s3421_s23 + $0x28] sm:$0xff] }
 0x1f2   : > { %vm1424_vm14 = vcmp.eq.s32.totalorder %v1290_v46, 1  ;;  %v1287_v28 = vpop.permute.xlu0 %1286  ;;  %v2733_v46 = vld [vmem:[%s3217_s14 + $0x48] sm:$0xff] }
 0x1f3   : > { %v1552_v36 = vsel %vm1424_vm14, %v400_v29, %v528_v5  ;;  %vm1423_vm15 = vcmp.eq.s32.totalorder %v1287_v28, 1  ;;  %v1701_v33 = vpop.permute.xlu2 %1700  ;;  %v2732_v5 = vld [vmem:[%s3421_s23 + $0x48] sm:$0xff]  ;;  %v5019_v28 = vld [vmem:[#allocation15_spill] sm:$0xff] }
 0x1f4   : > { %1680 = vst [vmem:[%s3430_s25 + $0x3e0] sm:$0xff] %v1552_v36  ;;  %v1551_v0 = vsel %vm1423_vm15, %v399_v54, %v527_v27  ;;  %vm2073_vm0 = vcmp.eq.s32.totalorder %v1701_v33, 1  ;;  %v5018_v27 = vld [vmem:[#allocation16_spill] sm:$0xff] }
 0x1f5   : > { %1679 = vst [vmem:[%s3430_s25 + $0x3d8] sm:$0xff] %v1551_v0  ;;  %v2201_v56 = vsel %vm2073_vm0, %v2713_v17, %v2712_v32  ;;  %v5020_v36 = vld [vmem:[#allocation20_spill] sm:$0xff]  ;;  %v2734_v17 = vld [vmem:[%s3421_s23 + $0x50] sm:$0xff] }
 0x1f6   : > { %2329 = vst [vmem:[%s4290_s30 + $0x28] sm:$0xff] %v2201_v56  ;;  %v2735_v56 = vld [vmem:[%s3217_s14 + $0x50] sm:$0xff] }
 0x1f8   : > { %1805 = vperm.xlu1 %2707, %v3455_v55  }
 0x1f9   : > { %1808 = vperm.xlu2 %2705, %v3452_v51   ;;  %1811 = vperm.xlu0 %2706, %v3476_v21   ;;  %v1299_v53 = vpop.permute.xlu1 %1298  ;;  %v2715_v51 = vld [vmem:[%s3217_s14 + $0x40] sm:$0xff] }
 0x1fa   : > { %vm1427_vm1 = vcmp.eq.s32.totalorder %v1299_v53, 1  ;;  %v1296_v52 = vpop.permute.xlu0 %1295  ;;  %v2737_v53 = vld [vmem:[%s3217_s14 + $0xa0] sm:$0xff] }
 0x1fb   : > { %v1555_v60 = vsel %vm1427_vm1, %v403_v11, %v531_v12  ;;  %vm1426_vm2 = vcmp.eq.s32.totalorder %v1296_v52, 1  ;;  %v1710_v26 = vpop.permute.xlu2 %1709  ;;  %v2736_v12 = vld [vmem:[%s3421_s23 + $0xa0] sm:$0xff] }
 0x1fc   : > { %1683 = vst [vmem:[%s3430_s25 + $0x3f8] sm:$0xff] %v1555_v60  ;;  %v1554_v55 = vsel %vm1426_vm2, %v402_v16, %v530_v24  ;;  %vm2076_vm3 = vcmp.eq.s32.totalorder %v1710_v26, 1  ;;  %v2738_v24 = vld [vmem:[%s3421_s23 + $0x60] sm:$0xff] }
 0x1fd   : > { %1682 = vst [vmem:[%s3430_s25 + $0x3f0] sm:$0xff] %v1554_v55  ;;  %v2204_v21 = vsel %vm2076_vm3, %v2715_v51, %v2714_v35  ;;  %v2739_v52 = vld [vmem:[%s3217_s14 + $0x60] sm:$0xff]  ;;  %v5022_v55 = vld [vmem:[#allocation18_spill] sm:$0xff] }
 0x1fe   : > { %2332 = vst [vmem:[%s4290_s30 + $0x40] sm:$0xff] %v2204_v21  ;;  %v5021_v26 = vld [vmem:[#allocation19_spill] sm:$0xff] }
 0x1ff   : > { %v5023_v35 = vld [vmem:[#allocation23_spill] sm:$0xff] }
 0x200   : > { %1814 = vperm.xlu1 %2707, %v3473_v20   ;;  %v2718_v20 = vld [vmem:[%s3421_s23 + $0x58] sm:$0xff] }
 0x201   : > { %1817 = vperm.xlu2 %2705, %v3470_v19   ;;  %1820 = vperm.xlu0 %2706, %v3499_v9  }
 0x202   : > { %v1692_v43 = vpop.permute.xlu1 %1691 }
 0x203   : > { %vm2070_vm4 = vcmp.eq.s32.totalorder %v1692_v43, 1  ;;  %v1719_v45 = vpop.permute.xlu2 %1718  ;;  %v1689_v34 = vpop.permute.xlu0 %1688 }
 0x204   : > { %v2198_v59 = vsel %vm2070_vm4, %v2717_v57, %v2716_v42  ;;  %vm2079_vm5 = vcmp.eq.s32.totalorder %v1719_v45, 1  ;;  %vm2069_vm6 = vcmp.eq.s32.totalorder %v1689_v34, 1  ;;  %v2740_v45 = vld [vmem:[%s3421_s23 + $0x68] sm:$0xff]  ;;  %v2742_v57 = vld [vmem:[%s3421_s23 + $0xb8] sm:$0xff] }
 0x205   : > { %2326 = vst [vmem:[%s4290_s30 + $0x10] sm:$0xff] %v2198_v59  ;;  %v2207_v19 = vsel %vm2079_vm5, %v2719_v6, %v2718_v20  ;;  %v2197_v9 = vsel %vm2069_vm6, %v2721_v63, %v2720_v50  ;;  %v2741_v34 = vld [vmem:[%s3217_s14 + $0x68] sm:$0xff]  ;;  %v2743_v59 = vld [vmem:[%s3217_s14 + $0xb8] sm:$0xff] }
 0x206   : > { %2335 = vst [vmem:[%s4290_s30 + $0x58] sm:$0xff] %v2207_v19  ;;  %v2744_v6 = vld [vmem:[%s3421_s23 + $0x78] sm:$0xff] }
 0x207   : > { %2325 = vst [vmem:[%s4290_s30 + $0x8] sm:$0xff] %v2197_v9  ;;  %v2745_v19 = vld [vmem:[%s3217_s14 + $0x78] sm:$0xff]  ;;  %v5025_v9 = vld [vmem:[#allocation21_spill] sm:$0xff] }
 0x208   : > { %1823 = vperm.xlu1 %2707, %v3495_v8   ;;  %v2724_v8 = vld [vmem:[%s3421_s23 + $0x70] sm:$0xff]  ;;  %v5024_v63 = vld [vmem:[#allocation22_spill] sm:$0xff] }
 0x209   : > { %1826 = vperm.xlu2 %2705, %v5013_v58   ;;  %1829 = vperm.xlu0 %2706, %v5014_v3   ;;  %v5026_v58 = vld [vmem:[#allocation26_spill] sm:$0xff] }
 0x20a   : > { %v1698_v23 = vpop.permute.xlu1 %1697 }
 0x20b   : > { %vm2072_vm7 = vcmp.eq.s32.totalorder %v1698_v23, 1  ;;  %v1728_v4 = vpop.permute.xlu2 %1727  ;;  %v1704_v49 = vpop.permute.xlu0 %1703 }
 0x20c   : > { %v2200_v30 = vsel %vm2072_vm7, %v2723_v22, %v2722_v41  ;;  %vm2082_vm8 = vcmp.eq.s32.totalorder %v1728_v4, 1  ;;  %vm2074_vm9 = vcmp.eq.s32.totalorder %v1704_v49, 1  ;;  %v2746_v49 = vld [vmem:[%s3421_s23 + $0x80] sm:$0xff] }
 0x20d   : > { %2328 = vst [vmem:[%s4290_s30 + $0x20] sm:$0xff] %v2200_v30  ;;  %v2210_v1 = vsel %vm2082_vm8, %v2725_v2, %v2724_v8  ;;  %v2202_v15 = vsel %vm2074_vm9, %v2727_v48, %v2726_v40  ;;  %v2747_v41 = vld [vmem:[%s3217_s14 + $0x80] sm:$0xff]  ;;  %v2748_v30 = vld [vmem:[%s3421_s23 + $0xd0] sm:$0xff] }
 0x20e   : > { %2338 = vst [vmem:[%s4290_s30 + $0x70] sm:$0xff] %v2210_v1  ;;  %v2749_v8 = vld [vmem:[%s3217_s14 + $0xd0] sm:$0xff] }
 0x20f   : > { %2330 = vst [vmem:[%s4290_s30 + $0x30] sm:$0xff] %v2202_v15  ;;  %v2750_v1 = vld [vmem:[%s3421_s23 + $0x90] sm:$0xff] }
 0x210   : > { %1832 = vperm.xlu1 %2707, %v5015_v25   ;;  %v2751_v40 = vld [vmem:[%s3217_s14 + $0x90] sm:$0xff]  ;;  %v5028_v25 = vld [vmem:[#allocation24_spill] sm:$0xff] }
 0x211   : > { %1835 = vperm.xlu2 %2705, %v5016_v10   ;;  %1838 = vperm.xlu0 %2706, %v5017_v18   ;;  %v5027_v15 = vld [vmem:[#allocation25_spill] sm:$0xff] }
 0x212   : > { %v1707_v39 = vpop.permute.xlu1 %1706  ;;  %v5029_v10 = vld [vmem:[#allocation29_spill] sm:$0xff] }
 0x213   : > { %vm2075_vm10 = vcmp.eq.s32.totalorder %v1707_v39, 1  ;;  %v1737_v7 = vpop.permute.xlu2 %1736  ;;  %v1713_v44 = vpop.permute.xlu0 %1712 }
 0x214   : > { %v2203_v13 = vsel %vm2075_vm10, %v2729_v38, %v2728_v14  ;;  %vm2085_vm11 = vcmp.eq.s32.totalorder %v1737_v7, 1  ;;  %vm2077_vm12 = vcmp.eq.s32.totalorder %v1713_v44, 1  ;;  %v2752_v44 = vld [vmem:[%s3421_s23 + $0x98] sm:$0xff] }
 0x215   : > { %2331 = vst [vmem:[%s4290_s30 + $0x38] sm:$0xff] %v2203_v13  ;;  %v2213_v29 = vsel %vm2085_vm11, %v2731_v37, %v2730_v47  ;;  %v2205_v54 = vsel %vm2077_vm12, %v2733_v46, %v2732_v5  ;;  %v2753_v14 = vld [vmem:[%s3217_s14 + $0x98] sm:$0xff]  ;;  %v2754_v13 = vld [vmem:[%s3421_s23 + $0xe8] sm:$0xff] }
 0x216   : > { %2341 = vst [vmem:[%s4290_s30 + $0x88] sm:$0xff] %v2213_v29  ;;  %v2755_v47 = vld [vmem:[%s3217_s14 + $0xe8] sm:$0xff] }
 0x217   : > { %2333 = vst [vmem:[%s4290_s30 + $0x48] sm:$0xff] %v2205_v54  ;;  %v2756_v29 = vld [vmem:[%s3421_s23 + $0xa8] sm:$0xff] }
 0x218   : > { %1841 = vperm.xlu1 %2707, %v5018_v27   ;;  %v2757_v5 = vld [vmem:[%s3217_s14 + $0xa8] sm:$0xff]  ;;  %v5031_v27 = vld [vmem:[#allocation27_spill] sm:$0xff] }
 0x219   : > { %1844 = vperm.xlu2 %2705, %v5019_v28   ;;  %1847 = vperm.xlu0 %2706, %v5020_v36   ;;  %v5030_v54 = vld [vmem:[#allocation28_spill] sm:$0xff] }
 0x21a   : > { %v1716_v33 = vpop.permute.xlu1 %1715  ;;  %v5032_v28 = vld [vmem:[#allocation32_spill] sm:$0xff] }
 0x21b   : > { %vm2078_vm13 = vcmp.eq.s32.totalorder %v1716_v33, 1  ;;  %v1746_v0 = vpop.permute.xlu2 %1745  ;;  %v1722_v32 = vpop.permute.xlu0 %1721 }
 0x21c   : > { %v2206_v11 = vsel %vm2078_vm13, %v2735_v56, %v2734_v17  ;;  %vm2088_vm14 = vcmp.eq.s32.totalorder %v1746_v0, 1  ;;  %vm2080_vm15 = vcmp.eq.s32.totalorder %v1722_v32, 1  ;;  %v2758_v32 = vld [vmem:[%s3421_s23 + $0xb0] sm:$0xff] }
 0x21d   : > { %2334 = vst [vmem:[%s4290_s30 + $0x50] sm:$0xff] %v2206_v11  ;;  %v2216_v16 = vsel %vm2088_vm14, %v2737_v53, %v2736_v12  ;;  %v2208_v60 = vsel %vm2080_vm15, %v2739_v52, %v2738_v24  ;;  %v2759_v17 = vld [vmem:[%s3217_s14 + $0xb0] sm:$0xff]  ;;  %v2760_v11 = vld [vmem:[%s3421_s23 + $0x100] sm:$0xff] }
 0x21e   : > { %2344 = vst [vmem:[%s4290_s30 + $0xa0] sm:$0xff] %v2216_v16  ;;  %v2761_v12 = vld [vmem:[%s3217_s14 + $0x100] sm:$0xff] }
 0x21f   : > { %2336 = vst [vmem:[%s4290_s30 + $0x60] sm:$0xff] %v2208_v60  ;;  %v2762_v16 = vld [vmem:[%s3421_s23 + $0xc0] sm:$0xff] }
 0x220   : > { %1850 = vperm.xlu1 %2707, %v5021_v26   ;;  %v2763_v24 = vld [vmem:[%s3217_s14 + $0xc0] sm:$0xff]  ;;  %v5034_v26 = vld [vmem:[#allocation30_spill] sm:$0xff] }
 0x221   : > { %1853 = vperm.xlu2 %2705, %v5022_v55   ;;  %1856 = vperm.xlu0 %2706, %v5023_v35   ;;  %v5033_v60 = vld [vmem:[#allocation31_spill] sm:$0xff] }
 0x222   : > { %v1725_v51 = vpop.permute.xlu1 %1724  ;;  %v5035_v55 = vld [vmem:[#allocation35_spill] sm:$0xff] }
 0x223   : > { %vm2081_vm0 = vcmp.eq.s32.totalorder %v1725_v51, 1  ;;  %v1755_v21 = vpop.permute.xlu2 %1754  ;;  %v1731_v43 = vpop.permute.xlu0 %1730 }
 0x224   : > { %v2209_v42 = vsel %vm2081_vm0, %v2741_v34, %v2740_v45  ;;  %vm2091_vm1 = vcmp.eq.s32.totalorder %v1755_v21, 1  ;;  %vm2083_vm2 = vcmp.eq.s32.totalorder %v1731_v43, 1  ;;  %v2764_v43 = vld [vmem:[%s3421_s23 + $0xc8] sm:$0xff] }
 0x225   : > { %2337 = vst [vmem:[%s4290_s30 + $0x68] sm:$0xff] %v2209_v42  ;;  %v2219_v20 = vsel %vm2091_vm1, %v2743_v59, %v2742_v57  ;;  %v2211_v50 = vsel %vm2083_vm2, %v2745_v19, %v2744_v6  ;;  %v2765_v45 = vld [vmem:[%s3217_s14 + $0xc8] sm:$0xff]  ;;  %v2766_v42 = vld [vmem:[%s3421_s23 + $0x118] sm:$0xff] }
 0x226   : > { %2347 = vst [vmem:[%s4290_s30 + $0xb8] sm:$0xff] %v2219_v20  ;;  %v2767_v57 = vld [vmem:[%s3217_s14 + $0x118] sm:$0xff] }
 0x227   : > { %2339 = vst [vmem:[%s4290_s30 + $0x78] sm:$0xff] %v2211_v50  ;;  %v2768_v20 = vld [vmem:[%s3421_s23 + $0xd8] sm:$0xff] }
 0x228   : > { %1859 = vperm.xlu1 %2707, %v5024_v63   ;;  %v2769_v6 = vld [vmem:[%s3217_s14 + $0xd8] sm:$0xff]  ;;  %v5037_v63 = vld [vmem:[#allocation33_spill] sm:$0xff] }
 0x229   : > { %1862 = vperm.xlu2 %2705, %v5025_v9   ;;  %1865 = vperm.xlu0 %2706, %v5026_v58   ;;  %v5036_v50 = vld [vmem:[#allocation34_spill] sm:$0xff] }
 0x22a   : > { %v1734_v3 = vpop.permute.xlu1 %1733  ;;  %v5038_v9 = vld [vmem:[#allocation38_spill] sm:$0xff] }
 0x22b   : > { %vm2084_vm3 = vcmp.eq.s32.totalorder %v1734_v3, 1  ;;  %v1764_v23 = vpop.permute.xlu2 %1763  ;;  %v1740_v4 = vpop.permute.xlu0 %1739 }
 0x22c   : > { %v2212_v22 = vsel %vm2084_vm3, %v2747_v41, %v2746_v49  ;;  %vm2094_vm4 = vcmp.eq.s32.totalorder %v1764_v23, 1  ;;  %vm2086_vm5 = vcmp.eq.s32.totalorder %v1740_v4, 1  ;;  %v2770_v4 = vld [vmem:[%s3421_s23 + $0xe0] sm:$0xff] }
 0x22d   : > { %2340 = vst [vmem:[%s4290_s30 + $0x80] sm:$0xff] %v2212_v22  ;;  %v2222_v2 = vsel %vm2094_vm4, %v2749_v8, %v2748_v30  ;;  %v2214_v48 = vsel %vm2086_vm5, %v2751_v40, %v2750_v1  ;;  %v2771_v49 = vld [vmem:[%s3217_s14 + $0xe0] sm:$0xff]  ;;  %v2772_v22 = vld [vmem:[%s3421_s23 + $0x130] sm:$0xff] }
 0x22e   : > { %2350 = vst [vmem:[%s4290_s30 + $0xd0] sm:$0xff] %v2222_v2  ;;  %v2773_v30 = vld [vmem:[%s3217_s14 + $0x130] sm:$0xff] }
 0x22f   : > { %2342 = vst [vmem:[%s4290_s30 + $0x90] sm:$0xff] %v2214_v48  ;;  %v2774_v2 = vld [vmem:[%s3421_s23 + $0xf0] sm:$0xff] }
 0x230   : > { %1868 = vperm.xlu1 %2707, %v5027_v15   ;;  %v2775_v1 = vld [vmem:[%s3217_s14 + $0xf0] sm:$0xff]  ;;  %v5040_v15 = vld [vmem:[#allocation36_spill] sm:$0xff] }
 0x231   : > { %1871 = vperm.xlu2 %2705, %v5028_v25   ;;  %1874 = vperm.xlu0 %2706, %v5029_v10   ;;  %v5039_v48 = vld [vmem:[#allocation37_spill] sm:$0xff] }
 0x232   : > { %v1743_v18 = vpop.permute.xlu1 %1742  ;;  %v5041_v25 = vld [vmem:[#allocation41_spill] sm:$0xff] }
 0x233   : > { %vm2087_vm6 = vcmp.eq.s32.totalorder %v1743_v18, 1  ;;  %v1773_v39 = vpop.permute.xlu2 %1772  ;;  %v1749_v7 = vpop.permute.xlu0 %1748 }
 0x234   : > { %v2215_v38 = vsel %vm2087_vm6, %v2753_v14, %v2752_v44  ;;  %vm2097_vm7 = vcmp.eq.s32.totalorder %v1773_v39, 1  ;;  %vm2089_vm8 = vcmp.eq.s32.totalorder %v1749_v7, 1  ;;  %v2776_v7 = vld [vmem:[%s3421_s23 + $0xf8] sm:$0xff] }
 0x235   : > { %2343 = vst [vmem:[%s4290_s30 + $0x98] sm:$0xff] %v2215_v38  ;;  %v2225_v37 = vsel %vm2097_vm7, %v2755_v47, %v2754_v13  ;;  %v2217_v46 = vsel %vm2089_vm8, %v2757_v5, %v2756_v29  ;;  %v2777_v44 = vld [vmem:[%s3217_s14 + $0xf8] sm:$0xff]  ;;  %v2778_v38 = vld [vmem:[%s3421_s23 + $0x148] sm:$0xff] }
 0x236   : > { %2353 = vst [vmem:[%s4290_s30 + $0xe8] sm:$0xff] %v2225_v37  ;;  %v2779_v13 = vld [vmem:[%s3217_s14 + $0x148] sm:$0xff] }
 0x237   : > { %2345 = vst [vmem:[%s4290_s30 + $0xa8] sm:$0xff] %v2217_v46  ;;  %v2780_v37 = vld [vmem:[%s3421_s23 + $0x108] sm:$0xff] }
 0x238   : > { %1877 = vperm.xlu1 %2707, %v5030_v54   ;;  %v2781_v29 = vld [vmem:[%s3217_s14 + $0x108] sm:$0xff]  ;;  %v5043_v54 = vld [vmem:[#allocation39_spill] sm:$0xff] }
 0x239   : > { %1880 = vperm.xlu2 %2705, %v5031_v27   ;;  %1883 = vperm.xlu0 %2706, %v5032_v28   ;;  %v5042_v46 = vld [vmem:[#allocation40_spill] sm:$0xff] }
 0x23a   : > { %v1752_v36 = vpop.permute.xlu1 %1751  ;;  %v5044_v27 = vld [vmem:[#allocation44_spill] sm:$0xff] }
 0x23b   : > { %vm2090_vm9 = vcmp.eq.s32.totalorder %v1752_v36, 1  ;;  %v1782_v33 = vpop.permute.xlu2 %1781  ;;  %v1758_v0 = vpop.permute.xlu0 %1757 }
 0x23c   : > { %v2218_v56 = vsel %vm2090_vm9, %v2759_v17, %v2758_v32  ;;  %vm2100_vm10 = vcmp.eq.s32.totalorder %v1782_v33, 1  ;;  %vm2092_vm11 = vcmp.eq.s32.totalorder %v1758_v0, 1  ;;  %v2782_v0 = vld [vmem:[%s3421_s23 + $0x110] sm:$0xff] }
 0x23d   : > { %2346 = vst [vmem:[%s4290_s30 + $0xb0] sm:$0xff] %v2218_v56  ;;  %v2228_v53 = vsel %vm2100_vm10, %v2761_v12, %v2760_v11  ;;  %v2220_v52 = vsel %vm2092_vm11, %v2763_v24, %v2762_v16  ;;  %v2783_v32 = vld [vmem:[%s3217_s14 + $0x110] sm:$0xff]  ;;  %v2784_v56 = vld [vmem:[%s3421_s23 + $0x160] sm:$0xff] }
 0x23e   : > { %2356 = vst [vmem:[%s4290_s30 + $0x100] sm:$0xff] %v2228_v53  ;;  %v2785_v11 = vld [vmem:[%s3217_s14 + $0x160] sm:$0xff] }
 0x23f   : > { %2348 = vst [vmem:[%s4290_s30 + $0xc0] sm:$0xff] %v2220_v52  ;;  %v2786_v53 = vld [vmem:[%s3421_s23 + $0x120] sm:$0xff] }
 0x240   : > { %1886 = vperm.xlu1 %2707, %v5033_v60   ;;  %v2787_v16 = vld [vmem:[%s3217_s14 + $0x120] sm:$0xff]  ;;  %v5046_v60 = vld [vmem:[#allocation42_spill] sm:$0xff] }
 0x241   : > { %1889 = vperm.xlu2 %2705, %v5034_v26   ;;  %1892 = vperm.xlu0 %2706, %v5035_v55   ;;  %v5045_v52 = vld [vmem:[#allocation43_spill] sm:$0xff] }
 0x242   : > { %v1761_v35 = vpop.permute.xlu1 %1760  ;;  %v5047_v26 = vld [vmem:[#allocation47_spill] sm:$0xff] }
 0x243   : > { %vm2093_vm12 = vcmp.eq.s32.totalorder %v1761_v35, 1  ;;  %v1791_v51 = vpop.permute.xlu2 %1790  ;;  %v1767_v21 = vpop.permute.xlu0 %1766 }
 0x244   : > { %v2221_v34 = vsel %vm2093_vm12, %v2765_v45, %v2764_v43  ;;  %vm2103_vm13 = vcmp.eq.s32.totalorder %v1791_v51, 1  ;;  %vm2095_vm14 = vcmp.eq.s32.totalorder %v1767_v21, 1  ;;  %v2788_v21 = vld [vmem:[%s3421_s23 + $0x128] sm:$0xff] }
 0x245   : > { %2349 = vst [vmem:[%s4290_s30 + $0xc8] sm:$0xff] %v2221_v34  ;;  %v2231_v59 = vsel %vm2103_vm13, %v2767_v57, %v2766_v42  ;;  %v2223_v19 = vsel %vm2095_vm14, %v2769_v6, %v2768_v20  ;;  %v2789_v43 = vld [vmem:[%s3217_s14 + $0x128] sm:$0xff]  ;;  %v2790_v34 = vld [vmem:[%s3421_s23 + $0x178] sm:$0xff] }
 0x246   : > { %2359 = vst [vmem:[%s4290_s30 + $0x118] sm:$0xff] %v2231_v59  ;;  %v2791_v42 = vld [vmem:[%s3217_s14 + $0x178] sm:$0xff] }
 0x247   : > { %2351 = vst [vmem:[%s4290_s30 + $0xd8] sm:$0xff] %v2223_v19  ;;  %v2792_v59 = vld [vmem:[%s3421_s23 + $0x138] sm:$0xff] }
 0x248   : > { %1895 = vperm.xlu1 %2707, %v5036_v50   ;;  %v2793_v20 = vld [vmem:[%s3217_s14 + $0x138] sm:$0xff]  ;;  %v5049_v50 = vld [vmem:[#allocation45_spill] sm:$0xff] }
 0x249   : > { %1898 = vperm.xlu2 %2705, %v5037_v63   ;;  %1901 = vperm.xlu0 %2706, %v5038_v9   ;;  %v5048_v19 = vld [vmem:[#allocation46_spill] sm:$0xff] }
 0x24a   : > { %v1770_v58 = vpop.permute.xlu1 %1769  ;;  %v5050_v63 = vld [vmem:[#allocation50_spill] sm:$0xff] }
 0x24b   : > { %vm2096_vm15 = vcmp.eq.s32.totalorder %v1770_v58, 1  ;;  %v1800_v3 = vpop.permute.xlu2 %1799  ;;  %v1776_v23 = vpop.permute.xlu0 %1775 }
 0x24c   : > { %v2224_v41 = vsel %vm2096_vm15, %v2771_v49, %v2770_v4  ;;  %vm2106_vm0 = vcmp.eq.s32.totalorder %v1800_v3, 1  ;;  %vm2098_vm1 = vcmp.eq.s32.totalorder %v1776_v23, 1  ;;  %v2794_v23 = vld [vmem:[%s3421_s23 + $0x140] sm:$0xff] }
 0x24d   : > { %2352 = vst [vmem:[%s4290_s30 + $0xe0] sm:$0xff] %v2224_v41  ;;  %v2234_v8 = vsel %vm2106_vm0, %v2773_v30, %v2772_v22  ;;  %v2226_v40 = vsel %vm2098_vm1, %v2775_v1, %v2774_v2  ;;  %v2795_v4 = vld [vmem:[%s3217_s14 + $0x140] sm:$0xff]  ;;  %v2796_v41 = vld [vmem:[%s3421_s23 + $0x190] sm:$0xff] }
 0x24e   : > { %2362 = vst [vmem:[%s4290_s30 + $0x130] sm:$0xff] %v2234_v8  ;;  %v2797_v22 = vld [vmem:[%s3217_s14 + $0x190] sm:$0xff] }
 0x24f   : > { %2354 = vst [vmem:[%s4290_s30 + $0xf0] sm:$0xff] %v2226_v40  ;;  %v2798_v8 = vld [vmem:[%s3421_s23 + $0x150] sm:$0xff] }
 0x250   : > { %1904 = vperm.xlu1 %2707, %v5039_v48   ;;  %v2799_v2 = vld [vmem:[%s3217_s14 + $0x150] sm:$0xff]  ;;  %v5052_v48 = vld [vmem:[#allocation48_spill] sm:$0xff] }
 0x251   : > { %1907 = vperm.xlu2 %2705, %v5040_v15   ;;  %1910 = vperm.xlu0 %2706, %v5041_v25   ;;  %v5051_v40 = vld [vmem:[#allocation49_spill] sm:$0xff] }
 0x252   : > { %v1779_v10 = vpop.permute.xlu1 %1778  ;;  %v5053_v15 = vld [vmem:[#allocation53_spill] sm:$0xff] }
 0x253   : > { %vm2099_vm2 = vcmp.eq.s32.totalorder %v1779_v10, 1  ;;  %v1809_v18 = vpop.permute.xlu2 %1808  ;;  %v1785_v39 = vpop.permute.xlu0 %1784 }
 0x254   : > { %v2227_v14 = vsel %vm2099_vm2, %v2777_v44, %v2776_v7  ;;  %vm2109_vm3 = vcmp.eq.s32.totalorder %v1809_v18, 1  ;;  %vm2101_vm4 = vcmp.eq.s32.totalorder %v1785_v39, 1  ;;  %v2800_v39 = vld [vmem:[%s3421_s23 + $0x158] sm:$0xff] }
 0x255   : > { %2355 = vst [vmem:[%s4290_s30 + $0xf8] sm:$0xff] %v2227_v14  ;;  %v2237_v47 = vsel %vm2109_vm3, %v2779_v13, %v2778_v38  ;;  %v2229_v5 = vsel %vm2101_vm4, %v2781_v29, %v2780_v37  ;;  %v2801_v7 = vld [vmem:[%s3217_s14 + $0x158] sm:$0xff]  ;;  %v2802_v14 = vld [vmem:[%s3421_s23 + $0x1a8] sm:$0xff] }
 0x256   : > { %2365 = vst [vmem:[%s4290_s30 + $0x148] sm:$0xff] %v2237_v47  ;;  %v2803_v38 = vld [vmem:[%s3217_s14 + $0x1a8] sm:$0xff] }
 0x257   : > { %2357 = vst [vmem:[%s4290_s30 + $0x108] sm:$0xff] %v2229_v5  ;;  %v2804_v47 = vld [vmem:[%s3421_s23 + $0x168] sm:$0xff] }
 0x258   : > { %1913 = vperm.xlu1 %2707, %v5042_v46   ;;  %v2805_v37 = vld [vmem:[%s3217_s14 + $0x168] sm:$0xff]  ;;  %v5055_v46 = vld [vmem:[#allocation51_spill] sm:$0xff] }
 0x259   : > { %1916 = vperm.xlu2 %2705, %v5043_v54   ;;  %1919 = vperm.xlu0 %2706, %v5044_v27   ;;  %v5054_v5 = vld [vmem:[#allocation52_spill] sm:$0xff] }
 0x25a   : > { %v1788_v28 = vpop.permute.xlu1 %1787  ;;  %v5056_v54 = vld [vmem:[#allocation56_spill] sm:$0xff] }
 0x25b   : > { %vm2102_vm5 = vcmp.eq.s32.totalorder %v1788_v28, 1  ;;  %v1818_v36 = vpop.permute.xlu2 %1817  ;;  %v1794_v33 = vpop.permute.xlu0 %1793 }
 0x25c   : > { %v2230_v17 = vsel %vm2102_vm5, %v2783_v32, %v2782_v0  ;;  %vm2112_vm6 = vcmp.eq.s32.totalorder %v1818_v36, 1  ;;  %vm2104_vm7 = vcmp.eq.s32.totalorder %v1794_v33, 1  ;;  %v2806_v33 = vld [vmem:[%s3421_s23 + $0x170] sm:$0xff] }
 0x25d   : > { %2358 = vst [vmem:[%s4290_s30 + $0x110] sm:$0xff] %v2230_v17  ;;  %v2240_v12 = vsel %vm2112_vm6, %v2785_v11, %v2784_v56  ;;  %v2232_v24 = vsel %vm2104_vm7, %v2787_v16, %v2786_v53  ;;  %v2807_v0 = vld [vmem:[%s3217_s14 + $0x170] sm:$0xff]  ;;  %v2808_v17 = vld [vmem:[%s3421_s23 + $0x1c0] sm:$0xff] }
 0x25e   : > { %2368 = vst [vmem:[%s4290_s30 + $0x160] sm:$0xff] %v2240_v12  ;;  %v2809_v56 = vld [vmem:[%s3217_s14 + $0x1c0] sm:$0xff] }
 0x25f   : > { %2360 = vst [vmem:[%s4290_s30 + $0x120] sm:$0xff] %v2232_v24  ;;  %v2810_v12 = vld [vmem:[%s3421_s23 + $0x180] sm:$0xff] }
 0x260   : > { %1922 = vperm.xlu1 %2707, %v5045_v52   ;;  %v2811_v53 = vld [vmem:[%s3217_s14 + $0x180] sm:$0xff]  ;;  %v5058_v52 = vld [vmem:[#allocation54_spill] sm:$0xff] }
 0x261   : > { %1925 = vperm.xlu2 %2705, %v5046_v60   ;;  %1928 = vperm.xlu0 %2706, %v5047_v26   ;;  %v5057_v24 = vld [vmem:[#allocation55_spill] sm:$0xff] }
 0x262   : > { %v1797_v55 = vpop.permute.xlu1 %1796  ;;  %v5059_v60 = vld [vmem:[#allocation59_spill] sm:$0xff] }
 0x263   : > { %vm2105_vm8 = vcmp.eq.s32.totalorder %v1797_v55, 1  ;;  %v1827_v35 = vpop.permute.xlu2 %1826  ;;  %v1803_v51 = vpop.permute.xlu0 %1802 }
 0x264   : > { %v2233_v45 = vsel %vm2105_vm8, %v2789_v43, %v2788_v21  ;;  %vm2115_vm9 = vcmp.eq.s32.totalorder %v1827_v35, 1  ;;  %vm2107_vm10 = vcmp.eq.s32.totalorder %v1803_v51, 1  ;;  %v2812_v51 = vld [vmem:[%s3421_s23 + $0x188] sm:$0xff] }
 0x265   : > { %2361 = vst [vmem:[%s4290_s30 + $0x128] sm:$0xff] %v2233_v45  ;;  %v2243_v57 = vsel %vm2115_vm9, %v2791_v42, %v2790_v34  ;;  %v2235_v6 = vsel %vm2107_vm10, %v2793_v20, %v2792_v59  ;;  %v2813_v21 = vld [vmem:[%s3217_s14 + $0x188] sm:$0xff]  ;;  %v2814_v45 = vld [vmem:[%s3421_s23 + $0x1d8] sm:$0xff] }
 0x266   : > { %2371 = vst [vmem:[%s4290_s30 + $0x178] sm:$0xff] %v2243_v57  ;;  %v2815_v34 = vld [vmem:[%s3217_s14 + $0x1d8] sm:$0xff] }
 0x267   : > { %2363 = vst [vmem:[%s4290_s30 + $0x138] sm:$0xff] %v2235_v6  ;;  %v2816_v57 = vld [vmem:[%s3421_s23 + $0x198] sm:$0xff] }
 0x268   : > { %1931 = vperm.xlu1 %2707, %v5048_v19   ;;  %v2817_v59 = vld [vmem:[%s3217_s14 + $0x198] sm:$0xff]  ;;  %v5061_v19 = vld [vmem:[#allocation57_spill] sm:$0xff] }
 0x269   : > { %1934 = vperm.xlu2 %2705, %v5049_v50   ;;  %1937 = vperm.xlu0 %2706, %v5050_v63   ;;  %v5060_v6 = vld [vmem:[#allocation58_spill] sm:$0xff] }
 0x26a   : > { %v1806_v9 = vpop.permute.xlu1 %1805  ;;  %v5062_v50 = vld [vmem:[#allocation62_spill] sm:$0xff] }
 0x26b   : > { %vm2108_vm11 = vcmp.eq.s32.totalorder %v1806_v9, 1  ;;  %v1836_v58 = vpop.permute.xlu2 %1835  ;;  %v1812_v3 = vpop.permute.xlu0 %1811 }
 0x26c   : > { %v2236_v49 = vsel %vm2108_vm11, %v2795_v4, %v2794_v23  ;;  %vm2118_vm12 = vcmp.eq.s32.totalorder %v1836_v58, 1  ;;  %vm2110_vm13 = vcmp.eq.s32.totalorder %v1812_v3, 1  ;;  %v2818_v3 = vld [vmem:[%s3421_s23 + $0x1a0] sm:$0xff] }
 0x26d   : > { %2364 = vst [vmem:[%s4290_s30 + $0x140] sm:$0xff] %v2236_v49  ;;  %v2246_v30 = vsel %vm2118_vm12, %v2797_v22, %v2796_v41  ;;  %v2238_v1 = vsel %vm2110_vm13, %v2799_v2, %v2798_v8  ;;  %v2819_v23 = vld [vmem:[%s3217_s14 + $0x1a0] sm:$0xff]  ;;  %v2820_v49 = vld [vmem:[%s3421_s23 + $0x1f0] sm:$0xff] }
 0x26e   : > { %2374 = vst [vmem:[%s4290_s30 + $0x190] sm:$0xff] %v2246_v30  ;;  %v2821_v41 = vld [vmem:[%s3217_s14 + $0x1f0] sm:$0xff] }
 0x26f   : > { %2366 = vst [vmem:[%s4290_s30 + $0x150] sm:$0xff] %v2238_v1  ;;  %v2822_v30 = vld [vmem:[%s3421_s23 + $0x1b0] sm:$0xff] }
 0x270   : > { %1940 = vperm.xlu1 %2707, %v5051_v40   ;;  %v2823_v8 = vld [vmem:[%s3217_s14 + $0x1b0] sm:$0xff]  ;;  %v5064_v40 = vld [vmem:[#allocation60_spill] sm:$0xff] }
 0x271   : > { %1943 = vperm.xlu2 %2705, %v5052_v48   ;;  %1946 = vperm.xlu0 %2706, %v5053_v15   ;;  %v5063_v1 = vld [vmem:[#allocation61_spill] sm:$0xff] }
 0x272   : > { %v1815_v25 = vpop.permute.xlu1 %1814  ;;  %v5065_v48 = vld [vmem:[#allocation65_spill] sm:$0xff] }
 0x273   : > { %vm2111_vm14 = vcmp.eq.s32.totalorder %v1815_v25, 1  ;;  %v1845_v10 = vpop.permute.xlu2 %1844  ;;  %v1821_v18 = vpop.permute.xlu0 %1820 }
 0x274   : > { %v2239_v44 = vsel %vm2111_vm14, %v2801_v7, %v2800_v39  ;;  %vm2121_vm15 = vcmp.eq.s32.totalorder %v1845_v10, 1  ;;  %vm2113_vm0 = vcmp.eq.s32.totalorder %v1821_v18, 1  ;;  %v2824_v18 = vld [vmem:[%s3421_s23 + $0x1b8] sm:$0xff] }
 0x275   : > { %2367 = vst [vmem:[%s4290_s30 + $0x158] sm:$0xff] %v2239_v44  ;;  %v2249_v13 = vsel %vm2121_vm15, %v2803_v38, %v2802_v14  ;;  %v2241_v29 = vsel %vm2113_vm0, %v2805_v37, %v2804_v47  ;;  %v2825_v39 = vld [vmem:[%s3217_s14 + $0x1b8] sm:$0xff]  ;;  %v2826_v44 = vld [vmem:[%s3421_s23 + $0x208] sm:$0xff] }
 0x276   : > { %2377 = vst [vmem:[%s4290_s30 + $0x1a8] sm:$0xff] %v2249_v13  ;;  %v2827_v14 = vld [vmem:[%s3217_s14 + $0x208] sm:$0xff] }
 0x277   : > { %2369 = vst [vmem:[%s4290_s30 + $0x168] sm:$0xff] %v2241_v29  ;;  %v2828_v13 = vld [vmem:[%s3421_s23 + $0x1c8] sm:$0xff] }
 0x278   : > { %1949 = vperm.xlu1 %2707, %v5054_v5   ;;  %v2829_v47 = vld [vmem:[%s3217_s14 + $0x1c8] sm:$0xff]  ;;  %v5067_v5 = vld [vmem:[#allocation63_spill] sm:$0xff] }
 0x279   : > { %1952 = vperm.xlu2 %2705, %v5055_v46   ;;  %1955 = vperm.xlu0 %2706, %v5056_v54   ;;  %v5066_v29 = vld [vmem:[#allocation64_spill] sm:$0xff] }
 0x27a   : > { %v1824_v27 = vpop.permute.xlu1 %1823  ;;  %v5068_v46 = vld [vmem:[#allocation68_spill] sm:$0xff] }
 0x27b   : > { %vm2114_vm1 = vcmp.eq.s32.totalorder %v1824_v27, 1  ;;  %v1854_v28 = vpop.permute.xlu2 %1853  ;;  %v1830_v36 = vpop.permute.xlu0 %1829 }
 0x27c   : > { %v2242_v32 = vsel %vm2114_vm1, %v2807_v0, %v2806_v33  ;;  %vm2124_vm2 = vcmp.eq.s32.totalorder %v1854_v28, 1  ;;  %vm2116_vm3 = vcmp.eq.s32.totalorder %v1830_v36, 1  ;;  %v2830_v36 = vld [vmem:[%s3421_s23 + $0x1d0] sm:$0xff] }
 0x27d   : > { %2370 = vst [vmem:[%s4290_s30 + $0x170] sm:$0xff] %v2242_v32  ;;  %v2252_v11 = vsel %vm2124_vm2, %v2809_v56, %v2808_v17  ;;  %v2244_v16 = vsel %vm2116_vm3, %v2811_v53, %v2810_v12  ;;  %v2831_v33 = vld [vmem:[%s3217_s14 + $0x1d0] sm:$0xff]  ;;  %v2832_v32 = vld [vmem:[%s3421_s23 + $0x220] sm:$0xff] }
 0x27e   : > { %2380 = vst [vmem:[%s4290_s30 + $0x1c0] sm:$0xff] %v2252_v11  ;;  %v2833_v17 = vld [vmem:[%s3217_s14 + $0x220] sm:$0xff] }
 0x27f   : > { %2372 = vst [vmem:[%s4290_s30 + $0x180] sm:$0xff] %v2244_v16  ;;  %v2834_v11 = vld [vmem:[%s3421_s23 + $0x1e0] sm:$0xff] }
 0x280   : > { %1958 = vperm.xlu1 %2707, %v5057_v24   ;;  %v2835_v12 = vld [vmem:[%s3217_s14 + $0x1e0] sm:$0xff]  ;;  %v5070_v24 = vld [vmem:[#allocation66_spill] sm:$0xff] }
 0x281   : > { %1961 = vperm.xlu2 %2705, %v5058_v52   ;;  %1964 = vperm.xlu0 %2706, %v5059_v60   ;;  %v5069_v16 = vld [vmem:[#allocation67_spill] sm:$0xff] }
 0x282   : > { %v1833_v26 = vpop.permute.xlu1 %1832  ;;  %v5071_v52 = vld [vmem:[#allocation71_spill] sm:$0xff] }
 0x283   : > { %vm2117_vm4 = vcmp.eq.s32.totalorder %v1833_v26, 1  ;;  %v1863_v55 = vpop.permute.xlu2 %1862  ;;  %v1839_v35 = vpop.permute.xlu0 %1838 }
 0x284   : > { %v2245_v43 = vsel %vm2117_vm4, %v2813_v21, %v2812_v51  ;;  %vm2127_vm5 = vcmp.eq.s32.totalorder %v1863_v55, 1  ;;  %vm2119_vm6 = vcmp.eq.s32.totalorder %v1839_v35, 1  ;;  %v2836_v35 = vld [vmem:[%s3421_s23 + $0x1e8] sm:$0xff] }
 0x285   : > { %2373 = vst [vmem:[%s4290_s30 + $0x188] sm:$0xff] %v2245_v43  ;;  %v2255_v42 = vsel %vm2127_vm5, %v2815_v34, %v2814_v45  ;;  %v2247_v20 = vsel %vm2119_vm6, %v2817_v59, %v2816_v57  ;;  %v2837_v51 = vld [vmem:[%s3217_s14 + $0x1e8] sm:$0xff]  ;;  %v2838_v43 = vld [vmem:[%s3421_s23 + $0x238] sm:$0xff] }
 0x286   : > { %2383 = vst [vmem:[%s4290_s30 + $0x1d8] sm:$0xff] %v2255_v42  ;;  %v2839_v45 = vld [vmem:[%s3217_s14 + $0x238] sm:$0xff] }
 0x287   : > { %2375 = vst [vmem:[%s4290_s30 + $0x198] sm:$0xff] %v2247_v20  ;;  %v2840_v42 = vld [vmem:[%s3421_s23 + $0x1f8] sm:$0xff] }
 0x288   : > { %1967 = vperm.xlu1 %2707, %v5060_v6   ;;  %v2841_v57 = vld [vmem:[%s3217_s14 + $0x1f8] sm:$0xff]  ;;  %v5073_v6 = vld [vmem:[#allocation69_spill] sm:$0xff] }
 0x289   : > { %1970 = vperm.xlu2 %2705, %v5061_v19   ;;  %1973 = vperm.xlu0 %2706, %v5062_v50   ;;  %v5072_v20 = vld [vmem:[#allocation70_spill] sm:$0xff] }
 0x28a   : > { %v1842_v63 = vpop.permute.xlu1 %1841  ;;  %v5074_v19 = vld [vmem:[#allocation74_spill] sm:$0xff] }
 0x28b   : > { %vm2120_vm7 = vcmp.eq.s32.totalorder %v1842_v63, 1  ;;  %v1872_v9 = vpop.permute.xlu2 %1871  ;;  %v1848_v58 = vpop.permute.xlu0 %1847 }
 0x28c   : > { %v2248_v4 = vsel %vm2120_vm7, %v2819_v23, %v2818_v3  ;;  %vm2130_vm8 = vcmp.eq.s32.totalorder %v1872_v9, 1  ;;  %vm2122_vm9 = vcmp.eq.s32.totalorder %v1848_v58, 1  ;;  %v2842_v58 = vld [vmem:[%s3421_s23 + $0x200] sm:$0xff] }
 0x28d   : > { %2376 = vst [vmem:[%s4290_s30 + $0x1a0] sm:$0xff] %v2248_v4  ;;  %v2258_v22 = vsel %vm2130_vm8, %v2821_v41, %v2820_v49  ;;  %v2250_v2 = vsel %vm2122_vm9, %v2823_v8, %v2822_v30  ;;  %v2843_v3 = vld [vmem:[%s3217_s14 + $0x200] sm:$0xff]  ;;  %v2844_v4 = vld [vmem:[%s3421_s23 + $0x250] sm:$0xff] }
 0x28e   : > { %2386 = vst [vmem:[%s4290_s30 + $0x1f0] sm:$0xff] %v2258_v22  ;;  %v2845_v49 = vld [vmem:[%s3217_s14 + $0x250] sm:$0xff] }
 0x28f   : > { %2378 = vst [vmem:[%s4290_s30 + $0x1b0] sm:$0xff] %v2250_v2  ;;  %v2846_v22 = vld [vmem:[%s3421_s23 + $0x210] sm:$0xff] }
 0x290   : > { %1976 = vperm.xlu1 %2707, %v5063_v1   ;;  %v2847_v30 = vld [vmem:[%s3217_s14 + $0x210] sm:$0xff]  ;;  %v5076_v1 = vld [vmem:[#allocation72_spill] sm:$0xff] }
 0x291   : > { %1979 = vperm.xlu2 %2705, %v5064_v40   ;;  %1982 = vperm.xlu0 %2706, %v5065_v48   ;;  %v5075_v2 = vld [vmem:[#allocation73_spill] sm:$0xff] }
 0x292   : > { %v1851_v15 = vpop.permute.xlu1 %1850  ;;  %v5077_v40 = vld [vmem:[#allocation77_spill] sm:$0xff] }
 0x293   : > { %vm2123_vm10 = vcmp.eq.s32.totalorder %v1851_v15, 1  ;;  %v1881_v25 = vpop.permute.xlu2 %1880  ;;  %v1857_v10 = vpop.permute.xlu0 %1856 }
 0x294   : > { %v2251_v7 = vsel %vm2123_vm10, %v2825_v39, %v2824_v18  ;;  %vm2133_vm11 = vcmp.eq.s32.totalorder %v1881_v25, 1  ;;  %vm2125_vm12 = vcmp.eq.s32.totalorder %v1857_v10, 1  ;;  %v2848_v10 = vld [vmem:[%s3421_s23 + $0x218] sm:$0xff] }
 0x295   : > { %2379 = vst [vmem:[%s4290_s30 + $0x1b8] sm:$0xff] %v2251_v7  ;;  %v2261_v38 = vsel %vm2133_vm11, %v2827_v14, %v2826_v44  ;;  %v2253_v37 = vsel %vm2125_vm12, %v2829_v47, %v2828_v13  ;;  %v2849_v18 = vld [vmem:[%s3217_s14 + $0x218] sm:$0xff]  ;;  %v2850_v7 = vld [vmem:[%s3421_s23 + $0x268] sm:$0xff] }
 0x296   : > { %2389 = vst [vmem:[%s4290_s30 + $0x208] sm:$0xff] %v2261_v38  ;;  %v2851_v44 = vld [vmem:[%s3217_s14 + $0x268] sm:$0xff] }
 0x297   : > { %2381 = vst [vmem:[%s4290_s30 + $0x1c8] sm:$0xff] %v2253_v37  ;;  %v2852_v38 = vld [vmem:[%s3421_s23 + $0x228] sm:$0xff] }
 0x298   : > { %1985 = vperm.xlu1 %2707, %v5066_v29   ;;  %v2853_v13 = vld [vmem:[%s3217_s14 + $0x228] sm:$0xff]  ;;  %v5079_v29 = vld [vmem:[#allocation75_spill] sm:$0xff] }
 0x299   : > { %1988 = vperm.xlu2 %2705, %v5067_v5   ;;  %1991 = vperm.xlu0 %2706, %v5068_v46   ;;  %v5078_v37 = vld [vmem:[#allocation76_spill] sm:$0xff] }
 0x29a   : > { %v1860_v54 = vpop.permute.xlu1 %1859  ;;  %v5080_v5 = vld [vmem:[#allocation80_spill] sm:$0xff] }
 0x29b   : > { %vm2126_vm13 = vcmp.eq.s32.totalorder %v1860_v54, 1  ;;  %v1890_v27 = vpop.permute.xlu2 %1889  ;;  %v1866_v28 = vpop.permute.xlu0 %1865 }
 0x29c   : > { %v2254_v0 = vsel %vm2126_vm13, %v2831_v33, %v2830_v36  ;;  %vm2136_vm14 = vcmp.eq.s32.totalorder %v1890_v27, 1  ;;  %vm2128_vm15 = vcmp.eq.s32.totalorder %v1866_v28, 1  ;;  %v2854_v28 = vld [vmem:[%s3421_s23 + $0x230] sm:$0xff] }
 0x29d   : > { %2382 = vst [vmem:[%s4290_s30 + $0x1d0] sm:$0xff] %v2254_v0  ;;  %v2264_v56 = vsel %vm2136_vm14, %v2833_v17, %v2832_v32  ;;  %v2256_v53 = vsel %vm2128_vm15, %v2835_v12, %v2834_v11  ;;  %v2855_v36 = vld [vmem:[%s3217_s14 + $0x230] sm:$0xff]  ;;  %v2856_v0 = vld [vmem:[%s3421_s23 + $0x280] sm:$0xff] }
 0x29e   : > { %2392 = vst [vmem:[%s4290_s30 + $0x220] sm:$0xff] %v2264_v56  ;;  %v2857_v32 = vld [vmem:[%s3217_s14 + $0x280] sm:$0xff] }
 0x29f   : > { %2384 = vst [vmem:[%s4290_s30 + $0x1e0] sm:$0xff] %v2256_v53  ;;  %v2858_v56 = vld [vmem:[%s3421_s23 + $0x240] sm:$0xff] }
 0x2a0   : > { %1994 = vperm.xlu1 %2707, %v5069_v16   ;;  %v2859_v11 = vld [vmem:[%s3217_s14 + $0x240] sm:$0xff]  ;;  %v5082_v16 = vld [vmem:[#allocation78_spill] sm:$0xff] }
 0x2a1   : > { %1997 = vperm.xlu2 %2705, %v5070_v24   ;;  %2000 = vperm.xlu0 %2706, %v5071_v52   ;;  %v5081_v53 = vld [vmem:[#allocation79_spill] sm:$0xff] }
 0x2a2   : > { %v1869_v60 = vpop.permute.xlu1 %1868  ;;  %v5083_v24 = vld [vmem:[#allocation83_spill] sm:$0xff] }
 0x2a3   : > { %vm2129_vm0 = vcmp.eq.s32.totalorder %v1869_v60, 1  ;;  %v1899_v26 = vpop.permute.xlu2 %1898  ;;  %v1875_v55 = vpop.permute.xlu0 %1874 }
 0x2a4   : > { %v2257_v21 = vsel %vm2129_vm0, %v2837_v51, %v2836_v35  ;;  %vm2139_vm1 = vcmp.eq.s32.totalorder %v1899_v26, 1  ;;  %vm2131_vm2 = vcmp.eq.s32.totalorder %v1875_v55, 1  ;;  %v2860_v55 = vld [vmem:[%s3421_s23 + $0x248] sm:$0xff] }
 0x2a5   : > { %2385 = vst [vmem:[%s4290_s30 + $0x1e8] sm:$0xff] %v2257_v21  ;;  %v2267_v34 = vsel %vm2139_vm1, %v2839_v45, %v2838_v43  ;;  %v2259_v59 = vsel %vm2131_vm2, %v2841_v57, %v2840_v42  ;;  %v2861_v35 = vld [vmem:[%s3217_s14 + $0x248] sm:$0xff]  ;;  %v2862_v21 = vld [vmem:[%s3421_s23 + $0x298] sm:$0xff] }
 0x2a6   : > { %2395 = vst [vmem:[%s4290_s30 + $0x238] sm:$0xff] %v2267_v34  ;;  %v2863_v43 = vld [vmem:[%s3217_s14 + $0x298] sm:$0xff] }
 0x2a7   : > { %2387 = vst [vmem:[%s4290_s30 + $0x1f8] sm:$0xff] %v2259_v59  ;;  %v2864_v34 = vld [vmem:[%s3421_s23 + $0x258] sm:$0xff] }
 0x2a8   : > { %2003 = vperm.xlu1 %2707, %v5072_v20   ;;  %v2865_v42 = vld [vmem:[%s3217_s14 + $0x258] sm:$0xff]  ;;  %v5085_v20 = vld [vmem:[#allocation81_spill] sm:$0xff] }
 0x2a9   : > { %2006 = vperm.xlu2 %2705, %v5073_v6   ;;  %2009 = vperm.xlu0 %2706, %v5074_v19   ;;  %v5084_v59 = vld [vmem:[#allocation82_spill] sm:$0xff] }
 0x2aa   : > { %v1878_v50 = vpop.permute.xlu1 %1877  ;;  %v5086_v6 = vld [vmem:[#allocation86_spill] sm:$0xff] }
 0x2ab   : > { %vm2132_vm3 = vcmp.eq.s32.totalorder %v1878_v50, 1  ;;  %v1908_v63 = vpop.permute.xlu2 %1907  ;;  %v1884_v9 = vpop.permute.xlu0 %1883 }
 0x2ac   : > { %v2260_v23 = vsel %vm2132_vm3, %v2843_v3, %v2842_v58  ;;  %vm2142_vm4 = vcmp.eq.s32.totalorder %v1908_v63, 1  ;;  %vm2134_vm5 = vcmp.eq.s32.totalorder %v1884_v9, 1  ;;  %v2866_v9 = vld [vmem:[%s3421_s23 + $0x260] sm:$0xff] }
 0x2ad   : > { %2388 = vst [vmem:[%s4290_s30 + $0x200] sm:$0xff] %v2260_v23  ;;  %v2270_v41 = vsel %vm2142_vm4, %v2845_v49, %v2844_v4  ;;  %v2262_v8 = vsel %vm2134_vm5, %v2847_v30, %v2846_v22  ;;  %v2867_v58 = vld [vmem:[%s3217_s14 + $0x260] sm:$0xff]  ;;  %v2868_v23 = vld [vmem:[%s3421_s23 + $0x2b0] sm:$0xff] }
 0x2ae   : > { %2398 = vst [vmem:[%s4290_s30 + $0x250] sm:$0xff] %v2270_v41  ;;  %v2869_v4 = vld [vmem:[%s3217_s14 + $0x2b0] sm:$0xff] }
 0x2af   : > { %2390 = vst [vmem:[%s4290_s30 + $0x210] sm:$0xff] %v2262_v8  ;;  %v2870_v41 = vld [vmem:[%s3421_s23 + $0x270] sm:$0xff] }
 0x2b0   : > { %2012 = vperm.xlu1 %2707, %v5075_v2   ;;  %v2871_v22 = vld [vmem:[%s3217_s14 + $0x270] sm:$0xff]  ;;  %v5088_v2 = vld [vmem:[#allocation84_spill] sm:$0xff] }
 0x2b1   : > { %2015 = vperm.xlu2 %2705, %v5076_v1   ;;  %2018 = vperm.xlu0 %2706, %v5077_v40   ;;  %v5087_v8 = vld [vmem:[#allocation85_spill] sm:$0xff] }
 0x2b2   : > { %v1887_v48 = vpop.permute.xlu1 %1886 }
 0x2b3   : > { %vm2135_vm6 = vcmp.eq.s32.totalorder %v1887_v48, 1  ;;  %v1917_v15 = vpop.permute.xlu2 %1916  ;;  %v1893_v25 = vpop.permute.xlu0 %1892 }
 0x2b4   : > { %v2263_v39 = vsel %vm2135_vm6, %v2849_v18, %v2848_v10  ;;  %vm2145_vm7 = vcmp.eq.s32.totalorder %v1917_v15, 1  ;;  %vm2137_vm8 = vcmp.eq.s32.totalorder %v1893_v25, 1  ;;  %v2872_v15 = vld [vmem:[%s3421_s23 + $0x278] sm:$0xff]  ;;  %v2874_v18 = vld [vmem:[%s3421_s23 + $0x2c8] sm:$0xff] }
 0x2b5   : > { %2391 = vst [vmem:[%s4290_s30 + $0x218] sm:$0xff] %v2263_v39  ;;  %v2273_v14 = vsel %vm2145_vm7, %v2851_v44, %v2850_v7  ;;  %v2265_v47 = vsel %vm2137_vm8, %v2853_v13, %v2852_v38  ;;  %v2873_v25 = vld [vmem:[%s3217_s14 + $0x278] sm:$0xff]  ;;  %v2875_v39 = vld [vmem:[%s3217_s14 + $0x2c8] sm:$0xff]  ;;  %v5090_v13 = vld [vmem:[#allocation87_spill] sm:$0xff] }
 0x2b6   : > { %2401 = vst [vmem:[%s4290_s30 + $0x268] sm:$0xff] %v2273_v14  ;;  %v2876_v7 = vld [vmem:[%s3421_s23 + $0x288] sm:$0xff] }
 0x2b7   : > { %2393 = vst [vmem:[%s4290_s30 + $0x228] sm:$0xff] %v2265_v47  ;;  %v2877_v44 = vld [vmem:[%s3217_s14 + $0x288] sm:$0xff] }
 0x2b8   : > { %2021 = vperm.xlu1 %2707, %v5078_v37   ;;  %v5089_v38 = vld [vmem:[#allocation88_spill] sm:$0xff] }
 0x2b9   : > { %2024 = vperm.xlu2 %2705, %v5079_v29   ;;  %2027 = vperm.xlu0 %2706, %v5080_v5  }
 0x2ba   : > { %v1896_v46 = vpop.permute.xlu1 %1895 }
 0x2bb   : > { %vm2138_vm9 = vcmp.eq.s32.totalorder %v1896_v46, 1  ;;  %v1926_v54 = vpop.permute.xlu2 %1925  ;;  %v1902_v27 = vpop.permute.xlu0 %1901 }
 0x2bc   : > { %v2266_v33 = vsel %vm2138_vm9, %v2855_v36, %v2854_v28  ;;  %vm2148_vm10 = vcmp.eq.s32.totalorder %v1926_v54, 1  ;;  %vm2140_vm11 = vcmp.eq.s32.totalorder %v1902_v27, 1 }
 0x2bd   : > { %2394 = vst [vmem:[%s4290_s30 + $0x230] sm:$0xff] %v2266_v33  ;;  %v2276_v17 = vsel %vm2148_vm10, %v2857_v32, %v2856_v0  ;;  %v2268_v12 = vsel %vm2140_vm11, %v2859_v11, %v2858_v56 }
 0x2be   : > { %2404 = vst [vmem:[%s4290_s30 + $0x280] sm:$0xff] %v2276_v17 }
 0x2bf   : > { %2396 = vst [vmem:[%s4290_s30 + $0x240] sm:$0xff] %v2268_v12 }
 0x2c0   : > { %2030 = vperm.xlu1 %2707, %v5081_v53  }
 0x2c1   : > { %2033 = vperm.xlu2 %2705, %v5082_v16   ;;  %2036 = vperm.xlu0 %2706, %v5083_v24  }
 0x2c2   : > { %v1905_v52 = vpop.permute.xlu1 %1904 }
 0x2c3   : > { %vm2141_vm12 = vcmp.eq.s32.totalorder %v1905_v52, 1  ;;  %v1935_v60 = vpop.permute.xlu2 %1934  ;;  %v1911_v26 = vpop.permute.xlu0 %1910 }
 0x2c4   : > { %v2269_v51 = vsel %vm2141_vm12, %v2861_v35, %v2860_v55  ;;  %vm2151_vm13 = vcmp.eq.s32.totalorder %v1935_v60, 1  ;;  %vm2143_vm14 = vcmp.eq.s32.totalorder %v1911_v26, 1 }
 0x2c5   : > { %2397 = vst [vmem:[%s4290_s30 + $0x248] sm:$0xff] %v2269_v51  ;;  %v2279_v45 = vsel %vm2151_vm13, %v2863_v43, %v2862_v21  ;;  %v2271_v57 = vsel %vm2143_vm14, %v2865_v42, %v2864_v34 }
 0x2c6   : > { %2407 = vst [vmem:[%s4290_s30 + $0x298] sm:$0xff] %v2279_v45 }
 0x2c7   : > { %2399 = vst [vmem:[%s4290_s30 + $0x258] sm:$0xff] %v2271_v57 }
 0x2c8   : > { %2039 = vperm.xlu1 %2707, %v5084_v59  }
 0x2c9   : > { %2042 = vperm.xlu2 %2705, %v5085_v20   ;;  %2045 = vperm.xlu0 %2706, %v5086_v6  }
 0x2ca   : > { %v1914_v19 = vpop.permute.xlu1 %1913 }
 0x2cb   : > { %vm2144_vm15 = vcmp.eq.s32.totalorder %v1914_v19, 1  ;;  %v1944_v50 = vpop.permute.xlu2 %1943  ;;  %v1920_v63 = vpop.permute.xlu0 %1919 }
 0x2cc   : > { %v2272_v3 = vsel %vm2144_vm15, %v2867_v58, %v2866_v9  ;;  %vm2154_vm0 = vcmp.eq.s32.totalorder %v1944_v50, 1  ;;  %vm2146_vm1 = vcmp.eq.s32.totalorder %v1920_v63, 1 }
 0x2cd   : > { %2400 = vst [vmem:[%s4290_s30 + $0x260] sm:$0xff] %v2272_v3  ;;  %v2282_v49 = vsel %vm2154_vm0, %v2869_v4, %v2868_v23  ;;  %v2274_v30 = vsel %vm2146_vm1, %v2871_v22, %v2870_v41 }
 0x2ce   : > { %2410 = vst [vmem:[%s4290_s30 + $0x2b0] sm:$0xff] %v2282_v49 }
 0x2cf   : > { %2402 = vst [vmem:[%s4290_s30 + $0x270] sm:$0xff] %v2274_v30 }
 0x2d0   : > { %2048 = vperm.xlu1 %2707, %v5087_v8  }
 0x2d1   : > { %2051 = vperm.xlu2 %2705, %v5088_v2   ;;  %2054 = vperm.xlu0 %2706, %v4123_v31  }
 0x2d2   : > { %v1923_v1 = vpop.permute.xlu1 %1922 }
 0x2d3   : > { %vm2147_vm2 = vcmp.eq.s32.totalorder %v1923_v1, 1  ;;  %v1953_v40 = vpop.permute.xlu2 %1952  ;;  %v1929_v48 = vpop.permute.xlu0 %1928 }
 0x2d4   : > { %v2275_v10 = vsel %vm2147_vm2, %v2873_v25, %v2872_v15  ;;  %vm2157_vm3 = vcmp.eq.s32.totalorder %v1953_v40, 1  ;;  %vm2149_vm4 = vcmp.eq.s32.totalorder %v1929_v48, 1 }
 0x2d5   : > { %2403 = vst [vmem:[%s4290_s30 + $0x278] sm:$0xff] %v2275_v10  ;;  %v2285_v31 = vsel %vm2157_vm3, %v2875_v39, %v2874_v18  ;;  %v2277_v14 = vsel %vm2149_vm4, %v2877_v44, %v2876_v7 }
 0x2d6   : > { %2413 = vst [vmem:[%s4290_s30 + $0x2c8] sm:$0xff] %v2285_v31 }
 0x2d7   : > { %2405 = vst [vmem:[%s4290_s30 + $0x288] sm:$0xff] %v2277_v14 }
 0x2d8   : > { %2057 = vperm.xlu1 %2707, %v5089_v38  }
 0x2d9   : > { %2060 = vperm.xlu2 %2705, %v5090_v13   ;;  %2063 = vperm.xlu0 %2706, %v4143_v62  }
 0x2da   : > { %3021 = shalt.err (!%p3018_p5)
}
 0x2db   : > { %s3098_s6 = smov 128   ;;  %s3099_s8 = smov 8   ;;  %v1932_v62 = vpop.permute.xlu1 %1931  ;;  %v1962_v47 = vpop.permute.xlu2 %1961  ;;  %v2878_v29 = vld [vmem:[%s3421_s23 + $0x290] sm:$0xff]  ;;  %v2880_v54 = vld [vmem:[%s3421_s23 + $0x2e0] sm:$0xff]  ;;  %v2884_v11 = vld [vmem:[%s3421_s23 + $0x2a8] sm:$0xff] }
 0x2dc   : > { %2647 = dma.vmem_to_hbm [thread:$0]  (%p3174_p10), %s2471_s10, 16384, %s2473_s9, %s2453_s11, %s3098_s6, %s3098_s6, %s3099_s8   ;;  %vm2150_vm5 = vcmp.eq.s32.totalorder %v1932_v62, 1  ;;  %v1938_v37 = vpop.permute.xlu0 %1937  ;;  %vm2160_vm6 = vcmp.eq.s32.totalorder %v1962_v47, 1 }
 0x2dd   : > { %v2879_v5 = vld [vmem:[%s3217_s14 + $0x290] sm:$0xff]  ;;  %vm2152_vm7 = vcmp.eq.s32.totalorder %v1938_v37, 1  ;;  %v2881_v27 = vld [vmem:[%s3217_s14 + $0x2e0] sm:$0xff]  ;;  %v2885_v12 = vld [vmem:[%s3217_s14 + $0x2a8] sm:$0xff]  ;;  %s2486_s11 = scalar_lea.hbm %s4848_s4, %s2643_s5  ;;  %s2487_s12 = sshll.u32 %s4290_s30, 4  ;;  %s2488_s12 = int_to_ptr.vmem [resolvable:$true] %s2487_s12 }
 0x2de   : > { %v2278_v46 = vsel %vm2150_vm5, %v2879_v5, %v2878_v29  ;;  %v2288_v28 = vsel %vm2160_vm6, %v2881_v27, %v2880_v54  ;;  %v2882_v36 = vld [vmem:[%s3421_s23 + $0x2a0] sm:$0xff]  ;;  %v2886_v16 = vld [vmem:[%s3421_s23 + $0x2f8] sm:$0xff]  ;;  %v2892_v34 = vld [vmem:[%s3421_s23 + $0x310] sm:$0xff]  ;;  %s2489_s13 = sshll.u32 %s2486_s11, 4  ;;  %s2458_s26 = scalar_lea.sflag [#allocation7], %s3210_s7  ;;  %s2490_s13 = int_to_ptr.hbm [resolvable:$true] %s2489_s13 }
 0x2df   : > { %2406 = vst [vmem:[%s4290_s30 + $0x290] sm:$0xff] %v2278_v46  ;;  %v2883_v33 = vld [vmem:[%s3217_s14 + $0x2a0] sm:$0xff]  ;;  %v2887_v24 = vld [vmem:[%s3217_s14 + $0x2f8] sm:$0xff]  ;;  %v2893_v42 = vld [vmem:[%s3217_s14 + $0x310] sm:$0xff]  ;;  %s3036_s20 = sshra.s32 %s2490_s13, 4  ;;  %s3042_s25 = scalar_lea.hbm %s4848_s4, 4096  ;;  %s3037_s20 = int_to_ptr.hbm [resolvable:$true] %s3036_s20 }
 0x2e0   : > { %v2280_v0 = vsel %vm2152_vm7, %v2883_v33, %v2882_v36  ;;  %2416 = vst [vmem:[%s4290_s30 + $0x2e0] sm:$0xff] %v2288_v28  ;;  %2066 = vperm.xlu1 %2707, %v4139_v61   ;;  %v2888_v61 = vld [vmem:[%s3421_s23 + $0x2b8] sm:$0xff]  ;;  %v2890_v21 = vld [vmem:[%s3421_s23 + $0x2c0] sm:$0xff]  ;;  %v2894_v59 = vld [vmem:[%s3421_s23 + $0x2d0] sm:$0xff]  ;;  %s3038_s19 = scalar_lea.hbm %s3037_s20, 1024  ;;  %p3043_p1 = scmp.lt.s32.totalorder %s3037_s20, %s4848_s4 }
 0x2e1   : > { %2408 = vst [vmem:[%s4290_s30 + $0x2a0] sm:$0xff] %v2280_v0  ;;  %v2889_v60 = vld [vmem:[%s3217_s14 + $0x2b8] sm:$0xff]  ;;  %v2891_v43 = vld [vmem:[%s3217_s14 + $0x2c0] sm:$0xff]  ;;  %v2895_v20 = vld [vmem:[%s3217_s14 + $0x2d0] sm:$0xff]  ;;  %p3039_p7 = scmp.ne.s32.totalorder %s3037_s20, %s3038_s19  ;;  %p3044_p12 = scmp.lt.s32.totalorder %s3042_s25, %s3038_s19 }
 0x2e2   : > { %v2896_v9 = vld [vmem:[%s3421_s23 + $0x2d8] sm:$0xff]  ;;  %v2898_v23 = vld [vmem:[%s3421_s23 + $0x328] sm:$0xff]  ;;  %v2902_v40 = vld [vmem:[%s3421_s23 + $0x2f0] sm:$0xff] }
 0x2e3   : > { %v1941_v32 = vpop.permute.xlu1 %1940  ;;  %v1971_v17 = vpop.permute.xlu2 %1970  ;;  %v2897_v58 = vld [vmem:[%s3217_s14 + $0x2d8] sm:$0xff]  ;;  %v2899_v4 = vld [vmem:[%s3217_s14 + $0x328] sm:$0xff]  ;;  %v2903_v48 = vld [vmem:[%s3217_s14 + $0x2f0] sm:$0xff]  ;;  %p3040_p8 = pnand %p3039_p7, %p3174_p10  ;;  %p3045_p6 = por %p3044_p12, %p3043_p1 }
 0x2e4   : > { %vm2153_vm8 = vcmp.eq.s32.totalorder %v1941_v32, 1  ;;  %v1947_v56 = vpop.permute.xlu0 %1946  ;;  %vm2163_vm9 = vcmp.eq.s32.totalorder %v1971_v17, 1  ;;  %v2900_v41 = vld [vmem:[%s3421_s23 + $0x2e8] sm:$0xff]  ;;  %v2904_v25 = vld [vmem:[%s3421_s23 + $0x340] sm:$0xff]  ;;  %v2910_v37 = vld [vmem:[%s3421_s23 + $0x358] sm:$0xff] }
 0x2e5   : > { %v2281_v53 = vsel %vm2153_vm8, %v2885_v12, %v2884_v11  ;;  %vm2155_vm10 = vcmp.eq.s32.totalorder %v1947_v56, 1  ;;  %v2291_v52 = vsel %vm2163_vm9, %v2887_v24, %v2886_v16  ;;  %v2901_v22 = vld [vmem:[%s3217_s14 + $0x2e8] sm:$0xff]  ;;  %v2905_v10 = vld [vmem:[%s3217_s14 + $0x340] sm:$0xff]  ;;  %v2911_v29 = vld [vmem:[%s3217_s14 + $0x358] sm:$0xff]  ;;  %p3041_p9 = pneg %p3040_p8 }
 0x2e6   : > { %2409 = vst [vmem:[%s4290_s30 + $0x2a8] sm:$0xff] %v2281_v53  ;;  %v2283_v26 = vsel %vm2155_vm10, %v2889_v60, %v2888_v61  ;;  %v2906_v39 = vld [vmem:[%s3421_s23 + $0x300] sm:$0xff]  ;;  %v2908_v13 = vld [vmem:[%s3421_s23 + $0x308] sm:$0xff]  ;;  %v2912_v46 = vld [vmem:[%s3421_s23 + $0x318] sm:$0xff] }
 0x2e7   : > { %2419 = vst [vmem:[%s4290_s30 + $0x2f8] sm:$0xff] %v2291_v52  ;;  %v2907_v31 = vld [vmem:[%s3217_s14 + $0x300] sm:$0xff]  ;;  %v2909_v62 = vld [vmem:[%s3217_s14 + $0x308] sm:$0xff]  ;;  %v2913_v54 = vld [vmem:[%s3217_s14 + $0x318] sm:$0xff]  ;;  %p3046_p13 = pnand %p3045_p6, %p3041_p9 }
 0x2e8   : > { %2411 = vst [vmem:[%s4290_s30 + $0x2b8] sm:$0xff] %v2283_v26  ;;  %v2914_v0 = vld [vmem:[%s3421_s23 + $0x320] sm:$0xff]  ;;  %v2916_v56 = vld [vmem:[%s3421_s23 + $0x370] sm:$0xff]  ;;  %v2920_v26 = vld [vmem:[%s3421_s23 + $0x338] sm:$0xff] }
 0x2e9   : > { %v2915_v32 = vld [vmem:[%s3217_s14 + $0x320] sm:$0xff]  ;;  %v2917_v11 = vld [vmem:[%s3217_s14 + $0x370] sm:$0xff] }
 0x2ea   : > { %v2918_v53 = vld [vmem:[%s3421_s23 + $0x330] sm:$0xff] }
 0x2eb   : > { %v1950_v55 = vpop.permute.xlu1 %1949  ;;  %v1980_v35 = vpop.permute.xlu2 %1979  ;;  %v2919_v16 = vld [vmem:[%s3217_s14 + $0x330] sm:$0xff] }
 0x2ec   : > { %vm2156_vm11 = vcmp.eq.s32.totalorder %v1950_v55, 1  ;;  %v1956_v51 = vpop.permute.xlu0 %1955  ;;  %vm2166_vm12 = vcmp.eq.s32.totalorder %v1980_v35, 1  ;;  %v2921_v55 = vld [vmem:[%s3217_s14 + $0x338] sm:$0xff] }
 0x2ed   : > { %v2284_v45 = vsel %vm2156_vm11, %v2891_v43, %v2890_v21  ;;  %vm2158_vm13 = vcmp.eq.s32.totalorder %v1956_v51, 1  ;;  %v2294_v57 = vsel %vm2166_vm12, %v2893_v42, %v2892_v34  ;;  %v2922_v51 = vld [vmem:[%s3421_s23 + $0x388] sm:$0xff] }
 0x2ee   : > { %2412 = vst [vmem:[%s4290_s30 + $0x2c0] sm:$0xff] %v2284_v45  ;;  %v2286_v6 = vsel %vm2158_vm13, %v2895_v20, %v2894_v59  ;;  %v2923_v21 = vld [vmem:[%s3217_s14 + $0x388] sm:$0xff] }
 0x2ef   : > { %2422 = vst [vmem:[%s4290_s30 + $0x310] sm:$0xff] %v2294_v57  ;;  %v2924_v45 = vld [vmem:[%s3421_s23 + $0x348] sm:$0xff] }
 0x2f0   : > { %2414 = vst [vmem:[%s4290_s30 + $0x2d0] sm:$0xff] %v2286_v6  ;;  %v2925_v34 = vld [vmem:[%s3217_s14 + $0x348] sm:$0xff]  ;;  %v2926_v6 = vld [vmem:[%s3421_s23 + $0x350] sm:$0xff] }
 0x2f3   : > { %v1959_v19 = vpop.permute.xlu1 %1958  ;;  %v1989_v50 = vpop.permute.xlu2 %1988 }
 0x2f4   : > { %vm2159_vm14 = vcmp.eq.s32.totalorder %v1959_v19, 1  ;;  %v1965_v63 = vpop.permute.xlu0 %1964  ;;  %vm2169_vm15 = vcmp.eq.s32.totalorder %v1989_v50, 1  ;;  %v2927_v19 = vld [vmem:[%s3217_s14 + $0x350] sm:$0xff] }
 0x2f5   : > { %v2287_v3 = vsel %vm2159_vm14, %v2897_v58, %v2896_v9  ;;  %vm2161_vm0 = vcmp.eq.s32.totalorder %v1965_v63, 1  ;;  %v2297_v49 = vsel %vm2169_vm15, %v2899_v4, %v2898_v23  ;;  %v2928_v63 = vld [vmem:[%s3421_s23 + $0x3a0] sm:$0xff] }
 0x2f6   : > { %2415 = vst [vmem:[%s4290_s30 + $0x2d8] sm:$0xff] %v2287_v3  ;;  %v2289_v30 = vsel %vm2161_vm0, %v2901_v22, %v2900_v41  ;;  %v2929_v9 = vld [vmem:[%s3217_s14 + $0x3a0] sm:$0xff] }
 0x2f7   : > { %2425 = vst [vmem:[%s4290_s30 + $0x328] sm:$0xff] %v2297_v49  ;;  %v2930_v3 = vld [vmem:[%s3421_s23 + $0x360] sm:$0xff] }
 0x2f8   : > { %2417 = vst [vmem:[%s4290_s30 + $0x2e8] sm:$0xff] %v2289_v30  ;;  %v2931_v23 = vld [vmem:[%s3217_s14 + $0x360] sm:$0xff]  ;;  %v2932_v30 = vld [vmem:[%s3421_s23 + $0x368] sm:$0xff] }
 0x2fb   : > { %v1968_v8 = vpop.permute.xlu1 %1967  ;;  %v1998_v2 = vpop.permute.xlu2 %1997 }
 0x2fc   : > { %vm2162_vm1 = vcmp.eq.s32.totalorder %v1968_v8, 1  ;;  %v1974_v1 = vpop.permute.xlu0 %1973  ;;  %vm2172_vm2 = vcmp.eq.s32.totalorder %v1998_v2, 1  ;;  %v2933_v8 = vld [vmem:[%s3217_s14 + $0x368] sm:$0xff] }
 0x2fd   : > { %v2290_v15 = vsel %vm2162_vm1, %v2903_v48, %v2902_v40  ;;  %vm2164_vm3 = vcmp.eq.s32.totalorder %v1974_v1, 1  ;;  %v2300_v18 = vsel %vm2172_vm2, %v2905_v10, %v2904_v25  ;;  %v2934_v1 = vld [vmem:[%s3421_s23 + $0x3b8] sm:$0xff] }
 0x2fe   : > { %2418 = vst [vmem:[%s4290_s30 + $0x2f0] sm:$0xff] %v2290_v15  ;;  %v2292_v7 = vsel %vm2164_vm3, %v2907_v31, %v2906_v39  ;;  %v2935_v40 = vld [vmem:[%s3217_s14 + $0x3b8] sm:$0xff] }
 0x2ff   : > { %2428 = vst [vmem:[%s4290_s30 + $0x340] sm:$0xff] %v2300_v18  ;;  %v2936_v15 = vld [vmem:[%s3421_s23 + $0x378] sm:$0xff] }
 0x300   : > { %2420 = vst [vmem:[%s4290_s30 + $0x300] sm:$0xff] %v2292_v7  ;;  %v2937_v25 = vld [vmem:[%s3217_s14 + $0x378] sm:$0xff]  ;;  %v2938_v7 = vld [vmem:[%s3421_s23 + $0x380] sm:$0xff] }
 0x303   : > { %v1977_v44 = vpop.permute.xlu1 %1976  ;;  %v2007_v14 = vpop.permute.xlu2 %2006 }
 0x304   : > { %vm2165_vm4 = vcmp.eq.s32.totalorder %v1977_v44, 1  ;;  %v1983_v38 = vpop.permute.xlu0 %1982  ;;  %vm2175_vm5 = vcmp.eq.s32.totalorder %v2007_v14, 1  ;;  %v2939_v44 = vld [vmem:[%s3217_s14 + $0x380] sm:$0xff] }
 0x305   : > { %v2293_v47 = vsel %vm2165_vm4, %v2909_v62, %v2908_v13  ;;  %vm2167_vm6 = vcmp.eq.s32.totalorder %v1983_v38, 1  ;;  %v2303_v5 = vsel %vm2175_vm5, %v2911_v29, %v2910_v37  ;;  %v2940_v38 = vld [vmem:[%s3421_s23 + $0x3d0] sm:$0xff] }
 0x306   : > { %2421 = vst [vmem:[%s4290_s30 + $0x308] sm:$0xff] %v2293_v47  ;;  %v2295_v27 = vsel %vm2167_vm6, %v2913_v54, %v2912_v46  ;;  %v2941_v13 = vld [vmem:[%s3217_s14 + $0x3d0] sm:$0xff] }
 0x307   : > { %2431 = vst [vmem:[%s4290_s30 + $0x358] sm:$0xff] %v2303_v5  ;;  %v2942_v47 = vld [vmem:[%s3421_s23 + $0x390] sm:$0xff] }
 0x308   : > { %2423 = vst [vmem:[%s4290_s30 + $0x318] sm:$0xff] %v2295_v27  ;;  %v2943_v37 = vld [vmem:[%s3217_s14 + $0x390] sm:$0xff]  ;;  %v2944_v27 = vld [vmem:[%s3421_s23 + $0x398] sm:$0xff] }
 0x30b   : > { %v1986_v28 = vpop.permute.xlu1 %1985  ;;  %v2016_v36 = vpop.permute.xlu2 %2015 }
 0x30c   : > { %vm2168_vm7 = vcmp.eq.s32.totalorder %v1986_v28, 1  ;;  %v1992_v33 = vpop.permute.xlu0 %1991  ;;  %vm2178_vm8 = vcmp.eq.s32.totalorder %v2016_v36, 1  ;;  %v2945_v28 = vld [vmem:[%s3217_s14 + $0x398] sm:$0xff] }
 0x30d   : > { %v2296_v17 = vsel %vm2168_vm7, %v2915_v32, %v2914_v0  ;;  %vm2170_vm9 = vcmp.eq.s32.totalorder %v1992_v33, 1  ;;  %v2306_v12 = vsel %vm2178_vm8, %v2917_v11, %v2916_v56  ;;  %v2946_v33 = vld [vmem:[%s3421_s23 + $0x3e8] sm:$0xff] }
 0x30e   : > { %2424 = vst [vmem:[%s4290_s30 + $0x320] sm:$0xff] %v2296_v17  ;;  %v2298_v24 = vsel %vm2170_vm9, %v2919_v16, %v2918_v53  ;;  %v2947_v0 = vld [vmem:[%s3217_s14 + $0x3e8] sm:$0xff]  ;;  %v2950_v16 = vld [vmem:[%s3421_s23 + $0x3b0] sm:$0xff] }
 0x30f   : > { %2434 = vst [vmem:[%s4290_s30 + $0x370] sm:$0xff] %v2306_v12  ;;  %v2948_v17 = vld [vmem:[%s3421_s23 + $0x3a8] sm:$0xff] }
 0x310   : > { %2426 = vst [vmem:[%s4290_s30 + $0x330] sm:$0xff] %v2298_v24  ;;  %v2949_v56 = vld [vmem:[%s3217_s14 + $0x3a8] sm:$0xff]  ;;  %v2951_v24 = vld [vmem:[%s3217_s14 + $0x3b0] sm:$0xff] }
 0x313   : > { %v1995_v52 = vpop.permute.xlu1 %1994  ;;  %v2025_v61 = vpop.permute.xlu2 %2024 }
 0x314   : > { %vm2171_vm10 = vcmp.eq.s32.totalorder %v1995_v52, 1  ;;  %v2001_v60 = vpop.permute.xlu0 %2000  ;;  %vm2181_vm11 = vcmp.eq.s32.totalorder %v2025_v61, 1  ;;  %v2952_v61 = vld [vmem:[%s3421_s23 + $0x3c0] sm:$0xff] }
 0x315   : > { %v2299_v35 = vsel %vm2171_vm10, %v2921_v55, %v2920_v26  ;;  %vm2173_vm12 = vcmp.eq.s32.totalorder %v2001_v60, 1  ;;  %v2309_v43 = vsel %vm2181_vm11, %v2923_v21, %v2922_v51  ;;  %v2953_v60 = vld [vmem:[%s3217_s14 + $0x3c0] sm:$0xff]  ;;  %v2954_v51 = vld [vmem:[%s3421_s23 + $0x3c8] sm:$0xff] }
 0x316   : > { %2427 = vst [vmem:[%s4290_s30 + $0x338] sm:$0xff] %v2299_v35  ;;  %v2301_v42 = vsel %vm2173_vm12, %v2925_v34, %v2924_v45  ;;  %v2955_v21 = vld [vmem:[%s3217_s14 + $0x3c8] sm:$0xff]  ;;  %v2956_v45 = vld [vmem:[%s3421_s23 + $0x3d8] sm:$0xff] }
 0x317   : > { %2437 = vst [vmem:[%s4290_s30 + $0x388] sm:$0xff] %v2309_v43  ;;  %v2957_v34 = vld [vmem:[%s3217_s14 + $0x3d8] sm:$0xff] }
 0x318   : > { %2429 = vst [vmem:[%s4290_s30 + $0x348] sm:$0xff] %v2301_v42 }
 0x31b   : > { %v2004_v57 = vpop.permute.xlu1 %2003  ;;  %v2034_v59 = vpop.permute.xlu2 %2033 }
 0x31c   : > { %vm2174_vm13 = vcmp.eq.s32.totalorder %v2004_v57, 1  ;;  %v2010_v20 = vpop.permute.xlu0 %2009  ;;  %vm2184_vm14 = vcmp.eq.s32.totalorder %v2034_v59, 1 }
 0x31d   : > { %v2302_v50 = vsel %vm2174_vm13, %v2927_v19, %v2926_v6  ;;  %vm2176_vm15 = vcmp.eq.s32.totalorder %v2010_v20, 1  ;;  %v2312_v58 = vsel %vm2184_vm14, %v2929_v9, %v2928_v63  ;;  %v2958_v20 = vld [vmem:[%s3421_s23 + $0x3e0] sm:$0xff]  ;;  %v2961_v63 = vld [vmem:[%s3217_s14 + $0x3f0] sm:$0xff] }
 0x31e   : > { %2430 = vst [vmem:[%s4290_s30 + $0x350] sm:$0xff] %v2302_v50  ;;  %v2304_v4 = vsel %vm2176_vm15, %v2931_v23, %v2930_v3  ;;  %v2959_v6 = vld [vmem:[%s3217_s14 + $0x3e0] sm:$0xff]  ;;  %v2960_v50 = vld [vmem:[%s3421_s23 + $0x3f0] sm:$0xff]  ;;  %v2962_v3 = vld [vmem:[%s3421_s23 + $0x3f8] sm:$0xff] }
 0x31f   : > { %2440 = vst [vmem:[%s4290_s30 + $0x3a0] sm:$0xff] %v2312_v58  ;;  %v2963_v23 = vld [vmem:[%s3217_s14 + $0x3f8] sm:$0xff] }
 0x320   : > { %2432 = vst [vmem:[%s4290_s30 + $0x360] sm:$0xff] %v2304_v4 }
 0x323   : > { %v2013_v49 = vpop.permute.xlu1 %2012  ;;  %v2043_v41 = vpop.permute.xlu2 %2042 }
 0x324   : > { %vm2177_vm0 = vcmp.eq.s32.totalorder %v2013_v49, 1  ;;  %v2019_v22 = vpop.permute.xlu0 %2018  ;;  %vm2187_vm1 = vcmp.eq.s32.totalorder %v2043_v41, 1 }
 0x325   : > { %v2305_v2 = vsel %vm2177_vm0, %v2933_v8, %v2932_v30  ;;  %vm2179_vm2 = vcmp.eq.s32.totalorder %v2019_v22, 1  ;;  %v2315_v48 = vsel %vm2187_vm1, %v2935_v40, %v2934_v1 }
 0x326   : > { %2433 = vst [vmem:[%s4290_s30 + $0x368] sm:$0xff] %v2305_v2  ;;  %v2307_v10 = vsel %vm2179_vm2, %v2937_v25, %v2936_v15 }
 0x327   : > { %2443 = vst [vmem:[%s4290_s30 + $0x3b8] sm:$0xff] %v2315_v48 }
 0x328   : > { %2435 = vst [vmem:[%s4290_s30 + $0x378] sm:$0xff] %v2307_v10 }
 0x32b   : > { %v2022_v18 = vpop.permute.xlu1 %2021  ;;  %v2052_v39 = vpop.permute.xlu2 %2051 }
 0x32c   : > { %vm2180_vm3 = vcmp.eq.s32.totalorder %v2022_v18, 1  ;;  %v2028_v31 = vpop.permute.xlu0 %2027  ;;  %vm2190_vm4 = vcmp.eq.s32.totalorder %v2052_v39, 1 }
 0x32d   : > { %v2308_v14 = vsel %vm2180_vm3, %v2939_v44, %v2938_v7  ;;  %vm2182_vm5 = vcmp.eq.s32.totalorder %v2028_v31, 1  ;;  %v2318_v62 = vsel %vm2190_vm4, %v2941_v13, %v2940_v38 }
 0x32e   : > { %2436 = vst [vmem:[%s4290_s30 + $0x380] sm:$0xff] %v2308_v14  ;;  %v2310_v29 = vsel %vm2182_vm5, %v2943_v37, %v2942_v47 }
 0x32f   : > { %2446 = vst [vmem:[%s4290_s30 + $0x3d0] sm:$0xff] %v2318_v62 }
 0x330   : > { %2438 = vst [vmem:[%s4290_s30 + $0x390] sm:$0xff] %v2310_v29 }
 0x333   : > { %v2031_v5 = vpop.permute.xlu1 %2030  ;;  %v2061_v46 = vpop.permute.xlu2 %2060 }
 0x334   : > { %vm2183_vm6 = vcmp.eq.s32.totalorder %v2031_v5, 1  ;;  %v2037_v54 = vpop.permute.xlu0 %2036  ;;  %vm2193_vm7 = vcmp.eq.s32.totalorder %v2061_v46, 1 }
 0x335   : > { %v2311_v36 = vsel %vm2183_vm6, %v2945_v28, %v2944_v27  ;;  %vm2185_vm8 = vcmp.eq.s32.totalorder %v2037_v54, 1  ;;  %v2321_v32 = vsel %vm2193_vm7, %v2947_v0, %v2946_v33 }
 0x336   : > { %2439 = vst [vmem:[%s4290_s30 + $0x398] sm:$0xff] %v2311_v36  ;;  %v2313_v11 = vsel %vm2185_vm8, %v2949_v56, %v2948_v17 }
 0x337   : > { %2449 = vst [vmem:[%s4290_s30 + $0x3e8] sm:$0xff] %v2321_v32 }
 0x338   : > { %2441 = vst [vmem:[%s4290_s30 + $0x3a8] sm:$0xff] %v2313_v11 }
 0x33b   : > { %v2040_v12 = vpop.permute.xlu1 %2039 }
 0x33c   : > { %vm2186_vm9 = vcmp.eq.s32.totalorder %v2040_v12, 1  ;;  %v2046_v53 = vpop.permute.xlu0 %2045 }
 0x33d   : > { %v2314_v52 = vsel %vm2186_vm9, %v2951_v24, %v2950_v16  ;;  %vm2188_vm10 = vcmp.eq.s32.totalorder %v2046_v53, 1 }
 0x33e   : > { %2442 = vst [vmem:[%s4290_s30 + $0x3b0] sm:$0xff] %v2314_v52  ;;  %v2316_v26 = vsel %vm2188_vm10, %v2953_v60, %v2952_v61 }
 0x33f   : > { %2444 = vst [vmem:[%s4290_s30 + $0x3c0] sm:$0xff] %v2316_v26 }
 0x343   : > { %v2049_v55 = vpop.permute.xlu1 %2048 }
 0x344   : > { %vm2189_vm11 = vcmp.eq.s32.totalorder %v2049_v55, 1  ;;  %v2055_v35 = vpop.permute.xlu0 %2054 }
 0x345   : > { %v2317_v43 = vsel %vm2189_vm11, %v2955_v21, %v2954_v51  ;;  %vm2191_vm12 = vcmp.eq.s32.totalorder %v2055_v35, 1 }
 0x346   : > { %2445 = vst [vmem:[%s4290_s30 + $0x3c8] sm:$0xff] %v2317_v43  ;;  %v2319_v42 = vsel %vm2191_vm12, %v2957_v34, %v2956_v45 }
 0x347   : > { %2447 = vst [vmem:[%s4290_s30 + $0x3d8] sm:$0xff] %v2319_v42 }
 0x34b   : > { %v2058_v57 = vpop.permute.xlu1 %2057 }
 0x34c   : > { %vm2192_vm13 = vcmp.eq.s32.totalorder %v2058_v57, 1  ;;  %v2064_v59 = vpop.permute.xlu0 %2063 }
 0x34d   : > { %v2320_v19 = vsel %vm2192_vm13, %v2959_v6, %v2958_v20  ;;  %vm2194_vm14 = vcmp.eq.s32.totalorder %v2064_v59, 1 }
 0x34e   : > { %2448 = vst [vmem:[%s4290_s30 + $0x3e0] sm:$0xff] %v2320_v19  ;;  %v2322_v9 = vsel %vm2194_vm14, %v2961_v63, %v2960_v50 }
 0x34f   : > { %2450 = vst [vmem:[%s4290_s30 + $0x3f0] sm:$0xff] %v2322_v9 }
 0x353   : > { %v2067_v58 = vpop.permute.xlu1 %2066 }
 0x354   : > { %vm2195_vm15 = vcmp.eq.s32.totalorder %v2067_v58, 1 }
 0x355   : > { %v2323_v4 = vsel %vm2195_vm15, %v2963_v23, %v2962_v3 }
 0x356   : > { %2451 = vst [vmem:[%s4290_s30 + $0x3f8] sm:$0xff] %v2323_v4 }
 0x357   : > { %3049 = shalt.err (!%p3046_p13)
}
 0x358   : > { %2648 = dma.vmem_to_hbm [thread:$0]  (%p3174_p10), %s2488_s12, 16384, %s2490_s13, %s2458_s26, %s3098_s6, %s3098_s6, %s3099_s8  }
 0x359 PF: > { %p2663_p0 = scmp.ge.s32.totalorder %s3092_s18, 2  ;;  %s2504_s7 = sand.u32 1, %s3080_s15  }
 0x35a   : > { %s2505_s14 = scalar_lea.sflag [#allocation4], %s2504_s7 }
 0x35b   : > { %p2656_p2 = pnand %p2663_p0, %p3178_p11 }
 0x35d   : > { %p2657_p3 = pneg %p2656_p2 }
 0x35f   : > { %3071 = dma.done.wait (%p2657_p3), %s2505_s14, 16384  }
 0x360   : > { %3073 = vsyncadd (%p2657_p3), %s2505_s14, 4294950912  ;;  %s2515_s23 = scalar_lea.sflag [#allocation7], %s2504_s7 }
 0x361   : > { %3075 = dma.done.wait (%p2657_p3), %s2515_s23, 16384  }
 0x362   : > { %3077 = vsyncadd (%p2657_p3), %s2515_s23, 4294950912  ;;  %p21_p10 = scmp.ge.s32.totalorder %s3150_s21, 6   ;;  %s5091_s15 = smov %s3084_s16 }
 0x363   : > { %s5092_s16 = smov %s3088_s17  ;;  %s5093_s17 = smov %s3162_s24 }
 0x364   : > { %s5094_s18 = smov %s3150_s21  ;;  %23 = sbr.rel (!%p21_p10) target bundleno = 7 (0x7), region = 100 }
 0x369   :  { %2521 = vsyncpa [#allocation3], 1 }
 0x36a   :  { %2523 = vsyncpa [#allocation3 + $0x1], 1 }
 0x36b   :  { %2524 = vsyncpa [#allocation4], 1 }
 0x36c   :  { %2526 = vsyncpa [#allocation4 + $0x1], 1 }
 0x36d   :  { %2527 = vsyncpa [#allocation7], 1 }
 0x36e   :  { %2529 = vsyncpa [#allocation7 + $0x1], 1 }

</bundles_post_ra>
